<compile_context>
chip_gen: v7x
topology: tpu7x:2x2x1
jax: 0.10.0
libtpu: 0.0.40
codegen_flags: <defaults>
</compile_context>

<pallas_src>
import jax
import jax.numpy as jnp
from jax.experimental import pallas as pl
from jax.experimental.pallas import tpu as pltpu

HIDDEN = 768
SENT_H = 256
QA_H = 128
FUSED_H = SENT_H + QA_H          # 384: fused fc1 output width
OUT_PAD = 128                    # lane-dense output slab width
LN_EPS = 1e-5                    # PyTorch nn.LayerNorm default


def finance_head_kernel(
    emb_ref,      # (TB, S, 768) f32  token embeddings for this batch tile
    mask_ref,     # (TB, S, 1)   f32  attention mask
    wp_ref,       # (768, 768)   bf16 pooler dense weight (in, out)
    norm_ref,     # (3, 768)     f32  [pooler_b ; ln_gamma ; ln_beta]
    w1_ref,       # (768, 384)   bf16 fused [sentiment_fc1 | qa_fc1]
    w2_ref,       # (384, 128)   bf16 fused zero-padded [sentiment_fc2 | qa_fc2]
    bias_ref,     # (1, 512)     f32  [fc1 biases (384) | padded fc2 biases (128)]
    out_ref,      # (TB, 128)    f32  lane-dense output slab
):
    # --- backbone stand-in: attention-mask weighted mean over the sequence ---
    m = mask_ref[...]                                                 # (TB, S, 1)
    denom = jnp.maximum(jnp.sum(m, axis=1), 1.0)                      # (TB, 1)
    seq_repr = jnp.sum(emb_ref[...] * m, axis=1) / denom              # (TB, 768)

    # --- BERT pooler stand-in: dense + tanh (bf16 MXU, f32 accumulate) ---
    pooled = jnp.tanh(
        jnp.dot(seq_repr.astype(jnp.bfloat16), wp_ref[...],
                preferred_element_type=jnp.float32)
        + norm_ref[0:1, :]
    )

    # --- LayerNorm(768) in f32 ---
    mu = jnp.mean(pooled, axis=-1, keepdims=True)
    var = jnp.mean((pooled - mu) ** 2, axis=-1, keepdims=True)
    xn = (pooled - mu) * jax.lax.rsqrt(var + LN_EPS)
    xn = xn * norm_ref[1:2, :] + norm_ref[2:3, :]

    # --- dropout: identity in eval mode ---

    # --- fused fc1 for both heads: one MXU pass over K=768, N=384 ---
    h = jnp.maximum(
        jnp.dot(xn.astype(jnp.bfloat16), w1_ref[...],
                preferred_element_type=jnp.float32)
        + bias_ref[:, :FUSED_H],
        0.0,
    )                                                                 # (TB, 384)

    # --- fused, lane-padded fc2 for both heads: one MXU pass, N=128 ---
    out = (
        jnp.dot(h.astype(jnp.bfloat16), w2_ref[...],
                preferred_element_type=jnp.float32)
        + bias_ref[:, FUSED_H:]
    )                                                                 # (TB, 128)

    # residual x[:, :2]: add xn lanes 0..1 into output lanes 0..1
    lane = jax.lax.broadcasted_iota(jnp.int32, (1, OUT_PAD), 1)
    out = out + jnp.where(lane < 2, xn[:, :OUT_PAD], 0.0)

    out_ref[...] = out


def _round_up(x, m):
    return ((x + m - 1) // m) * m


def finance_llm_forward(input_ids, attention_mask, kparams):
    """Forward pass.  Embedding gather in JAX; everything else fused in Pallas."""
    # TODO(synk): the pretrained multi-layer BERT transformer is replaced by a
    # deterministic embedding-gather + masked-mean + pooler stand-in; the
    # data-dependent embedding gather itself stays in JAX.
    emb = kparams["embedding"][input_ids]                      # (B, S, 768) f32
    mask = attention_mask.astype(jnp.float32)[:, :, None]      # (B, S, 1)

    B, S = input_ids.shape
    TB = min(128, _round_up(B, 8))                             # batch-row tile
    B_pad = _round_up(B, TB)
    if B_pad != B:
        emb = jnp.pad(emb, ((0, B_pad - B), (0, 0), (0, 0)))
        mask = jnp.pad(mask, ((0, B_pad - B), (0, 0), (0, 0)))
    num_tiles = B_pad // TB

    # VMEM budget: double-buffered activation tiles + resident bf16 weights.
    weight_bytes = (
        2 * (HIDDEN * HIDDEN + HIDDEN * FUSED_H + FUSED_H * OUT_PAD)   # bf16
        + 4 * (3 * HIDDEN + FUSED_H + OUT_PAD)                         # f32 slabs
    )
    act_bytes = 4 * (TB * S * HIDDEN + TB * S * 128 + TB * OUT_PAD)
    vmem_limit = int(min(2 * (weight_bytes + act_bytes) + (8 << 20), 60 << 20))

    out_slab = pl.pallas_call(
        finance_head_kernel,
        grid=(num_tiles,),
        in_specs=[
            pl.BlockSpec((TB, S, HIDDEN), lambda i: (i, 0, 0)),   # emb: streamed
            pl.BlockSpec((TB, S, 1), lambda i: (i, 0, 0)),        # mask: streamed
            pl.BlockSpec((HIDDEN, HIDDEN), lambda i: (0, 0)),     # weights stay
            pl.BlockSpec((3, HIDDEN), lambda i: (0, 0)),          #  VMEM-resident
            pl.BlockSpec((HIDDEN, FUSED_H), lambda i: (0, 0)),    #  (constant
            pl.BlockSpec((FUSED_H, OUT_PAD), lambda i: (0, 0)),   #   index maps)
            pl.BlockSpec((1, FUSED_H + OUT_PAD), lambda i: (0, 0)),
        ],
        out_specs=pl.BlockSpec((TB, OUT_PAD), lambda i: (i, 0)),
        out_shape=jax.ShapeDtypeStruct((B_pad, OUT_PAD), jnp.float32),
        compiler_params=pltpu.CompilerParams(
            dimension_semantics=("parallel",),   # v7x: shard batch over 2 TCs
            vmem_limit_bytes=vmem_limit,
        ),
    )(
        emb, mask,
        kparams["pooler_w"], kparams["norm_slab"],
        kparams["w1_fused"], kparams["w2_fused"], kparams["bias_slab"],
    )

    sent = out_slab[:B, 0:2]
    qa = out_slab[:B, 2:3]
    return sent, qa


def init_params(key, vocab_size=1000):
    """Raw parameters (shapes from FinanceLLM.__init__), stored (in, out)."""
    ks = jax.random.split(key, 8)
    s = 0.02
    return {
        "embedding": jax.random.normal(ks[0], (vocab_size, HIDDEN), jnp.float32) * s,
        "pooler_w": jax.random.normal(ks[1], (HIDDEN, HIDDEN), jnp.float32) * s,
        "pooler_b": jnp.zeros((1, HIDDEN), jnp.float32),
        "ln_gamma": jnp.ones((1, HIDDEN), jnp.float32),
        "ln_beta": jnp.zeros((1, HIDDEN), jnp.float32),
        "sent_w1": jax.random.normal(ks[2], (HIDDEN, SENT_H), jnp.float32) * s,
        "sent_b1": jax.random.normal(ks[3], (1, SENT_H), jnp.float32) * s,
        "sent_w2": jax.random.normal(ks[4], (SENT_H, 2), jnp.float32) * s,
        "sent_b2": jnp.zeros((1, 2), jnp.float32),
        "qa_w1": jax.random.normal(ks[5], (HIDDEN, QA_H), jnp.float32) * s,
        "qa_b1": jax.random.normal(ks[6], (1, QA_H), jnp.float32) * s,
        "qa_w2": jax.random.normal(ks[7], (QA_H, 1), jnp.float32) * s,
        "qa_b2": jnp.zeros((1, 1), jnp.float32),
    }


def pack_params(p):
    """One-time host-side fusion: bf16 weights, concatenated fc1, zero-padded
    fc2, and bias/LN params packed into two small slabs."""
    # fused fc1: (768, 384) = [sentiment_fc1 | qa_fc1]
    w1_fused = jnp.concatenate([p["sent_w1"], p["qa_w1"]], axis=1)
    b1_fused = jnp.concatenate([p["sent_b1"], p["qa_b1"]], axis=1)        # (1,384)

    # fused fc2: (384, 128) zero-padded block-diagonal-ish layout.
    w2_fused = jnp.zeros((FUSED_H, OUT_PAD), jnp.float32)
    w2_fused = w2_fused.at[:SENT_H, 0:2].set(p["sent_w2"])
    w2_fused = w2_fused.at[SENT_H:, 2:3].set(p["qa_w2"])
    b2_fused = jnp.zeros((1, OUT_PAD), jnp.float32)
    b2_fused = b2_fused.at[:, 0:2].set(p["sent_b2"])
    b2_fused = b2_fused.at[:, 2:3].set(p["qa_b2"])

    return {
        "embedding": p["embedding"],
        "pooler_w": p["pooler_w"].astype(jnp.bfloat16),
        "norm_slab": jnp.concatenate(
            [p["pooler_b"], p["ln_gamma"], p["ln_beta"]], axis=0),        # (3,768)
        "w1_fused": w1_fused.astype(jnp.bfloat16),                        # (768,384)
        "w2_fused": w2_fused.astype(jnp.bfloat16),                        # (384,128)
        "bias_slab": jnp.concatenate([b1_fused, b2_fused], axis=1),       # (1,512)
    }


def _backbone_ref(input_ids, attention_mask, p):
    emb = p["embedding"][input_ids]
    m = attention_mask.astype(jnp.float32)
    denom = jnp.maximum(m.sum(axis=1, keepdims=True), 1.0)
    return (emb * m[:, :, None]).sum(axis=1) / denom


def _reference_forward_f32(input_ids, attention_mask, p):
    """Pure-f32 JAX reference of the module semantics."""
    x = _backbone_ref(input_ids, attention_mask, p)
    pooled = jnp.tanh(x @ p["pooler_w"] + p["pooler_b"])
    mu = pooled.mean(-1, keepdims=True)
    var = ((pooled - mu) ** 2).mean(-1, keepdims=True)
    xn = (pooled - mu) / jnp.sqrt(var + LN_EPS) * p["ln_gamma"] + p["ln_beta"]
    h1 = jnp.maximum(xn @ p["sent_w1"] + p["sent_b1"], 0.0)
    sent = h1 @ p["sent_w2"] + p["sent_b2"] + xn[:, :2]
    h2 = jnp.maximum(xn @ p["qa_w1"] + p["qa_b1"], 0.0)
    qa = h2 @ p["qa_w2"] + p["qa_b2"]
    return sent, qa


def _reference_forward_bf16(input_ids, attention_mask, p):
    """Reference matching the kernel's bf16-weight / f32-accumulate math."""
    x = _backbone_ref(input_ids, attention_mask, p)
    wp = p["pooler_w"].astype(jnp.bfloat16)
    pooled = jnp.tanh(
        jnp.dot(x.astype(jnp.bfloat16), wp, preferred_element_type=jnp.float32)
        + p["pooler_b"])
    mu = pooled.mean(-1, keepdims=True)
    var = ((pooled - mu) ** 2).mean(-1, keepdims=True)
    xn = (pooled - mu) * jax.lax.rsqrt(var + LN_EPS) * p["ln_gamma"] + p["ln_beta"]
    w1 = jnp.concatenate([p["sent_w1"], p["qa_w1"]], axis=1).astype(jnp.bfloat16)
    b1 = jnp.concatenate([p["sent_b1"], p["qa_b1"]], axis=1)
    h = jnp.maximum(
        jnp.dot(xn.astype(jnp.bfloat16), w1, preferred_element_type=jnp.float32)
        + b1, 0.0)
    h1, h2 = h[:, :SENT_H], h[:, SENT_H:]
    sent = (jnp.dot(h1.astype(jnp.bfloat16), p["sent_w2"].astype(jnp.bfloat16),
                    preferred_element_type=jnp.float32)
            + p["sent_b2"] + xn[:, :2])
    qa = (jnp.dot(h2.astype(jnp.bfloat16), p["qa_w2"].astype(jnp.bfloat16),
                  preferred_element_type=jnp.float32)
          + p["qa_b2"])
    return sent, qa


if __name__ == "__main__":
    key = jax.random.PRNGKey(0)
    kp, kid, km = jax.random.split(key, 3)

    B, S, VOCAB = 8, 16, 1000
    raw = init_params(kp, vocab_size=VOCAB)
    kparams = pack_params(raw)

    input_ids = jax.random.randint(kid, (B, S), 0, VOCAB, dtype=jnp.int32)
    attention_mask = (jax.random.uniform(km, (B, S)) > 0.2).astype(jnp.int32)

    forward = jax.jit(finance_llm_forward)
    sent, qa = forward(input_ids, attention_mask, kparams)
    sent = jax.block_until_ready(sent)
    qa = jax.block_until_ready(qa)

    assert sent.shape == (B, 2) and qa.shape == (B, 1)

    # Tight check vs. a reference using the same bf16-weight / f32-acc math.
    sent_m, qa_m = _reference_forward_bf16(input_ids, attention_mask, raw)
    assert jnp.allclose(sent, sent_m, atol=5e-3, rtol=5e-3)
    assert jnp.allclose(qa, qa_m, atol=5e-3, rtol=5e-3)

    # Loose check vs. the pure-f32 module semantics (bf16 weights introduce
    # ~1e-2-relative noise after LayerNorm amplification).
    sent_f, qa_f = _reference_forward_f32(input_ids, attention_mask, raw)
    assert jnp.allclose(sent, sent_f, atol=5e-2, rtol=5e-2)
    assert jnp.allclose(qa, qa_f, atol=5e-2, rtol=5e-2)

    print("KERNEL_OK")
</pallas_src>

<mosaic_0001>
module attributes {stable_mosaic.version = 11 : i64} {
  func.func @finance_head_kernel(%arg0: i32, %arg1: memref<8x16x768xf32, #tpu.memory_space<vmem>>, %arg2: memref<8x16x1xf32, #tpu.memory_space<vmem>>, %arg3: memref<768x768xbf16, #tpu.memory_space<vmem>>, %arg4: memref<3x768xf32, #tpu.memory_space<vmem>>, %arg5: memref<768x384xbf16, #tpu.memory_space<vmem>>, %arg6: memref<384x128xbf16, #tpu.memory_space<vmem>>, %arg7: memref<1x512xf32, #tpu.memory_space<vmem>>, %arg8: memref<8x128xf32, #tpu.memory_space<vmem>>) attributes {dimension_semantics = [#tpu.dimension_semantics<parallel>], iteration_bounds = array<i64: 1>, scalar_prefetch = 0 : i64, scratch_operands = 0 : i64, tpu.core_type = #tpu.core_type<tc>, window_params = [{transform_indices = @transform_0, window_bounds = array<i64: 8, 16, 768>}, {transform_indices = @transform_1, window_bounds = array<i64: 8, 16, 1>}, {pipeline_mode = #tpu.pipeline_mode<synchronous>, transform_indices = @transform_2, window_bounds = array<i64: 768, 768>}, {pipeline_mode = #tpu.pipeline_mode<synchronous>, transform_indices = @transform_3, window_bounds = array<i64: 3, 768>}, {pipeline_mode = #tpu.pipeline_mode<synchronous>, transform_indices = @transform_4, window_bounds = array<i64: 768, 384>}, {pipeline_mode = #tpu.pipeline_mode<synchronous>, transform_indices = @transform_5, window_bounds = array<i64: 384, 128>}, {pipeline_mode = #tpu.pipeline_mode<synchronous>, transform_indices = @transform_6, window_bounds = array<i64: 1, 512>}, {transform_indices = @transform_7, window_bounds = array<i64: 8, 128>}]} {
    %c0 = arith.constant 0 : index
    %c0_0 = arith.constant 0 : index
    %c0_1 = arith.constant 0 : index
    %0 = vector.load %arg2[%c0, %c0_0, %c0_1] : memref<8x16x1xf32, #tpu.memory_space<vmem>>, vector<8x16x1xf32>
    %cst = arith.constant dense<0.000000e+00> : vector<8x1xf32>
    %1 = vector.multi_reduction <add>, %0, %cst [1] : vector<8x16x1xf32> to vector<8x1xf32>
    %cst_2 = arith.constant 1.000000e+00 : f32
    %2 = vector.broadcast %cst_2 : f32 to vector<8x1xf32>
    %3 = arith.maximumf %1, %2 : vector<8x1xf32>
    %c0_3 = arith.constant 0 : index
    %c0_4 = arith.constant 0 : index
    %c0_5 = arith.constant 0 : index
    %4 = vector.load %arg1[%c0_3, %c0_4, %c0_5] : memref<8x16x768xf32, #tpu.memory_space<vmem>>, vector<8x16x768xf32>
    %5 = vector.broadcast %0 : vector<8x16x1xf32> to vector<8x16x768xf32>
    %6 = arith.mulf %4, %5 : vector<8x16x768xf32>
    %cst_6 = arith.constant dense<0.000000e+00> : vector<8x768xf32>
    %7 = vector.multi_reduction <add>, %6, %cst_6 [1] : vector<8x16x768xf32> to vector<8x768xf32>
    %8 = vector.broadcast %3 : vector<8x1xf32> to vector<8x768xf32>
    %9 = arith.divf %7, %8 : vector<8x768xf32>
    %10 = arith.truncf %9 : vector<8x768xf32> to vector<8x768xbf16>
    %c0_7 = arith.constant 0 : index
    %c0_8 = arith.constant 0 : index
    %11 = vector.load %arg3[%c0_7, %c0_8] : memref<768x768xbf16, #tpu.memory_space<vmem>>, vector<768x768xbf16>
    %cst_9 = arith.constant dense<0.000000e+00> : vector<8x768xf32>
    %12 = tpu.matmul %10, %11, %cst_9 {dimension_numbers = #tpu.dot_dimension_numbers<[1], [0], [0], [1], [0, 0, 1, 1], [], []>} : vector<8x768xbf16>, vector<768x768xbf16>, vector<8x768xf32> -> vector<8x768xf32>
    %c0_10 = arith.constant 0 : index
    %c0_11 = arith.constant 0 : index
    %13 = vector.load %arg4[%c0_10, %c0_11] : memref<3x768xf32, #tpu.memory_space<vmem>>, vector<1x768xf32>
    %14 = vector.broadcast %13 : vector<1x768xf32> to vector<8x768xf32>
    %15 = arith.addf %12, %14 : vector<8x768xf32>
    %16 = math.tanh %15 : vector<8x768xf32>
    %cst_12 = arith.constant dense<0.000000e+00> : vector<8xf32>
    %17 = vector.multi_reduction <add>, %16, %cst_12 [1] : vector<8x768xf32> to vector<8xf32>
    %18 = vector.shape_cast %17 : vector<8xf32> to vector<8x1xf32>
    %cst_13 = arith.constant 7.680000e+02 : f32
    %19 = vector.broadcast %cst_13 : f32 to vector<8x1xf32>
    %20 = arith.divf %18, %19 : vector<8x1xf32>
    %21 = vector.broadcast %20 : vector<8x1xf32> to vector<8x768xf32>
    %22 = arith.subf %16, %21 : vector<8x768xf32>
    %23 = arith.mulf %22, %22 : vector<8x768xf32>
    %cst_14 = arith.constant dense<0.000000e+00> : vector<8xf32>
    %24 = vector.multi_reduction <add>, %23, %cst_14 [1] : vector<8x768xf32> to vector<8xf32>
    %25 = vector.shape_cast %24 : vector<8xf32> to vector<8x1xf32>
    %cst_15 = arith.constant 7.680000e+02 : f32
    %26 = vector.broadcast %cst_15 : f32 to vector<8x1xf32>
    %27 = arith.divf %25, %26 : vector<8x1xf32>
    %28 = vector.broadcast %20 : vector<8x1xf32> to vector<8x768xf32>
    %29 = arith.subf %16, %28 : vector<8x768xf32>
    %cst_16 = arith.constant 9.99999974E-6 : f32
    %30 = vector.broadcast %cst_16 : f32 to vector<8x1xf32>
    %31 = arith.addf %27, %30 : vector<8x1xf32>
    %32 = math.rsqrt %31 : vector<8x1xf32>
    %33 = vector.broadcast %32 : vector<8x1xf32> to vector<8x768xf32>
    %34 = arith.mulf %29, %33 : vector<8x768xf32>
    %c1 = arith.constant 1 : index
    %c0_17 = arith.constant 0 : index
    %35 = vector.load %arg4[%c1, %c0_17] : memref<3x768xf32, #tpu.memory_space<vmem>>, vector<1x768xf32>
    %36 = vector.broadcast %35 : vector<1x768xf32> to vector<8x768xf32>
    %37 = arith.mulf %34, %36 : vector<8x768xf32>
    %c2 = arith.constant 2 : index
    %c0_18 = arith.constant 0 : index
    %38 = vector.load %arg4[%c2, %c0_18] : memref<3x768xf32, #tpu.memory_space<vmem>>, vector<1x768xf32>
    %39 = vector.broadcast %38 : vector<1x768xf32> to vector<8x768xf32>
    %40 = arith.addf %37, %39 : vector<8x768xf32>
    %41 = arith.truncf %40 : vector<8x768xf32> to vector<8x768xbf16>
    %c0_19 = arith.constant 0 : index
    %c0_20 = arith.constant 0 : index
    %42 = vector.load %arg5[%c0_19, %c0_20] : memref<768x384xbf16, #tpu.memory_space<vmem>>, vector<768x384xbf16>
    %cst_21 = arith.constant dense<0.000000e+00> : vector<8x384xf32>
    %43 = tpu.matmul %41, %42, %cst_21 {dimension_numbers = #tpu.dot_dimension_numbers<[1], [0], [0], [1], [0, 0, 1, 1], [], []>} : vector<8x768xbf16>, vector<768x384xbf16>, vector<8x384xf32> -> vector<8x384xf32>
    %c0_22 = arith.constant 0 : index
    %c0_23 = arith.constant 0 : index
    %44 = vector.load %arg7[%c0_22, %c0_23] : memref<1x512xf32, #tpu.memory_space<vmem>>, vector<1x384xf32>
    %45 = vector.broadcast %44 : vector<1x384xf32> to vector<8x384xf32>
    %46 = arith.addf %43, %45 : vector<8x384xf32>
    %cst_24 = arith.constant 0.000000e+00 : f32
    %47 = vector.broadcast %cst_24 : f32 to vector<8x384xf32>
    %48 = arith.maximumf %46, %47 : vector<8x384xf32>
    %49 = arith.truncf %48 : vector<8x384xf32> to vector<8x384xbf16>
    %c0_25 = arith.constant 0 : index
    %c0_26 = arith.constant 0 : index
    %50 = vector.load %arg6[%c0_25, %c0_26] : memref<384x128xbf16, #tpu.memory_space<vmem>>, vector<384x128xbf16>
    %cst_27 = arith.constant dense<0.000000e+00> : vector<8x128xf32>
    %51 = tpu.matmul %49, %50, %cst_27 {dimension_numbers = #tpu.dot_dimension_numbers<[1], [0], [0], [1], [0, 0, 1, 1], [], []>} : vector<8x384xbf16>, vector<384x128xbf16>, vector<8x128xf32> -> vector<8x128xf32>
    %c0_28 = arith.constant 0 : index
    %c384 = arith.constant 384 : index
    %52 = vector.load %arg7[%c0_28, %c384] : memref<1x512xf32, #tpu.memory_space<vmem>>, vector<1x128xf32>
    %53 = vector.broadcast %52 : vector<1x128xf32> to vector<8x128xf32>
    %54 = arith.addf %51, %53 : vector<8x128xf32>
    %55 = tpu.iota {dimensions = array<i32: 1>} : vector<1x128xi32>
    %c2_i32 = arith.constant 2 : i32
    %56 = vector.broadcast %c2_i32 : i32 to vector<1x128xi32>
    %57 = arith.cmpi slt, %55, %56 : vector<1x128xi32>
    %58 = vector.extract_strided_slice %40 {offsets = [0, 0], sizes = [8, 128], strides = [1, 1]} : vector<8x768xf32> to vector<8x128xf32>
    %cst_29 = arith.constant 0.000000e+00 : f32
    %59 = vector.shape_cast %57 : vector<1x128xi1> to vector<1x128xi1>
    %60 = vector.broadcast %59 : vector<1x128xi1> to vector<8x128xi1>
    %61 = vector.broadcast %cst_29 : f32 to vector<8x128xf32>
    %62 = arith.select %60, %58, %61 : vector<8x128xi1>, vector<8x128xf32>
    %63 = arith.addf %54, %62 : vector<8x128xf32>
    %c0_30 = arith.constant 0 : index
    %c0_31 = arith.constant 0 : index
    %64 = vector.load %arg8[%c0_30, %c0_31] : memref<8x128xf32, #tpu.memory_space<vmem>>, vector<8x128xf32>
    tpu.vector_store %arg8[%c0_30, %c0_31], %63 {strides = array<i32>} : memref<8x128xf32, #tpu.memory_space<vmem>>, vector<8x128xf32>,
    return
  }
  func.func @transform_0(%arg0: i32) -> (i32, i32, i32) {
    %c0_i32 = arith.constant 0 : i32
    %c0_i32_0 = arith.constant 0 : i32
    %c0_i32_1 = arith.constant 0 : i32
    return %arg0, %c0_i32, %c0_i32_0 : i32, i32, i32
  }
  func.func @transform_1(%arg0: i32) -> (i32, i32, i32) {
    %c0_i32 = arith.constant 0 : i32
    %c0_i32_0 = arith.constant 0 : i32
    %c0_i32_1 = arith.constant 0 : i32
    return %arg0, %c0_i32, %c0_i32_0 : i32, i32, i32
  }
  func.func @transform_2(%arg0: i32) -> (i32, i32) {
    %c0_i32 = arith.constant 0 : i32
    %c0_i32_0 = arith.constant 0 : i32
    %c0_i32_1 = arith.constant 0 : i32
    return %c0_i32, %c0_i32_0 : i32, i32
  }
  func.func @transform_3(%arg0: i32) -> (i32, i32) {
    %c0_i32 = arith.constant 0 : i32
    %c0_i32_0 = arith.constant 0 : i32
    %c0_i32_1 = arith.constant 0 : i32
    return %c0_i32, %c0_i32_0 : i32, i32
  }
  func.func @transform_4(%arg0: i32) -> (i32, i32) {
    %c0_i32 = arith.constant 0 : i32
    %c0_i32_0 = arith.constant 0 : i32
    %c0_i32_1 = arith.constant 0 : i32
    return %c0_i32, %c0_i32_0 : i32, i32
  }
  func.func @transform_5(%arg0: i32) -> (i32, i32) {
    %c0_i32 = arith.constant 0 : i32
    %c0_i32_0 = arith.constant 0 : i32
    %c0_i32_1 = arith.constant 0 : i32
    return %c0_i32, %c0_i32_0 : i32, i32
  }
  func.func @transform_6(%arg0: i32) -> (i32, i32) {
    %c0_i32 = arith.constant 0 : i32
    %c0_i32_0 = arith.constant 0 : i32
    %c0_i32_1 = arith.constant 0 : i32
    return %c0_i32, %c0_i32_0 : i32, i32
  }
  func.func @transform_7(%arg0: i32) -> (i32, i32) {
    %c0_i32 = arith.constant 0 : i32
    %c0_i32_0 = arith.constant 0 : i32
    return %arg0, %c0_i32 : i32, i32
  }
}

</mosaic_0001>

<bundles_post_ra>
// kernel: finance_llm_forward.1
= control target key start
LH: loop header
LB: loop body
LE: loop exit
PB: predicated region body
PF: predicated region fallthrough
CT: control target
= control target key end

     0   :  { %vm43_vm0 = vcmask 7168   ;;  %v6105_v0 = vmov 0   ;;  %vm1292_vm1 = vcmask 1041409   ;;  %vm1294_vm2 = vcmask 1042434   ;;  %s8431_s1 = inlined_call_operand.vmem [shape: f32[8,16,1], index: 1, kind: input, shape index: {}]   ;;  %s8432_s2 = inlined_call_operand.vmem [shape: bf16[768,768], index: 2, kind: input, shape index: {}]   ;;  %s8433_s0 = inlined_call_operand.vmem [shape: f32[8,16,768], index: 0, kind: input, shape index: {}]   ;;  %s8434_s3 = inlined_call_operand.vmem [shape: f32[3,768], index: 3, kind: input, shape index: {}]   ;;  %s8435_s4 = inlined_call_operand.vmem [shape: bf16[768,384], index: 4, kind: input, shape index: {}]   ;;  %s8436_s5 = inlined_call_operand.vmem [shape: bf16[384,128], index: 5, kind: input, shape index: {}]   ;;  %s8437_s6 = inlined_call_operand.vmem [shape: f32[1,512], index: 6, kind: input, shape index: {}]   ;;  %s8438_s7 = inlined_call_operand.vmem [shape: f32[8,128], index: 7, kind: output, shape index: {}]  }
   0x1   :  { %5426 = vset.pattern.permute.xlu1 %v6105_v0  ;;  %5425 = vset.pattern.permute.xlu0 %v6105_v0  ;;  %v29_v1 = vld [vmem:[%s8431_s1 + $0x10] sm:$0xff]  ;;  %v27_v2 = vld [vmem:[%s8431_s1] sm:$0xff]  ;;  %v30_v3 = vld [vmem:[%s8431_s1 + $0x18] sm:$0xff]  ;;  %vm1296_vm3 = vcmask 1043459   ;;  %vm1298_vm4 = vcmask 1044484   ;;  %vm1300_vm5 = vcmask 1045509  }
   0x2   :  { %232 = vperm.xlu1 %5426, %v29_v1   ;;  %v53_v4 = vsel %vm43_vm0, %v29_v1, 0.0  ;;  %222 = vperm.xlu0 %5425, %v27_v2   ;;  %v44_v5 = vsel %vm43_vm0, %v27_v2, 0.0  ;;  %v54_v6 = vsel %vm43_vm0, %v30_v3, 0.0  ;;  %v28_v7 = vld [vmem:[%s8431_s1 + $0x8] sm:$0xff]  ;;  %v31_v9 = vld [vmem:[%s8431_s1 + $0x20] sm:$0xff]  ;;  %v34_v14 = vld [vmem:[%s8431_s1 + $0x38] sm:$0xff] }
   0x3   :  { %v32_v8 = vld [vmem:[%s8431_s1 + $0x28] sm:$0xff]  ;;  %v55_v10 = vadd.f32 %v54_v6, %v53_v4  ;;  %v45_v11 = vsel %vm43_vm0, %v28_v7, 0.0  ;;  %v62_v13 = vsel %vm43_vm0, %v31_v9, 0.0  ;;  %v33_v15 = vld [vmem:[%s8431_s1 + $0x30] sm:$0xff]  ;;  %v72_v18 = vsel %vm43_vm0, %v34_v14, 0.0  ;;  %v35_v23 = vld [vmem:[%s8431_s1 + $0x40] sm:$0xff] }
   0x4   :  { %v63_v12 = vsel %vm43_vm0, %v32_v8, 0.0  ;;  %v46_v16 = vadd.f32 %v45_v11, %v44_v5  ;;  %v71_v19 = vsel %vm43_vm0, %v33_v15, 0.0  ;;  %v36_v22 = vld [vmem:[%s8431_s1 + $0x48] sm:$0xff]  ;;  %v80_v26 = vsel %vm43_vm0, %v35_v23, 0.0  ;;  %v38_v27 = vld [vmem:[%s8431_s1 + $0x58] sm:$0xff]  ;;  %v37_v28 = vld [vmem:[%s8431_s1 + $0x50] sm:$0xff] }
   0x5   :  { %v64_v17 = vadd.f32 %v63_v12, %v62_v13  ;;  %v56_v20 = vrot.slane %v55_v10, 4  ;;  %v73_v21 = vadd.f32 %v72_v18, %v71_v19  ;;  %v81_v25 = vsel %vm43_vm0, %v36_v22, 0.0  ;;  %v6199_v35 = vld [vmem:[%s8431_s1 + $0x68] sm:$0xff]  ;;  %v6204_v36 = vld [vmem:[%s8431_s1 + $0x78] sm:$0xff]  ;;  %v6209_v37 = vld [vmem:[%s8431_s1 + $0x70] sm:$0xff] }
   0x6   :  { %237 = vperm.xlu1 %5426, %v30_v3   ;;  %227 = vperm.xlu0 %5425, %v28_v7   ;;  %v47_v24 = vrot.slane %v46_v16, 4  ;;  %v90_v30 = vsel %vm43_vm0, %v38_v27, 0.0  ;;  %v89_v31 = vsel %vm43_vm0, %v37_v28, 0.0  ;;  %v82_v38 = vadd.f32 %v81_v25, %v80_v26  ;;  %v39_v40 = vld [vmem:[%s8431_s1 + $0x60] sm:$0xff]  ;;  %v5433_v3 = vld [vmem:[%s8432_s2 + $0x34] ss:$24 sps:$4 sm:$0xff]  }
   0x7   :  { %v57_v29 = vadd.f32 %v56_v20, %v55_v10  ;;  %v65_v33 = vrot.slane %v64_v17, 4  ;;  %v74_v34 = vrot.slane %v73_v21, 4  ;;  %v99_v39 = vsel %vm43_vm0, %v6199_v35, 0.0  ;;  %v5427_v47 = vld [vmem:[%s8432_s2 + $0x4] ss:$24 sps:$4 sm:$0xff]  }
   0x8   :  { %v48_v32 = vadd.f32 %v47_v24, %v46_v16  ;;  %v91_v43 = vadd.f32 %v90_v30, %v89_v31  ;;  %v98_v44 = vsel %vm43_vm0, %v39_v40, 0.0  ;;  %v108_v45 = vsel %vm43_vm0, %v6204_v36, 0.0  ;;  %v5429_v50 = vld [vmem:[%s8432_s2 + $0xc] ss:$24 sps:$4 sm:$0xff]   ;;  %v5431_v51 = vld [vmem:[%s8432_s2] ss:$24 sps:$4 sm:$0xff]   ;;  %2793 = vmatprep.subr.bf16.mxu0 %v5427_v47 }
   0x9   :  { %v58_v41 = vrot.slane %v57_v29, 2  ;;  %v107_v46 = vsel %vm43_vm0, %v6209_v37, 0.0  ;;  %v66_v48 = vadd.f32 %v65_v33, %v64_v17  ;;  %v75_v49 = vadd.f32 %v74_v34, %v73_v21  ;;  %v5432_v54 = vld [vmem:[%s8432_s2 + $0x8] ss:$24 sps:$4 sm:$0xff]   ;;  %2916 = vmatprep.subr.bf16.mxu1 %v5429_v50  ;;  %2794 = vmatpush1.bf16.msra.mxu0 %v5431_v51  ;;  %v5435_v4 = vld [vmem:[%s8432_s2 + $0x3c] ss:$24 sps:$4 sm:$0xff]  }
   0xa   :  { %v49_v42 = vrot.slane %v48_v32, 2  ;;  %247 = vperm.xlu1 %5426, %v32_v8   ;;  %242 = vperm.xlu0 %5425, %v31_v9   ;;  %v83_v52 = vrot.slane %v82_v38, 4  ;;  %v100_v53 = vadd.f32 %v99_v39, %v98_v44  ;;  %v92_v55 = vrot.slane %v91_v43, 4  ;;  %v5437_v7 = vld [vmem:[%s8432_s2 + $0x30] ss:$24 sps:$4 sm:$0xff]  }
   0xb   :  { %v59_v56 = vadd.f32 %v58_v41, %v57_v29  ;;  %v109_v58 = vadd.f32 %v108_v45, %v107_v46  ;;  %v67_v59 = vrot.slane %v66_v48, 2  ;;  %v76_v60 = vrot.slane %v75_v49, 2  ;;  %2917 = vmatpush1.bf16.msra.mxu1 %v5432_v54  ;;  %v5438_v8 = vld [vmem:[%s8432_s2 + $0x38] ss:$24 sps:$4 sm:$0xff]   ;;  %2795 = vmatprep.subr.bf16.mxu0 %v5433_v3  ;;  %v5441_v33 = vld [vmem:[%s8432_s2 + $0x6c] ss:$24 sps:$4 sm:$0xff]  }
   0xc   :  { %v50_v57 = vadd.f32 %v49_v42, %v48_v32  ;;  %v84_v61 = vadd.f32 %v83_v52, %v82_v38  ;;  %v101_v62 = vrot.slane %v100_v53, 4  ;;  %v93_v63 = vadd.f32 %v92_v55, %v91_v43  ;;  %2918 = vmatprep.subr.bf16.mxu1 %v5435_v4  ;;  %v5439_v32 = vld [vmem:[%s8432_s2 + $0x64] ss:$24 sps:$4 sm:$0xff]   ;;  %v5443_v39 = vld [vmem:[%s8432_s2 + $0x60] ss:$24 sps:$4 sm:$0xff]  }
   0xd   :  { %v60_v0 = vrot.slane %v59_v56, 1  ;;  %v110_v2 = vrot.slane %v109_v58, 4  ;;  %v77_v5 = vadd.f32 %v76_v60, %v75_v49  ;;  %v68_v6 = vadd.f32 %v67_v59, %v66_v48  ;;  %2796 = vmatpush1.bf16.msra.mxu0 %v5437_v7  ;;  %v5445_v45 = vld [vmem:[%s8432_s2 + $0x94] ss:$24 sps:$4 sm:$0xff]   ;;  %v5449_v47 = vld [vmem:[%s8432_s2 + $0x90] ss:$24 sps:$4 sm:$0xff]  }
   0xe   :  { %257 = vperm.xlu1 %5426, %v34_v14   ;;  %252 = vperm.xlu0 %5425, %v33_v15   ;;  %v51_v1 = vrot.slane %v50_v57, 1  ;;  %v85_v9 = vrot.slane %v84_v61, 2  ;;  %v102_v10 = vadd.f32 %v101_v62, %v100_v53  ;;  %v94_v11 = vrot.slane %v93_v63, 2  ;;  %v5447_v46 = vld [vmem:[%s8432_s2 + $0x9c] ss:$24 sps:$4 sm:$0xff]  }
   0xf   :  { %v61_v12 = vadd.f32 %v60_v0, %v59_v56  ;;  %v111_v14 = vadd.f32 %v110_v2, %v109_v58  ;;  %2919 = vmatpush1.bf16.msra.mxu1 %v5438_v8  ;;  %v78_v15 = vrot.slane %v77_v5, 1  ;;  %v69_v16 = vrot.slane %v68_v6, 1  ;;  %2797 = vmatprep.subr.bf16.mxu0 %v5439_v32  ;;  %v5450_v48 = vld [vmem:[%s8432_s2 + $0x98] ss:$24 sps:$4 sm:$0xff]   ;;  %v5451_v49 = vld [vmem:[%s8432_s2 + $0xc4] ss:$24 sps:$4 sm:$0xff]  }
  0x10   :  { %v52_v13 = vadd.f32 %v51_v1, %v50_v57  ;;  %v103_v17 = vrot.slane %v102_v10, 2  ;;  %v86_v18 = vadd.f32 %v85_v9, %v84_v61  ;;  %2920 = vmatprep.subr.bf16.mxu1 %v5441_v33  ;;  %v5453_v50 = vld [vmem:[%s8432_s2 + $0xcc] ss:$24 sps:$4 sm:$0xff]   ;;  %v5455_v51 = vld [vmem:[%s8432_s2 + $0xc0] ss:$24 sps:$4 sm:$0xff]   ;;  %vm1302_vm6 = vcmask 1046534  }
  0x11   :  { %v117_v19 = vmax.f32 %v61_v12, 1.0  ;;  %v112_v21 = vrot.slane %v111_v14, 2  ;;  %v70_v24 = vadd.f32 %v69_v16, %v68_v6  ;;  %2798 = vmatpush1.bf16.msra.mxu0 %v5443_v39  ;;  %v5456_v52 = vld [vmem:[%s8432_s2 + $0xc8] ss:$24 sps:$4 sm:$0xff]   ;;  %v5457_v53 = vld [vmem:[%s8432_s2 + $0xf4] ss:$24 sps:$4 sm:$0xff]  }
  0x12   :  { %267 = vperm.xlu1 %5426, %v36_v22   ;;  %262 = vperm.xlu0 %5425, %v35_v23   ;;  %v116_v20 = vmax.f32 %v52_v13, 1.0  ;;  %v95_v22 = vadd.f32 %v94_v11, %v93_v63  ;;  %v79_v23 = vadd.f32 %v78_v15, %v77_v5  ;;  %v104_v25 = vadd.f32 %v103_v17, %v102_v10  ;;  %v5459_v54 = vld [vmem:[%s8432_s2 + $0xfc] ss:$24 sps:$4 sm:$0xff]   ;;  %v5461_v55 = vld [vmem:[%s8432_s2 + $0xf0] ss:$24 sps:$4 sm:$0xff]  }
  0x13   :  { %v118_v30 = vmax.f32 %v70_v24, 1.0  ;;  %2799 = vmatprep.subr.bf16.mxu0 %v5445_v45  ;;  %v5462_v56 = vld [vmem:[%s8432_s2 + $0xf8] ss:$24 sps:$4 sm:$0xff]   ;;  %v5463_v57 = vld [vmem:[%s8432_s2 + $0x124] ss:$24 sps:$4 sm:$0xff]   ;;  %vm1304_vm7 = vcmask 1047559  }
  0x14   :  { %v96_v26 = vrot.slane %v95_v22, 1  ;;  %v119_v29 = vmax.f32 %v79_v23, 1.0  ;;  %v105_v31 = vrot.slane %v104_v25, 1  ;;  %v5465_v58 = vld [vmem:[%s8432_s2 + $0x12c] ss:$24 sps:$4 sm:$0xff]   ;;  %v138_v39 = vld [vmem:[%s8433_s0 + $0x70] sm:$0xff] }
  0x15   :  { %2800 = vmatpush1.bf16.msra.mxu0 %v5449_v47  ;;  %v5467_v59 = vld [vmem:[%s8432_s2 + $0x120] ss:$24 sps:$4 sm:$0xff]   ;;  %v5469_v61 = vld [vmem:[%s8432_s2 + $0x154] ss:$24 sps:$4 sm:$0xff]   ;;  %v5473_v63 = vld [vmem:[%s8432_s2 + $0x150] ss:$24 sps:$4 sm:$0xff]  }
  0x16   :  { %277 = vperm.xlu1 %5426, %v38_v27   ;;  %272 = vperm.xlu0 %5425, %v37_v28   ;;  %v87_v27 = vrot.slane %v86_v18, 1  ;;  %v113_v28 = vadd.f32 %v112_v21, %v111_v14  ;;  %v97_v34 = vadd.f32 %v96_v26, %v95_v22  ;;  %v106_v42 = vadd.f32 %v105_v31, %v104_v25  ;;  %v5468_v60 = vld [vmem:[%s8432_s2 + $0x128] ss:$24 sps:$4 sm:$0xff]   ;;  %v5471_v62 = vld [vmem:[%s8432_s2 + $0x15c] ss:$24 sps:$4 sm:$0xff]  }
  0x17   :  { %2801 = vmatprep.subr.bf16.mxu0 %v5451_v49  ;;  %v5474_v0 = vld [vmem:[%s8432_s2 + $0x158] ss:$24 sps:$4 sm:$0xff]   ;;  %v5475_v1 = vld [vmem:[%s8432_s2 + $0x184] ss:$24 sps:$4 sm:$0xff]   ;;  %v5480_v4 = vld [vmem:[%s8432_s2 + $0x188] ss:$24 sps:$4 sm:$0xff]  }
  0x18   :  { %v114_v38 = vrot.slane %v113_v28, 1  ;;  %v122_v44 = vmax.f32 %v106_v42, 1.0  ;;  %v5477_v2 = vld [vmem:[%s8432_s2 + $0x18c] ss:$24 sps:$4 sm:$0xff]   ;;  %v5479_v3 = vld [vmem:[%s8432_s2 + $0x180] ss:$24 sps:$4 sm:$0xff]  }
  0x19   :  { %2802 = vmatpush1.bf16.msra.mxu0 %v5455_v51  ;;  %v5481_v5 = vld [vmem:[%s8432_s2 + $0x1b4] ss:$24 sps:$4 sm:$0xff]   ;;  %v5485_v7 = vld [vmem:[%s8432_s2 + $0x1b0] ss:$24 sps:$4 sm:$0xff]   ;;  %v5487_v9 = vld [vmem:[%s8432_s2 + $0x1e4] ss:$24 sps:$4 sm:$0xff]  }
  0x1a   :  { %287 = vperm.xlu1 %5426, %v6199_v35   ;;  %282 = vperm.xlu0 %5425, %v39_v40   ;;  %v88_v35 = vadd.f32 %v87_v27, %v86_v18  ;;  %v5444_v40 = vld [vmem:[%s8432_s2 + $0x68] ss:$24 sps:$4 sm:$0xff]   ;;  %v5483_v6 = vld [vmem:[%s8432_s2 + $0x1bc] ss:$24 sps:$4 sm:$0xff]   ;;  %v5486_v8 = vld [vmem:[%s8432_s2 + $0x1b8] ss:$24 sps:$4 sm:$0xff]  }
  0x1b   :  { %2921 = vmatpush1.bf16.msra.mxu1 %v5444_v40  ;;  %2803 = vmatprep.subr.bf16.mxu0 %v5457_v53  ;;  %v5489_v10 = vld [vmem:[%s8432_s2 + $0x1ec] ss:$24 sps:$4 sm:$0xff]   ;;  %v5491_v11 = vld [vmem:[%s8432_s2 + $0x1e0] ss:$24 sps:$4 sm:$0xff]   ;;  %v5495_v14 = vld [vmem:[%s8432_s2 + $0x21c] ss:$24 sps:$4 sm:$0xff]  }
  0x1c   :  { %v120_v41 = vmax.f32 %v88_v35, 1.0  ;;  %2922 = vmatprep.subr.bf16.mxu1 %v5447_v46  ;;  %v5492_v12 = vld [vmem:[%s8432_s2 + $0x1e8] ss:$24 sps:$4 sm:$0xff]   ;;  %v5493_v13 = vld [vmem:[%s8432_s2 + $0x214] ss:$24 sps:$4 sm:$0xff]   ;;  %v139_v40 = vld [vmem:[%s8433_s0 + $0x78] sm:$0xff] }
  0x1d   :  { %2804 = vmatpush1.bf16.msra.mxu0 %v5461_v55  ;;  %v5497_v15 = vld [vmem:[%s8432_s2 + $0x210] ss:$24 sps:$4 sm:$0xff]   ;;  %v5499_v17 = vld [vmem:[%s8432_s2 + $0x244] ss:$24 sps:$4 sm:$0xff]   ;;  %v5505_v21 = vld [vmem:[%s8432_s2 + $0x274] ss:$24 sps:$4 sm:$0xff]  }
  0x1e   :  { %739 = vperm.xlu1 %5426, %v117_v19   ;;  %734 = vperm.xlu0 %5425, %v116_v20   ;;  %v5498_v16 = vld [vmem:[%s8432_s2 + $0x218] ss:$24 sps:$4 sm:$0xff]   ;;  %v5501_v18 = vld [vmem:[%s8432_s2 + $0x24c] ss:$24 sps:$4 sm:$0xff]   ;;  %v5504_v20 = vld [vmem:[%s8432_s2 + $0x248] ss:$24 sps:$4 sm:$0xff]  }
  0x1f   :  { %2923 = vmatpush1.bf16.msra.mxu1 %v5450_v48  ;;  %2805 = vmatprep.subr.bf16.mxu0 %v5463_v57  ;;  %v5503_v19 = vld [vmem:[%s8432_s2 + $0x240] ss:$24 sps:$4 sm:$0xff]   ;;  %v5507_v22 = vld [vmem:[%s8432_s2 + $0x27c] ss:$24 sps:$4 sm:$0xff]   ;;  %v5509_v23 = vld [vmem:[%s8432_s2 + $0x270] ss:$24 sps:$4 sm:$0xff]  }
  0x20   :  { %2924 = vmatprep.subr.bf16.mxu1 %v5453_v50  ;;  %v5510_v24 = vld [vmem:[%s8432_s2 + $0x278] ss:$24 sps:$4 sm:$0xff]   ;;  %v5511_v25 = vld [vmem:[%s8432_s2 + $0x2a4] ss:$24 sps:$4 sm:$0xff]   ;;  %v125_v42 = vld [vmem:[%s8433_s0 + $0x8] sm:$0xff]  ;;  %vm6107_vm8 = vmmov 0  }
  0x21   :  { %2806 = vmatpush1.bf16.msra.mxu0 %v5467_v59  ;;  %v5513_v26 = vld [vmem:[%s8432_s2 + $0x2ac] ss:$24 sps:$4 sm:$0xff]   ;;  %v5515_v27 = vld [vmem:[%s8432_s2 + $0x2a0] ss:$24 sps:$4 sm:$0xff]   ;;  %v5521_v31 = vld [vmem:[%s8432_s2 + $0x2d0] ss:$24 sps:$4 sm:$0xff]  }
  0x22   :  { %297 = vperm.xlu1 %5426, %v6204_v36   ;;  %292 = vperm.xlu0 %5425, %v6209_v37   ;;  %v121_v36 = vmax.f32 %v97_v34, 1.0  ;;  %v115_v37 = vadd.f32 %v114_v38, %v113_v28  ;;  %v5516_v28 = vld [vmem:[%s8432_s2 + $0x2a8] ss:$24 sps:$4 sm:$0xff]   ;;  %v5522_v32 = vld [vmem:[%s8432_s2 + $0x2d8] ss:$24 sps:$4 sm:$0xff]  }
  0x23   :  { %2925 = vmatpush1.bf16.msra.mxu1 %v5456_v52  ;;  %2807 = vmatprep.subr.bf16.mxu0 %v5469_v61  ;;  %v5525_v33 = vld [vmem:[%s8432_s2 + $0x304] ss:$24 sps:$4 sm:$0xff]   ;;  %v137_v38 = vld [vmem:[%s8433_s0 + $0x68] sm:$0xff]  ;;  %v142_v47 = vld [vmem:[%s8433_s0 + $0x90] sm:$0xff] }
  0x24   :  { %v123_v43 = vmax.f32 %v115_v37, 1.0  ;;  %2926 = vmatprep.subr.bf16.mxu1 %v5459_v54  ;;  %v5528_v34 = vld [vmem:[%s8432_s2 + $0x30c] ss:$24 sps:$4 sm:$0xff]   ;;  %v143_v48 = vld [vmem:[%s8433_s0 + $0x98] sm:$0xff]  ;;  %v146_v51 = vld [vmem:[%s8433_s0 + $0xb0] sm:$0xff] }
  0x25   :  { %2808 = vmatpush1.bf16.msra.mxu0 %v5473_v63  ;;  %v136_v35 = vld [vmem:[%s8433_s0 + $0x60] sm:$0xff]  ;;  %v145_v50 = vld [vmem:[%s8433_s0 + $0xa8] sm:$0xff]  ;;  %v147_v52 = vld [vmem:[%s8433_s0 + $0xb8] sm:$0xff] }
  0x26   :  { %749 = vperm.xlu1 %5426, %v119_v29   ;;  %744 = vperm.xlu0 %5425, %v118_v30   ;;  %v5517_v29 = vld [vmem:[%s8432_s2 + $0x2d4] ss:$24 sps:$4 sm:$0xff]   ;;  %v124_v37 = vld [vmem:[%s8433_s0] sm:$0xff]  ;;  %v131_v54 = vld [vmem:[%s8433_s0 + $0x38] sm:$0xff] }
  0x27   :  { %2927 = vmatpush1.bf16.msra.mxu1 %v5462_v56  ;;  %2809 = vmatprep.subr.bf16.mxu0 %v5475_v1  ;;  %v5519_v30 = vld [vmem:[%s8432_s2 + $0x2dc] ss:$24 sps:$4 sm:$0xff]   ;;  %v144_v49 = vld [vmem:[%s8433_s0 + $0xa0] sm:$0xff] }
  0x28   :  { %2928 = vmatprep.subr.bf16.mxu1 %v5465_v58  ;;  %v130_v53 = vld [vmem:[%s8433_s0 + $0x30] sm:$0xff]  ;;  %v132_v61 = vld [vmem:[%s8433_s0 + $0x40] sm:$0xff] }
  0x29   :  { %2810 = vmatpush1.bf16.msra.mxu0 %v5479_v3 }
  0x2a   :  { %759 = vperm.xlu1 %5426, %v121_v36   ;;  %754 = vperm.xlu0 %5425, %v120_v41   ;;  %v140_v36 = vld [vmem:[%s8433_s0 + $0x80] sm:$0xff]  ;;  %v141_v41 = vld [vmem:[%s8433_s0 + $0x88] sm:$0xff] }
  0x2b   :  { %2929 = vmatpush1.bf16.msra.mxu1 %v5468_v60  ;;  %2811 = vmatprep.subr.bf16.mxu0 %v5481_v5 }
  0x2c   :  { %2930 = vmatprep.subr.bf16.mxu1 %v5471_v62  ;;  %v133_v62 = vld [vmem:[%s8433_s0 + $0x48] sm:$0xff] }
  0x2d   :  { %2812 = vmatpush1.bf16.msra.mxu0 %v5485_v7 }
  0x2e   :  { %769 = vperm.xlu1 %5426, %v123_v43   ;;  %764 = vperm.xlu0 %5425, %v122_v44   ;;  %v126_v43 = vld [vmem:[%s8433_s0 + $0x10] sm:$0xff]  ;;  %v127_v44 = vld [vmem:[%s8433_s0 + $0x18] sm:$0xff] }
  0x2f   :  { %2931 = vmatpush1.bf16.msra.mxu1 %v5474_v0  ;;  %2813 = vmatprep.subr.bf16.mxu0 %v5487_v9  ;;  %v134_v9 = vld [vmem:[%s8433_s0 + $0x50] sm:$0xff] }
  0x30   :  { %2932 = vmatprep.subr.bf16.mxu1 %v5477_v2 }
  0x31   :  { %2814 = vmatpush1.bf16.msra.mxu0 %v5491_v11 }
  0x32   :  { %2815 = vmatprep.subr.bf16.mxu0 %v5493_v13 }
  0x33   :  { %2933 = vmatpush1.bf16.msra.mxu1 %v5480_v4 }
  0x34   :  { %2934 = vmatprep.subr.bf16.mxu1 %v5483_v6 }
  0x35   :  { %2816 = vmatpush1.bf16.msra.mxu0 %v5497_v15 }
  0x36   :  { %2817 = vmatprep.subr.bf16.mxu0 %v5499_v17 }
  0x37   :  { %2935 = vmatpush1.bf16.msra.mxu1 %v5486_v8 }
  0x38   :  { %2936 = vmatprep.subr.bf16.mxu1 %v5489_v10  ;;  %v135_v10 = vld [vmem:[%s8433_s0 + $0x58] sm:$0xff] }
  0x39   :  { %2818 = vmatpush1.bf16.msra.mxu0 %v5503_v19 }
  0x3a   :  { %2819 = vmatprep.subr.bf16.mxu0 %v5505_v21 }
  0x3b   :  { %2937 = vmatpush1.bf16.msra.mxu1 %v5492_v12 }
  0x3c   :  { %2938 = vmatprep.subr.bf16.mxu1 %v5495_v14 }
  0x3d   :  { %2820 = vmatpush1.bf16.msra.mxu0 %v5509_v23 }
  0x3e   :  { %2821 = vmatprep.subr.bf16.mxu0 %v5511_v25 }
  0x3f   :  { %2939 = vmatpush1.bf16.msra.mxu1 %v5498_v16 }
  0x40   :  { %2940 = vmatprep.subr.bf16.mxu1 %v5501_v18 }
  0x41   :  { %2822 = vmatpush1.bf16.msra.mxu0 %v5515_v27 }
  0x42   :  { %2823 = vmatprep.subr.bf16.mxu0 %v5517_v29 }
  0x43   :  { %2941 = vmatpush1.bf16.msra.mxu1 %v5504_v20 }
  0x44   :  { %2942 = vmatprep.subr.bf16.mxu1 %v5507_v22 }
  0x45   :  { %2824 = vmatpush1.bf16.msra.mxu0 %v5521_v31 }
  0x46   :  { %2834 = vmatprep.subr.bf16.mxu0 %v5525_v33 }
  0x47   :  { %2943 = vmatpush1.bf16.msra.mxu1 %v5510_v24 }
  0x48   :  { %2944 = vmatprep.subr.bf16.mxu1 %v5513_v26 }
  0x4b   :  { %2945 = vmatpush1.bf16.msra.mxu1 %v5516_v28 }
  0x4c   :  { %2946 = vmatprep.subr.bf16.mxu1 %v5519_v30 }
  0x4f   :  { %2947 = vmatpush1.bf16.msra.mxu1 %v5522_v32 }
  0x50   :  { %2957 = vmatprep.subr.bf16.mxu1 %v5528_v34 }
  0x81   :  { %v233_v45 = vpop.permute.xlu1 %232  ;;  %v6452_v46 = vpop.permute.xlu0 %222 }
  0x82   :  { %v312_v55 = vmul.f32 %v233_v45, %v136_v35  ;;  %v313_v56 = vmul.f32 %v233_v45, %v137_v38  ;;  %v314_v57 = vmul.f32 %v233_v45, %v138_v39  ;;  %v315_v58 = vmul.f32 %v233_v45, %v139_v40 }
  0x83   :  { %v316_v59 = vmul.f32 %v233_v45, %v140_v36  ;;  %v317_v60 = vmul.f32 %v233_v45, %v141_v41  ;;  %v300_v63 = vmul.f32 %v6452_v46, %v124_v37  ;;  %v301_v0 = vmul.f32 %v6452_v46, %v125_v42 }
  0x84   :  { %v6487_v1 = vmul.f32 %v6452_v46, %v126_v43  ;;  %v6490_v2 = vmul.f32 %v6452_v46, %v127_v44 }
  0x85   :  { %v238_v3 = vpop.permute.xlu1 %237  ;;  %v228_v4 = vpop.permute.xlu0 %227 }
  0x86   :  { %v318_v5 = vmul.f32 %v238_v3, %v142_v47  ;;  %v319_v6 = vmul.f32 %v238_v3, %v143_v48  ;;  %v320_v7 = vmul.f32 %v238_v3, %v144_v49  ;;  %v321_v8 = vmul.f32 %v238_v3, %v145_v50 }
  0x87   :  { %v322_v11 = vmul.f32 %v238_v3, %v146_v51  ;;  %v323_v12 = vmul.f32 %v238_v3, %v147_v52  ;;  %v306_v13 = vmul.f32 %v228_v4, %v130_v53  ;;  %v307_v14 = vmul.f32 %v228_v4, %v131_v54  ;;  %v128_v52 = vld [vmem:[%s8433_s0 + $0x20] sm:$0xff]  ;;  %v129_v53 = vld [vmem:[%s8433_s0 + $0x28] sm:$0xff] }
  0x88   :  { %v438_v15 = vadd.f32 %v318_v5, %v312_v55  ;;  %v445_v16 = vadd.f32 %v319_v6, %v313_v56  ;;  %v452_v17 = vadd.f32 %v320_v7, %v314_v57  ;;  %v459_v18 = vadd.f32 %v321_v8, %v315_v58  ;;  %v154_v8 = vld [vmem:[%s8433_s0 + $0xf0] sm:$0xff] }
  0x89   :  { %v466_v19 = vadd.f32 %v322_v11, %v316_v59  ;;  %v473_v20 = vadd.f32 %v323_v12, %v317_v60  ;;  %v308_v21 = vmul.f32 %v228_v4, %v132_v61  ;;  %v309_v22 = vmul.f32 %v228_v4, %v133_v62 }
  0x8a   :  { %v439_v23 = vrot.slane %v438_v15, 4  ;;  %v446_v24 = vrot.slane %v445_v16, 4  ;;  %v453_v25 = vrot.slane %v452_v17, 4  ;;  %v460_v26 = vrot.slane %v459_v18, 4 }
  0x8b   :  { %v467_v27 = vrot.slane %v466_v19, 4  ;;  %v474_v28 = vrot.slane %v473_v20, 4  ;;  %v310_v29 = vmul.f32 %v228_v4, %v134_v9  ;;  %v311_v30 = vmul.f32 %v228_v4, %v135_v10  ;;  %v155_v9 = vld [vmem:[%s8433_s0 + $0xf8] sm:$0xff] }
  0x8c   :  { %v440_v31 = vadd.f32 %v439_v23, %v438_v15  ;;  %v447_v32 = vadd.f32 %v446_v24, %v445_v16  ;;  %v454_v33 = vadd.f32 %v453_v25, %v452_v17  ;;  %v461_v34 = vadd.f32 %v460_v26, %v459_v18  ;;  %v159_v23 = vld [vmem:[%s8433_s0 + $0x118] sm:$0xff]  ;;  %v148_v24 = vld [vmem:[%s8433_s0 + $0xc0] sm:$0xff] }
  0x8d   :  { %v468_v35 = vadd.f32 %v467_v27, %v466_v19  ;;  %v475_v38 = vadd.f32 %v474_v28, %v473_v20  ;;  %v396_v39 = vadd.f32 %v306_v13, %v300_v63  ;;  %v403_v40 = vadd.f32 %v307_v14, %v301_v0  ;;  %v157_v14 = vld [vmem:[%s8433_s0 + $0x108] sm:$0xff]  ;;  %v248_v19 = vpop.permute.xlu1 %247  ;;  %v158_v20 = vld [vmem:[%s8433_s0 + $0x110] sm:$0xff] }
  0x8e   :  { %v441_v36 = vrot.slane %v440_v31, 2  ;;  %v448_v41 = vrot.slane %v447_v32, 2  ;;  %v455_v37 = vrot.slane %v454_v33, 2  ;;  %v462_v42 = vrot.slane %v461_v34, 2 }
  0x8f   :  { %v469_v43 = vrot.slane %v468_v35, 2  ;;  %v476_v44 = vrot.slane %v475_v38, 2  ;;  %v397_v45 = vrot.slane %v396_v39, 4  ;;  %v404_v47 = vrot.slane %v403_v40, 4 }
  0x90   :  { %v442_v48 = vadd.f32 %v441_v36, %v440_v31  ;;  %v449_v49 = vadd.f32 %v448_v41, %v447_v32  ;;  %v456_v50 = vadd.f32 %v455_v37, %v454_v33  ;;  %v463_v51 = vadd.f32 %v462_v42, %v461_v34  ;;  %v150_v31 = vld [vmem:[%s8433_s0 + $0xd0] sm:$0xff] }
  0x91   :  { %v470_v54 = vadd.f32 %v469_v43, %v468_v35  ;;  %v477_v55 = vadd.f32 %v476_v44, %v475_v38  ;;  %v398_v56 = vadd.f32 %v397_v45, %v396_v39  ;;  %v405_v57 = vadd.f32 %v404_v47, %v403_v40  ;;  %v151_v38 = vld [vmem:[%s8433_s0 + $0xd8] sm:$0xff]  ;;  %v152_v39 = vld [vmem:[%s8433_s0 + $0xe0] sm:$0xff]  ;;  %v153_v40 = vld [vmem:[%s8433_s0 + $0xe8] sm:$0xff] }
  0x92   :  { %v443_v58 = vrot.slane %v442_v48, 1  ;;  %v450_v59 = vrot.slane %v449_v49, 1  ;;  %v457_v60 = vrot.slane %v456_v50, 1  ;;  %v464_v61 = vrot.slane %v463_v51, 1 }
  0x93   :  { %v471_v62 = vrot.slane %v470_v54, 1  ;;  %v478_v63 = vrot.slane %v477_v55, 1  ;;  %v399_v0 = vrot.slane %v398_v56, 2  ;;  %v406_v3 = vrot.slane %v405_v57, 2 }
  0x94   :  { %v304_v4 = vmul.f32 %v6452_v46, %v128_v52  ;;  %v305_v5 = vmul.f32 %v6452_v46, %v129_v53  ;;  %v6506_v6 = vadd.f32 %v443_v58, %v442_v48  ;;  %v6508_v7 = vadd.f32 %v450_v59, %v449_v49  ;;  %v156_v46 = vld [vmem:[%s8433_s0 + $0x100] sm:$0xff] }
  0x95   :  { %v6516_v10 = vadd.f32 %v457_v60, %v456_v50  ;;  %v6518_v11 = vadd.f32 %v464_v61, %v463_v51  ;;  %v400_v12 = vadd.f32 %v399_v0, %v398_v56  ;;  %v407_v13 = vadd.f32 %v406_v3, %v405_v57 }
  0x96   :  { %v410_v15 = vadd.f32 %v308_v21, %v6487_v1  ;;  %v417_v16 = vadd.f32 %v309_v22, %v6490_v2  ;;  %v424_v17 = vadd.f32 %v310_v29, %v304_v4  ;;  %v431_v18 = vadd.f32 %v311_v30, %v305_v5  ;;  %v243_v29 = vpop.permute.xlu0 %242  ;;  %v149_v30 = vld [vmem:[%s8433_s0 + $0xc8] sm:$0xff] }
  0x97   :  { %v6537_v25 = vadd.f32 %v471_v62, %v470_v54  ;;  %v6539_v1 = vadd.f32 %v478_v63, %v477_v55  ;;  %v401_v2 = vrot.slane %v400_v12, 1  ;;  %v408_v21 = vrot.slane %v407_v13, 1 }
  0x98   :  { %v411_v22 = vrot.slane %v410_v15, 4  ;;  %v418_v26 = vrot.slane %v417_v16, 4  ;;  %v425_v27 = vrot.slane %v424_v17, 4  ;;  %v432_v28 = vrot.slane %v431_v18, 4 }
  0x99   :  { %8441 = vst [vmem:[#allocation2_spill] sm:$0xff] %v6537_v25  ;;  %8442 = vst [vmem:[#allocation3_spill] sm:$0xff] %v6539_v1  ;;  %v330_v32 = vmul.f32 %v248_v19, %v154_v8  ;;  %v331_v33 = vmul.f32 %v248_v19, %v155_v9  ;;  %v332_v34 = vmul.f32 %v248_v19, %v156_v46 }
  0x9a   :  { %v333_v35 = vmul.f32 %v248_v19, %v157_v14  ;;  %v412_v36 = vadd.f32 %v411_v22, %v410_v15  ;;  %v419_v41 = vadd.f32 %v418_v26, %v417_v16  ;;  %v426_v37 = vadd.f32 %v425_v27, %v424_v17 }
  0x9b   :  { %v433_v42 = vadd.f32 %v432_v28, %v431_v18  ;;  %v334_v43 = vmul.f32 %v248_v19, %v158_v20  ;;  %v335_v44 = vmul.f32 %v248_v19, %v159_v23  ;;  %v324_v45 = vmul.f32 %v243_v29, %v148_v24  ;;  %v166_v19 = vld [vmem:[%s8433_s0 + $0x150] sm:$0xff]  ;;  %v167_v20 = vld [vmem:[%s8433_s0 + $0x158] sm:$0xff] }
  0x9c   :  { %v325_v47 = vmul.f32 %v243_v29, %v149_v30  ;;  %v413_v48 = vrot.slane %v412_v36, 2  ;;  %v420_v49 = vrot.slane %v419_v41, 2  ;;  %v427_v50 = vrot.slane %v426_v37, 2  ;;  %v170_v30 = vld [vmem:[%s8433_s0 + $0x170] sm:$0xff] }
  0x9d   :  { %v434_v51 = vrot.slane %v433_v42, 2  ;;  %v326_v52 = vmul.f32 %v243_v29, %v150_v31  ;;  %v327_v53 = vmul.f32 %v243_v29, %v151_v38  ;;  %v328_v54 = vmul.f32 %v243_v29, %v152_v39  ;;  %v160_v38 = vld [vmem:[%s8433_s0 + $0x120] sm:$0xff] }
  0x9e   :  { %v329_v55 = vmul.f32 %v243_v29, %v153_v40  ;;  %v414_v56 = vadd.f32 %v413_v48, %v412_v36  ;;  %v421_v57 = vadd.f32 %v420_v49, %v419_v41  ;;  %v428_v58 = vadd.f32 %v427_v50, %v426_v37  ;;  %v169_v29 = vld [vmem:[%s8433_s0 + $0x168] sm:$0xff] }
  0x9f   :  { %v435_v59 = vadd.f32 %v434_v51, %v433_v42  ;;  %v480_v60 = vadd.f32 %v330_v32, %v324_v45  ;;  %v487_v61 = vadd.f32 %v331_v33, %v325_v47  ;;  %v494_v62 = vadd.f32 %v332_v34, %v326_v52  ;;  %v161_v37 = vld [vmem:[%s8433_s0 + $0x128] sm:$0xff]  ;;  %v253_v47 = vpop.permute.xlu0 %252 }
  0xa0   :  { %v501_v63 = vadd.f32 %v333_v35, %v327_v53  ;;  %v415_v0 = vrot.slane %v414_v56, 1  ;;  %v422_v3 = vrot.slane %v421_v57, 1  ;;  %v429_v4 = vrot.slane %v428_v58, 1  ;;  %v171_v35 = vld [vmem:[%s8433_s0 + $0x178] sm:$0xff] }
  0xa1   :  { %v436_v5 = vrot.slane %v435_v59, 1  ;;  %v481_v8 = vrot.slane %v480_v60, 4  ;;  %v488_v9 = vrot.slane %v487_v61, 4  ;;  %v495_v46 = vrot.slane %v494_v62, 4 }
  0xa2   :  { %v502_v14 = vrot.slane %v501_v63, 4  ;;  %v6556_v15 = vadd.f32 %v401_v2, %v400_v12  ;;  %v6558_v16 = vadd.f32 %v408_v21, %v407_v13  ;;  %v6560_v17 = vadd.f32 %v415_v0, %v414_v56  ;;  %v258_v12 = vpop.permute.xlu1 %257  ;;  %v168_v13 = vld [vmem:[%s8433_s0 + $0x160] sm:$0xff]  ;;  %v162_v56 = vld [vmem:[%s8433_s0 + $0x130] sm:$0xff] }
  0xa3   :  { %v6562_v18 = vadd.f32 %v422_v3, %v421_v57  ;;  %v482_v23 = vadd.f32 %v481_v8, %v480_v60  ;;  %v489_v24 = vadd.f32 %v488_v9, %v487_v61  ;;  %v496_v22 = vadd.f32 %v495_v46, %v494_v62  ;;  %v163_v57 = vld [vmem:[%s8433_s0 + $0x138] sm:$0xff]  ;;  %v165_v61 = vld [vmem:[%s8433_s0 + $0x148] sm:$0xff] }
  0xa4   :  { %v503_v26 = vadd.f32 %v502_v14, %v501_v63  ;;  %v6573_v2 = vadd.f32 %v429_v4, %v428_v58  ;;  %v6575_v21 = vadd.f32 %v436_v5, %v435_v59  ;;  %v508_v27 = vadd.f32 %v334_v43, %v328_v54  ;;  %v164_v58 = vld [vmem:[%s8433_s0 + $0x140] sm:$0xff] }
  0xa5   :  { %v515_v28 = vadd.f32 %v335_v44, %v329_v55  ;;  %v483_v31 = vrot.slane %v482_v23, 2  ;;  %v490_v32 = vrot.slane %v489_v24, 2  ;;  %v497_v33 = vrot.slane %v496_v22, 2 }
  0xa6   :  { %8443 = vst [vmem:[#allocation4_spill] sm:$0xff] %v6573_v2  ;;  %8444 = vst [vmem:[#allocation5_spill] sm:$0xff] %v6575_v21  ;;  %v504_v34 = vrot.slane %v503_v26, 2  ;;  %v509_v39 = vrot.slane %v508_v27, 4  ;;  %v342_v36 = vmul.f32 %v258_v12, %v166_v19  ;;  %v343_v41 = vmul.f32 %v258_v12, %v167_v20 }
  0xa7   :  { %v516_v40 = vrot.slane %v515_v28, 4  ;;  %v484_v42 = vadd.f32 %v483_v31, %v482_v23  ;;  %v491_v43 = vadd.f32 %v490_v32, %v489_v24  ;;  %v498_v44 = vadd.f32 %v497_v33, %v496_v22 }
  0xa8   :  { %v505_v45 = vadd.f32 %v504_v34, %v503_v26  ;;  %v510_v48 = vadd.f32 %v509_v39, %v508_v27  ;;  %v344_v50 = vmul.f32 %v258_v12, %v168_v13  ;;  %v345_v51 = vmul.f32 %v258_v12, %v169_v29 }
  0xa9   :  { %v517_v49 = vadd.f32 %v516_v40, %v515_v28  ;;  %v485_v52 = vrot.slane %v484_v42, 1  ;;  %v492_v53 = vrot.slane %v491_v43, 1  ;;  %v346_v54 = vmul.f32 %v258_v12, %v170_v30 }
  0xaa   :  { %v347_v55 = vmul.f32 %v258_v12, %v171_v35  ;;  %v511_v59 = vrot.slane %v510_v48, 2  ;;  %v336_v62 = vmul.f32 %v253_v47, %v160_v38  ;;  %v337_v63 = vmul.f32 %v253_v47, %v161_v37  ;;  %v178_v35 = vld [vmem:[%s8433_s0 + $0x1b0] sm:$0xff]  ;;  %v179_v37 = vld [vmem:[%s8433_s0 + $0x1b8] sm:$0xff] }
  0xab   :  { %v518_v60 = vrot.slane %v517_v49, 2  ;;  %v6604_v0 = vadd.f32 %v485_v52, %v484_v42  ;;  %v6606_v3 = vadd.f32 %v492_v53, %v491_v43  ;;  %v499_v4 = vrot.slane %v498_v44, 1  ;;  %v180_v42 = vld [vmem:[%s8433_s0 + $0x1c0] sm:$0xff]  ;;  %v181_v43 = vld [vmem:[%s8433_s0 + $0x1c8] sm:$0xff] }
  0xac   :  { %v506_v5 = vrot.slane %v505_v45, 1  ;;  %v512_v8 = vadd.f32 %v511_v59, %v510_v48  ;;  %v338_v46 = vmul.f32 %v253_v47, %v162_v56  ;;  %v339_v14 = vmul.f32 %v253_v47, %v163_v57  ;;  %v183_v56 = vld [vmem:[%s8433_s0 + $0x1d8] sm:$0xff]  ;;  %v172_v59 = vld [vmem:[%s8433_s0 + $0x180] sm:$0xff] }
  0xad   :  { %v519_v9 = vadd.f32 %v518_v60, %v517_v49  ;;  %v340_v19 = vmul.f32 %v253_v47, %v164_v58  ;;  %v341_v20 = vmul.f32 %v253_v47, %v165_v61  ;;  %v522_v23 = vadd.f32 %v342_v36, %v336_v62 }
  0xae   :  { %v529_v24 = vadd.f32 %v343_v41, %v337_v63  ;;  %v513_v22 = vrot.slane %v512_v8, 1  ;;  %v536_v12 = vadd.f32 %v344_v50, %v338_v46  ;;  %v543_v13 = vadd.f32 %v345_v51, %v339_v14  ;;  %v268_v41 = vpop.permute.xlu1 %267 }
  0xaf   :  { %v520_v26 = vrot.slane %v519_v9, 1  ;;  %v523_v27 = vrot.slane %v522_v23, 4  ;;  %v550_v29 = vadd.f32 %v346_v54, %v340_v19  ;;  %v557_v30 = vadd.f32 %v347_v55, %v341_v20  ;;  %v182_v55 = vld [vmem:[%s8433_s0 + $0x1d0] sm:$0xff] }
  0xb0   :  { %v530_v28 = vrot.slane %v529_v24, 4  ;;  %v6608_v31 = vadd.f32 %v499_v4, %v498_v44  ;;  %v6610_v32 = vadd.f32 %v506_v5, %v505_v45  ;;  %v537_v33 = vrot.slane %v536_v12, 4  ;;  %v263_v4 = vpop.permute.xlu0 %262  ;;  %v173_v5 = vld [vmem:[%s8433_s0 + $0x188] sm:$0xff] }
  0xb1   :  { %v544_v34 = vrot.slane %v543_v13, 4  ;;  %v524_v38 = vadd.f32 %v523_v27, %v522_v23  ;;  %v551_v40 = vrot.slane %v550_v29, 4  ;;  %v558_v36 = vrot.slane %v557_v30, 4  ;;  %v176_v27 = vld [vmem:[%s8433_s0 + $0x1a0] sm:$0xff] }
  0xb2   :  { %v531_v39 = vadd.f32 %v530_v28, %v529_v24  ;;  %v6624_v44 = vadd.f32 %v513_v22, %v512_v8  ;;  %v6626_v45 = vadd.f32 %v520_v26, %v519_v9  ;;  %v538_v47 = vadd.f32 %v537_v33, %v536_v12  ;;  %v174_v8 = vld [vmem:[%s8433_s0 + $0x190] sm:$0xff]  ;;  %v175_v9 = vld [vmem:[%s8433_s0 + $0x198] sm:$0xff]  ;;  %v177_v28 = vld [vmem:[%s8433_s0 + $0x1a8] sm:$0xff] }
  0xb3   :  { %v545_v48 = vadd.f32 %v544_v34, %v543_v13  ;;  %v525_v49 = vrot.slane %v524_v38, 2  ;;  %v552_v51 = vadd.f32 %v551_v40, %v550_v29  ;;  %v559_v52 = vadd.f32 %v558_v36, %v557_v30  ;;  %v191_v40 = vld [vmem:[%s8433_s0 + $0x218] sm:$0xff] }
  0xb4   :  { %8445 = vst [vmem:[#allocation6_spill] sm:$0xff] %v6624_v44  ;;  %8446 = vst [vmem:[#allocation7_spill] sm:$0xff] %v6626_v45  ;;  %v532_v50 = vrot.slane %v531_v39, 2  ;;  %v539_v53 = vrot.slane %v538_v47, 2  ;;  %v354_v57 = vmul.f32 %v268_v41, %v178_v35  ;;  %v355_v58 = vmul.f32 %v268_v41, %v179_v37 }
  0xb5   :  { %v546_v54 = vrot.slane %v545_v48, 2  ;;  %v526_v60 = vadd.f32 %v525_v49, %v524_v38  ;;  %v553_v62 = vrot.slane %v552_v51, 2  ;;  %v560_v63 = vrot.slane %v559_v52, 2 }
  0xb6   :  { %v533_v61 = vadd.f32 %v532_v50, %v531_v39  ;;  %v540_v46 = vadd.f32 %v539_v53, %v538_v47  ;;  %v356_v19 = vmul.f32 %v268_v41, %v180_v42  ;;  %v357_v20 = vmul.f32 %v268_v41, %v181_v43  ;;  %v190_v39 = vld [vmem:[%s8433_s0 + $0x210] sm:$0xff]  ;;  %v278_v47 = vpop.permute.xlu1 %277 }
  0xb7   :  { %v547_v14 = vadd.f32 %v546_v54, %v545_v48  ;;  %v527_v23 = vrot.slane %v526_v60, 1  ;;  %v6646_v22 = vadd.f32 %v553_v62, %v552_v51  ;;  %v6648_v26 = vadd.f32 %v560_v63, %v559_v52  ;;  %v273_v63 = vpop.permute.xlu0 %272 }
  0xb8   :  { %v534_v24 = vrot.slane %v533_v61, 1  ;;  %v541_v12 = vrot.slane %v540_v46, 1  ;;  %v348_v29 = vmul.f32 %v263_v4, %v172_v59  ;;  %v349_v30 = vmul.f32 %v263_v4, %v173_v5 }
  0xb9   :  { %v548_v13 = vrot.slane %v547_v14, 1  ;;  %v6656_v33 = vadd.f32 %v527_v23, %v526_v60  ;;  %v358_v35 = vmul.f32 %v268_v41, %v182_v55  ;;  %v359_v38 = vmul.f32 %v268_v41, %v183_v56  ;;  %v192_v55 = vld [vmem:[%s8433_s0 + $0x220] sm:$0xff]  ;;  %v193_v56 = vld [vmem:[%s8433_s0 + $0x228] sm:$0xff] }
  0xba   :  { %v6658_v34 = vadd.f32 %v534_v24, %v533_v61  ;;  %v555_v36 = vrot.slane %v6646_v22, 1  ;;  %v562_v37 = vrot.slane %v6648_v26, 1  ;;  %v350_v42 = vmul.f32 %v263_v4, %v174_v8 }
  0xbb   :  { %v351_v43 = vmul.f32 %v263_v4, %v175_v9  ;;  %v6668_v48 = vadd.f32 %v541_v12, %v540_v46  ;;  %v6670_v49 = vadd.f32 %v548_v13, %v547_v14  ;;  %v352_v41 = vmul.f32 %v263_v4, %v176_v27  ;;  %v195_v9 = vld [vmem:[%s8433_s0 + $0x238] sm:$0xff]  ;;  %v184_v27 = vld [vmem:[%s8433_s0 + $0x1e0] sm:$0xff] }
  0xbc   :  { %v353_v50 = vmul.f32 %v263_v4, %v177_v28  ;;  %v564_v51 = vadd.f32 %v354_v57, %v348_v29  ;;  %v571_v52 = vadd.f32 %v355_v58, %v349_v30  ;;  %v578_v53 = vadd.f32 %v356_v19, %v350_v42  ;;  %v194_v58 = vld [vmem:[%s8433_s0 + $0x230] sm:$0xff]  ;;  %v185_v28 = vld [vmem:[%s8433_s0 + $0x1e8] sm:$0xff] }
  0xbd   :  { %v585_v54 = vadd.f32 %v357_v20, %v351_v43  ;;  %v592_v59 = vadd.f32 %v358_v35, %v352_v41  ;;  %v366_v61 = vmul.f32 %v278_v47, %v190_v39  ;;  %v367_v62 = vmul.f32 %v278_v47, %v191_v40  ;;  %v186_v41 = vld [vmem:[%s8433_s0 + $0x1f0] sm:$0xff] }
  0xbe   :  { %v599_v60 = vadd.f32 %v359_v38, %v353_v50  ;;  %v565_v5 = vrot.slane %v564_v51, 4  ;;  %v572_v8 = vrot.slane %v571_v52, 4  ;;  %v579_v4 = vrot.slane %v578_v53, 4  ;;  %v187_v50 = vld [vmem:[%s8433_s0 + $0x1f8] sm:$0xff] }
  0xbf   :  { %v586_v57 = vrot.slane %v585_v54, 4  ;;  %v593_v46 = vrot.slane %v592_v59, 4  ;;  %v368_v19 = vmul.f32 %v278_v47, %v192_v55  ;;  %v369_v20 = vmul.f32 %v278_v47, %v193_v56  ;;  %v6698_v56 = vpop.permute.xlu0 %282 }
  0xc0   :  { %v600_v14 = vrot.slane %v599_v60, 4  ;;  %v566_v23 = vadd.f32 %v565_v5, %v564_v51  ;;  %v573_v24 = vadd.f32 %v572_v8, %v571_v52  ;;  %v580_v12 = vadd.f32 %v579_v4, %v578_v53  ;;  %v6696_v51 = vpop.permute.xlu1 %287  ;;  %v188_v8 = vld [vmem:[%s8433_s0 + $0x200] sm:$0xff]  ;;  %v189_v4 = vld [vmem:[%s8433_s0 + $0x208] sm:$0xff] }
  0xc1   :  { %v587_v13 = vadd.f32 %v586_v57, %v585_v54  ;;  %v594_v29 = vadd.f32 %v593_v46, %v592_v59  ;;  %v370_v35 = vmul.f32 %v278_v47, %v194_v58  ;;  %v371_v38 = vmul.f32 %v278_v47, %v195_v9 }
  0xc2   :  { %v601_v30 = vadd.f32 %v600_v14, %v599_v60  ;;  %v567_v39 = vrot.slane %v566_v23, 2  ;;  %v574_v40 = vrot.slane %v573_v24, 2  ;;  %v581_v42 = vrot.slane %v580_v12, 2 }
  0xc3   :  { %v588_v43 = vrot.slane %v587_v13, 2  ;;  %v595_v52 = vrot.slane %v594_v29, 2  ;;  %v360_v54 = vmul.f32 %v273_v63, %v184_v27  ;;  %v361_v55 = vmul.f32 %v273_v63, %v185_v28 }
  0xc4   :  { %v602_v53 = vrot.slane %v601_v30, 2  ;;  %v6700_v47 = vadd.f32 %v567_v39, %v566_v23  ;;  %v6702_v59 = vadd.f32 %v574_v40, %v573_v24  ;;  %v582_v60 = vadd.f32 %v581_v42, %v580_v12  ;;  %v201_v24 = vld [vmem:[%s8433_s0 + $0x268] sm:$0xff] }
  0xc5   :  { %v6704_v5 = vadd.f32 %v588_v43, %v587_v13  ;;  %v596_v57 = vadd.f32 %v595_v52, %v594_v29  ;;  %v362_v9 = vmul.f32 %v273_v63, %v186_v41  ;;  %v363_v46 = vmul.f32 %v273_v63, %v187_v50  ;;  %v6723_v43 = vpop.permute.xlu1 %739  ;;  %v202_v41 = vld [vmem:[%s8433_s0 + $0x270] sm:$0xff]  ;;  %v6729_v50 = vpop.permute.xlu0 %734 }
  0xc6   :  { %v6712_v58 = vadd.f32 %v602_v53, %v601_v30  ;;  %v6715_v14 = vadd.f32 %v555_v36, %v6646_v22  ;;  %v6718_v23 = vadd.f32 %v562_v37, %v6648_v26  ;;  %v583_v12 = vrot.slane %v582_v60, 1 }
  0xc7   :  { %v597_v27 = vrot.slane %v596_v57, 1  ;;  %v364_v28 = vmul.f32 %v273_v63, %v188_v8  ;;  %v365_v39 = vmul.f32 %v273_v63, %v189_v4  ;;  %v606_v30 = vadd.f32 %v366_v61, %v360_v54  ;;  %v204_v54 = vld [vmem:[%s8433_s0 + $0x280] sm:$0xff]  ;;  %v205_v4 = vld [vmem:[%s8433_s0 + $0x288] sm:$0xff] }
  0xc8   :  { %8447 = vst [vmem:[#allocation8_spill] sm:$0xff] %v6715_v14  ;;  %8448 = vst [vmem:[#allocation9_spill] sm:$0xff] %v6718_v23  ;;  %v613_v40 = vadd.f32 %v367_v62, %v361_v55  ;;  %v620_v42 = vadd.f32 %v368_v19, %v362_v9  ;;  %v627_v36 = vadd.f32 %v369_v20, %v363_v46  ;;  %v203_v62 = vld [vmem:[%s8433_s0 + $0x278] sm:$0xff]  ;;  %6075 = vrcp.f32 %v6729_v50  ;;  %v218_v50 = vld [vmem:[%s8433_s0 + $0x2f0] sm:$0xff] }
  0xc9   :  { %v634_v26 = vadd.f32 %v370_v35, %v364_v28  ;;  %v641_v37 = vadd.f32 %v371_v38, %v365_v39  ;;  %v6731_v52 = vadd.f32 %v583_v12, %v582_v60  ;;  %v607_v63 = vrot.slane %v606_v30, 4  ;;  %v207_v28 = vld [vmem:[%s8433_s0 + $0x298] sm:$0xff] }
  0xca   :  { %v614_v53 = vrot.slane %v613_v40, 4  ;;  %v621_v61 = vrot.slane %v620_v42, 4  ;;  %v6736_v19 = vadd.f32 %v597_v27, %v596_v57  ;;  %v628_v20 = vrot.slane %v627_v36, 4  ;;  %v206_v27 = vld [vmem:[%s8433_s0 + $0x290] sm:$0xff] }
  0xcb   :  { %v635_v35 = vrot.slane %v634_v26, 4  ;;  %v642_v38 = vrot.slane %v641_v37, 4  ;;  %v608_v55 = vadd.f32 %v607_v63, %v606_v30  ;;  %v378_v9 = vmul.f32 %v6696_v51, %v202_v41  ;;  %v196_v30 = vld [vmem:[%s8433_s0 + $0x240] sm:$0xff] }
  0xcc   :  { %8449 = vst [vmem:[#allocation10_spill] sm:$0xff] %v6736_v19  ;;  %v615_v8 = vadd.f32 %v614_v53, %v613_v40  ;;  %v622_v60 = vadd.f32 %v621_v61, %v620_v42  ;;  %v629_v46 = vadd.f32 %v628_v20, %v627_v36  ;;  %v379_v39 = vmul.f32 %v6696_v51, %v203_v62  ;;  %v198_v20 = vld [vmem:[%s8433_s0 + $0x250] sm:$0xff] }
  0xcd   :  { %v636_v12 = vadd.f32 %v635_v35, %v634_v26  ;;  %v643_v57 = vadd.f32 %v642_v38, %v641_v37  ;;  %v609_v40 = vrot.slane %v608_v55, 2  ;;  %v380_v36 = vmul.f32 %v6696_v51, %v204_v54  ;;  %v197_v26 = vld [vmem:[%s8433_s0 + $0x248] sm:$0xff]  ;;  %v6759_v37 = vpop.permute.xlu1 %297  ;;  %v199_v35 = vld [vmem:[%s8433_s0 + $0x258] sm:$0xff]  ;;  %v200_v38 = vld [vmem:[%s8433_s0 + $0x260] sm:$0xff]  ;;  %v6771_v54 = vpop.permute.xlu0 %292 }
  0xce   :  { %v616_v42 = vrot.slane %v615_v8, 2  ;;  %v623_v41 = vrot.slane %v622_v60, 2  ;;  %v630_v63 = vrot.slane %v629_v46, 2  ;;  %v381_v62 = vmul.f32 %v6696_v51, %v205_v4 }
  0xcf   :  { %v637_v53 = vrot.slane %v636_v12, 2  ;;  %v644_v61 = vrot.slane %v643_v57, 2  ;;  %v382_v29 = vmul.f32 %v6696_v51, %v206_v27  ;;  %v383_v4 = vmul.f32 %v6696_v51, %v207_v28 }
  0xd0   :  { %v6773_v22 = vadd.f32 %v623_v41, %v622_v60  ;;  %v372_v13 = vmul.f32 %v6698_v56, %v196_v30  ;;  %v6781_v19 = vadd.f32 %v609_v40, %v608_v55  ;;  %v6783_v14 = vadd.f32 %v616_v42, %v615_v8 }
  0xd1   :  { %v6785_v44 = vadd.f32 %v637_v53, %v636_v12  ;;  %v373_v25 = vmul.f32 %v6698_v56, %v197_v26  ;;  %v6788_v60 = vadd.f32 %v630_v63, %v629_v46  ;;  %v374_v27 = vmul.f32 %v6698_v56, %v198_v20  ;;  %v750_v26 = vpop.permute.xlu1 %749 }
  0xd2   :  { %v375_v51 = vmul.f32 %v6698_v56, %v199_v35  ;;  %v376_v28 = vmul.f32 %v6698_v56, %v200_v38  ;;  %v6793_v41 = vadd.f32 %v644_v61, %v643_v57  ;;  %v377_v30 = vmul.f32 %v6698_v56, %v201_v24  ;;  %v214_v57 = vld [vmem:[%s8433_s0 + $0x2d0] sm:$0xff]  ;;  %v745_v61 = vpop.permute.xlu0 %744 }
  0xd3   :  { %8450 = vst [vmem:[#allocation11_spill] sm:$0xff] %v6785_v44  ;;  %v648_v55 = vadd.f32 %v378_v9, %v372_v13  ;;  %v655_v40 = vadd.f32 %v379_v39, %v373_v25  ;;  %v662_v12 = vadd.f32 %v380_v36, %v374_v27  ;;  %v215_v25 = vld [vmem:[%s8433_s0 + $0x2d8] sm:$0xff]  ;;  %v216_v13 = vld [vmem:[%s8433_s0 + $0x2e0] sm:$0xff]  ;;  %6077 = vrcp.f32 %v6723_v43  ;;  %v217_v36 = vld [vmem:[%s8433_s0 + $0x2e8] sm:$0xff] }
  0xd4   :  { %v669_v42 = vadd.f32 %v381_v62, %v375_v51  ;;  %v676_v53 = vadd.f32 %v382_v29, %v376_v28  ;;  %v683_v2 = vadd.f32 %v383_v4, %v377_v30  ;;  %v219_v27 = vld [vmem:[%s8433_s0 + $0x2f8] sm:$0xff]  ;;  %v390_v51 = vmul.f32 %v6759_v37, %v214_v57  ;;  %v208_v43 = vld [vmem:[%s8433_s0 + $0x2a0] sm:$0xff]  ;;  %v209_v28 = vld [vmem:[%s8433_s0 + $0x2a8] sm:$0xff] }
  0xd5   :  { %v649_v63 = vrot.slane %v648_v55, 4  ;;  %v656_v20 = vrot.slane %v655_v40, 4  ;;  %v663_v35 = vrot.slane %v662_v12, 4  ;;  %v385_v46 = vmul.f32 %v6771_v54, %v209_v28 }
  0xd6   :  { %v670_v56 = vrot.slane %v669_v42, 4  ;;  %v677_v24 = vrot.slane %v676_v53, 4  ;;  %v684_v39 = vrot.slane %v683_v2, 4  ;;  %v755_v8 = vpop.permute.xlu0 %754  ;;  %6079 = vrcp.f32 %v750_v26 }
  0xd7   :  { %v6808_v29 = vadd.f32 %v649_v63, %v648_v55  ;;  %v657_v9 = vadd.f32 %v656_v20, %v655_v40  ;;  %v664_v62 = vadd.f32 %v663_v35, %v662_v12  ;;  %v391_v40 = vmul.f32 %v6759_v37, %v215_v25 }
  0xd8   :  { %v6817_v38 = vadd.f32 %v670_v56, %v669_v42  ;;  %v678_v4 = vadd.f32 %v677_v24, %v676_v53  ;;  %v6830_v55 = vadd.f32 %v684_v39, %v683_v2  ;;  %v392_v12 = vmul.f32 %v6759_v37, %v216_v13  ;;  %v210_v42 = vld [vmem:[%s8433_s0 + $0x2b0] sm:$0xff]  ;;  %v211_v53 = vld [vmem:[%s8433_s0 + $0x2b8] sm:$0xff]  ;;  %v212_v2 = vld [vmem:[%s8433_s0 + $0x2c0] sm:$0xff]  ;;  %v760_v24 = vpop.permute.xlu1 %759 }
  0xd9   :  { %v658_v63 = vrot.slane %v657_v9, 2  ;;  %v665_v20 = vrot.slane %v664_v62, 2  ;;  %v393_v35 = vmul.f32 %v6759_v37, %v217_v36  ;;  %v213_v56 = vld [vmem:[%s8433_s0 + $0x2c8] sm:$0xff]  ;;  %v394_v25 = vmul.f32 %v6759_v37, %v218_v50 }
  0xda   :  { %v679_v57 = vrot.slane %v678_v4, 2  ;;  %v395_v13 = vmul.f32 %v6759_v37, %v219_v27  ;;  %v384_v39 = vmul.f32 %v6771_v54, %v208_v43  ;;  %v386_v44 = vmul.f32 %v6771_v54, %v210_v42 }
  0xdb   :  { %v387_v23 = vmul.f32 %v6771_v54, %v211_v53  ;;  %v388_v45 = vmul.f32 %v6771_v54, %v212_v2  ;;  %v389_v1 = vmul.f32 %v6771_v54, %v213_v56  ;;  %v697_v21 = vadd.f32 %v391_v40, %v385_v46  ;;  %v6867_v53 = vpop.eup %6075 }
  0xdc   :  { %v690_v50 = vadd.f32 %v390_v51, %v384_v39  ;;  %v6857_v37 = vadd.f32 %v665_v20, %v664_v62  ;;  %v704_v27 = vadd.f32 %v392_v12, %v386_v44  ;;  %v6861_v28 = vadd.f32 %v679_v57, %v678_v4  ;;  %v770_v54 = vpop.permute.xlu1 %769 }
  0xdd   :  { %v6859_v43 = vadd.f32 %v393_v35, %v387_v23  ;;  %v698_v36 = vrot.slane %v697_v21, 4  ;;  %v6863_v30 = vadd.f32 %v394_v25, %v388_v45  ;;  %v6865_v42 = vadd.f32 %v395_v13, %v389_v1  ;;  %v6875_v26 = vpop.eup %6077  ;;  %v765_v1 = vpop.permute.xlu0 %764 }
  0xde   :  { %v705_v2 = vrot.slane %v704_v27, 4  ;;  %6081 = vrcp.f32 %v745_v61  ;;  %v8451_v46 = vrot.slane %v6702_v59, 1  ;;  %v618_v23 = vrot.slane %v6783_v14, 1 }
  0xdf   :  { %v691_v62 = vrot.slane %v690_v50, 4  ;;  %v712_v45 = vrot.slane %v6859_v43, 4  ;;  %6083 = vrcp.f32 %v760_v24  ;;  %v659_v4 = vadd.f32 %v658_v63, %v657_v9 }
  0xe0   :  { %v6872_v44 = vadd.f32 %v8451_v46, %v6702_v59  ;;  %v6878_v51 = vadd.f32 %v705_v2, %v704_v27  ;;  %6085 = vrcp.f32 %v755_v8  ;;  %v699_v40 = vadd.f32 %v698_v36, %v697_v21 }
  0xe1   :  { %6087 = vrcp.f32 %v770_v54  ;;  %v660_v59 = vrot.slane %v659_v4, 1  ;;  %v774_v20 = vmul.f32 %v6867_v53, %v6558_v16  ;;  %v619_v57 = vadd.f32 %v618_v23, %v6783_v14  ;;  %v6899_v54 = vpop.eup %6079 }
  0xe2   :  { %6089 = vrcp.f32 %v765_v1  ;;  %v700_v35 = vrot.slane %v699_v40, 2  ;;  %v781_v9 = vmul.f32 %v6875_v26, %v6508_v7  ;;  %v707_v63 = vrot.slane %v6878_v51, 2 }
  0xe3   :  { %v661_v56 = vadd.f32 %v660_v59, %v659_v4  ;;  %v829_v24 = vpack.c.bf16 %v774_v20, %v774_v20  ;;  %v8452_v21 = vrot.slane %v6700_v47, 1  ;;  %v611_v16 = vrot.slane %v6781_v19, 1 }
  0xe4   :  { %v701_v25 = vadd.f32 %v700_v35, %v699_v40  ;;  %v835_v13 = vpack.c.bf16 %v781_v9, %v781_v9  ;;  %v8453_v14 = vrot.slane %v6808_v29, 2  ;;  %v692_v7 = vadd.f32 %v691_v62, %v690_v50 }
  0xe5   :  { %v570_v8 = vadd.f32 %v8452_v21, %v6700_v47  ;;  %v1245_v36 = vunpack.c.l.b16 %v829_v24  ;;  %v773_v27 = vmul.f32 %v6867_v53, %v6556_v15  ;;  %v780_v2 = vmul.f32 %v6875_v26, %v6506_v6 }
  0xe6   :  { %v652_v39 = vadd.f32 %v8453_v14, %v6808_v29  ;;  %v702_v47 = vrot.slane %v701_v25, 1  ;;  %v1251_v46 = vunpack.c.l.b16 %v835_v13  ;;  %v612_v23 = vadd.f32 %v611_v16, %v6781_v19 }
  0xe7   :  { %v795_v29 = vmul.f32 %v6899_v54, %v6658_v34  ;;  %v693_v4 = vrot.slane %v692_v7, 2  ;;  %v794_v50 = vmul.f32 %v6899_v54, %v6656_v33  ;;  %v828_v15 = vpack.c.bf16 %v773_v27, %v773_v27 }
  0xe8   :  { %v653_v1 = vrot.slane %v652_v39, 1  ;;  %v6906_v62 = vpop.eup %6081  ;;  %v703_v6 = vadd.f32 %v702_v47, %v701_v25  ;;  %v1306_v40 = vsel %vm1292_vm1, %v1251_v46, %v1245_v36  ;;  %v834_v20 = vpack.c.bf16 %v780_v2, %v780_v2 }
  0xe9   :  { %v6909_v35 = vpop.eup %6083  ;;  %v788_v19 = vmul.f32 %v6906_v62, %v6606_v3  ;;  %v847_v34 = vpack.c.bf16 %v795_v29, %v795_v29  ;;  %v694_v9 = vadd.f32 %v693_v4, %v692_v7  ;;  %v787_v33 = vmul.f32 %v6906_v62, %v6604_v0 }
  0xea   :  { %v654_v59 = vadd.f32 %v653_v1, %v652_v39  ;;  %v6915_v24 = vpop.eup %6085  ;;  %v809_v21 = vmul.f32 %v6909_v35, %v619_v57  ;;  %v808_v25 = vmul.f32 %v6909_v35, %v612_v23  ;;  %v846_v13 = vpack.c.bf16 %v794_v50, %v794_v50 }
  0xeb   :  { %v1244_v16 = vunpack.c.l.b16 %v828_v15  ;;  %v6919_v14 = vpop.eup %6087  ;;  %v802_v39 = vmul.f32 %v6915_v24, %v6872_v44  ;;  %v841_v3 = vpack.c.bf16 %v788_v19, %v788_v19  ;;  %v1263_v36 = vunpack.c.l.b16 %v847_v34 }
  0xec   :  { %v695_v27 = vrot.slane %v694_v9, 1  ;;  %v6923_v7 = vpop.eup %6089  ;;  %v823_v0 = vmul.f32 %v6919_v14, %v703_v6  ;;  %v859_v2 = vpack.c.bf16 %v809_v21, %v809_v21  ;;  %v801_v47 = vmul.f32 %v6915_v24, %v570_v8 }
  0xed   :  { %v840_v57 = vpack.c.bf16 %v787_v33, %v787_v33  ;;  %v816_v46 = vmul.f32 %v6923_v7, %v661_v56  ;;  %v853_v23 = vpack.c.bf16 %v802_v39, %v802_v39  ;;  %v1257_v1 = vunpack.c.l.b16 %v841_v3 }
  0xee   :  { %v696_v29 = vadd.f32 %v695_v27, %v694_v9  ;;  %v871_v4 = vpack.c.bf16 %v823_v0, %v823_v0  ;;  %v1275_v50 = vunpack.c.l.b16 %v859_v2  ;;  %v815_v44 = vmul.f32 %v6923_v7, %v654_v59 }
  0xef   :  { %v852_v15 = vpack.c.bf16 %v801_v47, %v801_v47  ;;  %v865_v19 = vpack.c.bf16 %v816_v46, %v816_v46  ;;  %v1269_v34 = vunpack.c.l.b16 %v853_v23  ;;  %v1307_v12 = vsel %vm1294_vm2, %v1257_v1, %v1306_v40 }
  0xf0   :  { %v822_v6 = vmul.f32 %v6919_v14, %v696_v29  ;;  %v1287_v21 = vunpack.c.l.b16 %v871_v4  ;;  %v1308_v8 = vsel %vm1296_vm3, %v1263_v36, %v1307_v12  ;;  %v858_v33 = vpack.c.bf16 %v808_v25, %v808_v25 }
  0xf1   :  { %v864_v61 = vpack.c.bf16 %v815_v44, %v815_v44  ;;  %v1281_v56 = vunpack.c.l.b16 %v865_v19  ;;  %v1309_v39 = vsel %vm1298_vm4, %v1269_v34, %v1308_v8  ;;  %v1250_v3 = vunpack.c.l.b16 %v834_v20 }
  0xf2   :  { %v870_v9 = vpack.c.bf16 %v822_v6, %v822_v6  ;;  %v1310_v27 = vsel %vm1300_vm5, %v1275_v50, %v1309_v39  ;;  %v1256_v59 = vunpack.c.l.b16 %v840_v57  ;;  %v1262_v0 = vunpack.c.l.b16 %v846_v13 }
  0xf3   :  { %v1268_v2 = vunpack.c.l.b16 %v852_v15  ;;  %v1311_v47 = vsel %vm1302_vm6, %v1281_v56, %v1310_v27  ;;  %v1274_v40 = vunpack.c.l.b16 %v858_v33  ;;  %v1280_v46 = vunpack.c.l.b16 %v864_v61  ;;  %v5523_v33 = vld [vmem:[%s8432_s2 + $0x300] ss:$24 sps:$4 sm:$0xff]  }
  0xf4   :  { %v1286_v23 = vunpack.c.l.b16 %v870_v9  ;;  %v1312_v1 = vsel %vm1304_vm7, %v1287_v21, %v1311_v47  ;;  %v1293_v12 = vsel %vm1292_vm1, %v1250_v3, %v1244_v16  ;;  %v8454_v25 = vrot.slane %v6704_v5, 1  ;;  %v5534_v47 = vld [vmem:[%s8432_s2 + $0x33c] ss:$24 sps:$4 sm:$0xff]  }
  0xf5   :  { %v632_v20 = vrot.slane %v6788_v60, 1  ;;  %v6941_v29 = vpack.c.b16 %v1312_v1, %v1312_v1  ;;  %v1295_v13 = vsel %vm1294_vm2, %v1256_v59, %v1293_v12  ;;  %v8455_v57 = vrot.slane %v6817_v38, 2 }
  0xf6   :  { %v591_v36 = vadd.f32 %v8454_v25, %v6704_v5  ;;  %v713_v61 = vadd.f32 %v712_v45, %v6859_v43  ;;  %v1297_v16 = vsel %vm1296_vm3, %v1262_v0, %v1295_v13  ;;  %v776_v5 = vmul.f32 %v6867_v53, %v6562_v18 }
  0xf7   :  { %v673_v4 = vadd.f32 %v8455_v57, %v6817_v38  ;;  %v633_v50 = vadd.f32 %v632_v20, %v6788_v60  ;;  %v783_v44 = vmul.f32 %v6875_v26, %v6518_v11  ;;  %2825 = vmatprep.mubr.bf16.mxu0 %v6941_v29  ;;  %2948 = vmatprep.mubr.bf16.mxu1 %v6941_v29 }
  0xf8   :  { %v1299_v38 = vsel %vm1298_vm4, %v1268_v2, %v1297_v16  ;;  %v714_v19 = vrot.slane %v713_v61, 2  ;;  %v790_v43 = vmul.f32 %v6906_v62, %v6610_v32  ;;  %v797_v60 = vmul.f32 %v6899_v54, %v6670_v49  ;;  %v5526_v32 = vld [vmem:[%s8432_s2 + $0x308] ss:$24 sps:$4 sm:$0xff]   ;;  %v5531_v2 = vld [vmem:[%s8432_s2 + $0x334] ss:$24 sps:$4 sm:$0xff]  }
  0xf9   :  { %v674_v15 = vrot.slane %v673_v4, 1  ;;  %v1301_v45 = vsel %vm1300_vm5, %v1274_v40, %v1299_v38  ;;  %v804_v18 = vmul.f32 %v6915_v24, %v591_v36  ;;  %v811_v11 = vmul.f32 %v6909_v35, %v633_v50 }
  0xfa   :  { %v1303_v34 = vsel %vm1302_vm6, %v1280_v46, %v1301_v45  ;;  %v715_v21 = vadd.f32 %v714_v19, %v713_v61  ;;  %v831_v8 = vpack.c.bf16 %v776_v5, %v776_v5  ;;  %v837_v49 = vpack.c.bf16 %v783_v44, %v783_v44  ;;  %v5532_v61 = vld [vmem:[%s8432_s2 + $0x338] ss:$24 sps:$4 sm:$0xff]   ;;  %v5537_v19 = vld [vmem:[%s8432_s2 + $0x364] ss:$24 sps:$4 sm:$0xff]  }
  0xfb   :  { %v675_v6 = vadd.f32 %v674_v15, %v673_v4  ;;  %v1305_v56 = vsel %vm1304_vm7, %v1286_v23, %v1303_v34  ;;  %v843_v39 = vpack.c.bf16 %v790_v43, %v790_v43  ;;  %v849_v9 = vpack.c.bf16 %v797_v60, %v797_v60  ;;  %v5529_v4 = vld [vmem:[%s8432_s2 + $0x330] ss:$24 sps:$4 sm:$0xff]   ;;  %v5540_v43 = vld [vmem:[%s8432_s2 + $0x36c] ss:$24 sps:$4 sm:$0xff]  }
  0xfc   :  { %v6974_v3 = vpack.c.b16 %v1305_v56, %v1305_v56  ;;  %v716_v27 = vrot.slane %v715_v21, 1  ;;  %v855_v0 = vpack.c.bf16 %v804_v18, %v804_v18  ;;  %v861_v40 = vpack.c.bf16 %v811_v11, %v811_v11  ;;  %v5543_v56 = vld [vmem:[%s8432_s2 + $0x394] ss:$24 sps:$4 sm:$0xff]  }
  0xfd   :  { %v818_v59 = vmul.f32 %v6923_v7, %v675_v6  ;;  %v1247_v46 = vunpack.c.l.b16 %v831_v8  ;;  %v1253_v23 = vunpack.c.l.b16 %v837_v49  ;;  %v1259_v1 = vunpack.c.l.b16 %v843_v39  ;;  %v5546_v49 = vld [vmem:[%s8432_s2 + $0x39c] ss:$24 sps:$4 sm:$0xff]  }
  0xfe   :  { %2826 = vmatmul.mubr.bf16.vlgmr.msra.gmra.mrb[0].mxu0 %v6974_v3  ;;  %2949 = vmatmul.mubr.bf16.vlgmr.msra.gmra.mrb[0].mxu1 %v6974_v3  ;;  %v717_v12 = vadd.f32 %v716_v27, %v715_v21  ;;  %v1265_v36 = vunpack.c.l.b16 %v849_v9  ;;  %v1271_v20 = vunpack.c.l.b16 %v855_v0  ;;  %v1277_v13 = vunpack.c.l.b16 %v861_v40 }
  0xff   :  { %v867_v25 = vpack.c.bf16 %v818_v59, %v818_v59  ;;  %2835 = vmatpush1.bf16.msra.mxu0 %v5523_v33  ;;  %2958 = vmatpush1.bf16.msra.mxu1 %v5526_v32  ;;  %v1320_v57 = vsel %vm1292_vm1, %v1253_v23, %v1247_v46  ;;  %v8456_v16 = vrot.slane %v6773_v22, 1  ;;  %v667_v5 = vrot.slane %v6857_v37, 1  ;;  %v5541_v23 = vld [vmem:[%s8432_s2 + $0x390] ss:$24 sps:$4 sm:$0xff]  }
 0x100   :  { %v825_v44 = vmul.f32 %v6919_v14, %v717_v12  ;;  %v1321_v15 = vsel %vm1294_vm2, %v1259_v1, %v1320_v57  ;;  %2836 = vmatprep.subr.bf16.mxu0 %v5531_v2  ;;  %2959 = vmatprep.subr.bf16.mxu1 %v5534_v47  ;;  %v775_v18 = vmul.f32 %v6867_v53, %v6560_v17  ;;  %v5538_v17 = vld [vmem:[%s8432_s2 + $0x368] ss:$24 sps:$4 sm:$0xff]   ;;  %v5544_v1 = vld [vmem:[%s8432_s2 + $0x398] ss:$24 sps:$4 sm:$0xff]  }
 0x101   :  { %v626_v50 = vadd.f32 %v8456_v16, %v6773_v22  ;;  %v1283_v38 = vunpack.c.l.b16 %v867_v25  ;;  %v708_v22 = vadd.f32 %v707_v63, %v6878_v51  ;;  %v1322_v45 = vsel %vm1296_vm3, %v1265_v36, %v1321_v15 }
 0x102   :  { %v668_v60 = vadd.f32 %v667_v5, %v6857_v37  ;;  %v782_v11 = vmul.f32 %v6875_v26, %v6516_v10  ;;  %v873_v34 = vpack.c.bf16 %v825_v44, %v825_v44  ;;  %v1323_v6 = vsel %vm1298_vm4, %v1271_v20, %v1322_v45  ;;  %v5535_v37 = vld [vmem:[%s8432_s2 + $0x360] ss:$24 sps:$4 sm:$0xff]   ;;  %v5549_v20 = vld [vmem:[%s8432_s2 + $0x3c4] ss:$24 sps:$4 sm:$0xff]  }
 0x103   :  { %v709_v21 = vrot.slane %v708_v22, 1  ;;  %v789_v8 = vmul.f32 %v6906_v62, %v6608_v31  ;;  %v1324_v33 = vsel %vm1300_vm5, %v1277_v13, %v1323_v6  ;;  %2837 = vmatpush1.bf16.msra.mxu0 %v5529_v4  ;;  %2960 = vmatpush1.bf16.msra.mxu1 %v5532_v61  ;;  %v796_v10 = vmul.f32 %v6899_v54, %v6668_v48  ;;  %v5552_v13 = vld [vmem:[%s8432_s2 + $0x3cc] ss:$24 sps:$4 sm:$0xff]  }
 0x104   :  { %v803_v51 = vmul.f32 %v6915_v24, %v6731_v52  ;;  %v646_v31 = vrot.slane %v6793_v41, 1  ;;  %v1289_v63 = vunpack.c.l.b16 %v873_v34  ;;  %v1325_v32 = vsel %vm1302_vm6, %v1283_v38, %v1324_v33  ;;  %2838 = vmatprep.subr.bf16.mxu0 %v5537_v19  ;;  %2961 = vmatprep.subr.bf16.mxu1 %v5540_v43  ;;  %v5558_v33 = vld [vmem:[%s8432_s2 + $0x3fc] ss:$24 sps:$4 sm:$0xff]  }
 0x105   :  { %v710_v39 = vadd.f32 %v709_v21, %v708_v22  ;;  %v810_v48 = vmul.f32 %v6909_v35, %v626_v50  ;;  %v817_v52 = vmul.f32 %v6923_v7, %v668_v60  ;;  %v830_v9 = vpack.c.bf16 %v775_v18, %v775_v18  ;;  %v5547_v18 = vld [vmem:[%s8432_s2 + $0x3c0] ss:$24 sps:$4 sm:$0xff]  }
 0x106   :  { %v836_v27 = vpack.c.bf16 %v782_v11, %v782_v11  ;;  %v842_v59 = vpack.c.bf16 %v789_v8, %v789_v8  ;;  %v1326_v0 = vsel %vm1304_vm7, %v1289_v63, %v1325_v32  ;;  %v848_v47 = vpack.c.bf16 %v796_v10, %v796_v10  ;;  %v5550_v11 = vld [vmem:[%s8432_s2 + $0x3c8] ss:$24 sps:$4 sm:$0xff]   ;;  %v5555_v8 = vld [vmem:[%s8432_s2 + $0x3f4] ss:$24 sps:$4 sm:$0xff]  }
 0x107   :  { %v824_v2 = vmul.f32 %v6919_v14, %v710_v39  ;;  %v854_v40 = vpack.c.bf16 %v803_v51, %v803_v51  ;;  %v7039_v46 = vpack.c.b16 %v1326_v0, %v1326_v0  ;;  %2839 = vmatpush1.bf16.msra.mxu0 %v5535_v37  ;;  %2962 = vmatpush1.bf16.msra.mxu1 %v5538_v17  ;;  %v1246_v36 = vunpack.c.l.b16 %v830_v9  ;;  %v8461_v21 = vld [vmem:[#allocation5_spill] sm:$0xff]  ;;  %v8462_v10 = vld [vmem:[#allocation3_spill] sm:$0xff] }
 0x108   :  { %v860_v12 = vpack.c.bf16 %v810_v48, %v810_v48  ;;  %v866_v25 = vpack.c.bf16 %v817_v52, %v817_v52  ;;  %2840 = vmatprep.subr.bf16.mxu0 %v5543_v56  ;;  %2963 = vmatprep.subr.bf16.mxu1 %v5546_v49  ;;  %v1252_v4 = vunpack.c.l.b16 %v836_v27  ;;  %v1258_v61 = vunpack.c.l.b16 %v842_v59  ;;  %v8464_v56 = vld [vmem:[#allocation9_spill] sm:$0xff]  ;;  %v5553_v59 = vld [vmem:[%s8432_s2 + $0x3f0] ss:$24 sps:$4 sm:$0xff]  }
 0x109   :  { %v872_v57 = vpack.c.bf16 %v824_v2, %v824_v2  ;;  %v1264_v16 = vunpack.c.l.b16 %v848_v47  ;;  %v8457_v50 = vrot.slane %v6863_v30, 4  ;;  %2866 = vmatprep.mubr.bf16.mxu0 %v7039_v46  ;;  %2989 = vmatprep.mubr.bf16.mxu1 %v7039_v46  ;;  %v1270_v44 = vunpack.c.l.b16 %v854_v40  ;;  %v5556_v0 = vld [vmem:[%s8432_s2 + $0x3f8] ss:$24 sps:$4 sm:$0xff]  }
 0x10a   :  { %v1276_v38 = vunpack.c.l.b16 %v860_v12  ;;  %v1282_v15 = vunpack.c.l.b16 %v866_v25  ;;  %v1313_v19 = vsel %vm1292_vm1, %v1252_v4, %v1246_v36  ;;  %v8458_v43 = vrot.slane %v6712_v58, 1  ;;  %v5564_v12 = vld [vmem:[%s8432_s2 + $0x42c] ss:$24 sps:$4 sm:$0xff]  }
 0x10b   :  { %v7056_v5 = vadd.f32 %v8457_v50, %v6863_v30  ;;  %v647_v45 = vadd.f32 %v646_v31, %v6793_v41  ;;  %v8459_v60 = vrot.slane %v6830_v55, 2  ;;  %2841 = vmatpush1.bf16.msra.mxu0 %v5541_v23  ;;  %2964 = vmatpush1.bf16.msra.mxu1 %v5544_v1  ;;  %v1288_v34 = vunpack.c.l.b16 %v872_v57  ;;  %v5561_v1 = vld [vmem:[%s8432_s2 + $0x424] ss:$24 sps:$4 sm:$0xff]  }
 0x10c   :  { %v605_v22 = vadd.f32 %v8458_v43, %v6712_v58  ;;  %v1314_v6 = vsel %vm1294_vm2, %v1258_v61, %v1313_v19  ;;  %v8460_v58 = vrot.slane %v6865_v42, 4  ;;  %2842 = vmatprep.subr.bf16.mxu0 %v5549_v20  ;;  %2965 = vmatprep.subr.bf16.mxu1 %v5552_v13  ;;  %v785_v51 = vmul.f32 %v6875_v26, %v8462_v10  ;;  %v5559_v19 = vld [vmem:[%s8432_s2 + $0x420] ss:$24 sps:$4 sm:$0xff]  }
 0x10d   :  { %v687_v30 = vadd.f32 %v8459_v60, %v6830_v55  ;;  %v778_v55 = vmul.f32 %v6867_v53, %v8461_v21  ;;  %v1315_v37 = vsel %vm1296_vm3, %v1264_v16, %v1314_v6  ;;  %v799_v49 = vmul.f32 %v6899_v54, %v8464_v56  ;;  %v5562_v43 = vld [vmem:[%s8432_s2 + $0x428] ss:$24 sps:$4 sm:$0xff]   ;;  %v5570_v6 = vld [vmem:[%s8432_s2 + $0x45c] ss:$24 sps:$4 sm:$0xff]  }
 0x10e   :  { %v727_v41 = vadd.f32 %v8460_v58, %v6865_v42  ;;  %v8463_v42 = vld [vmem:[#allocation7_spill] sm:$0xff]  ;;  %v1316_v63 = vsel %vm1298_vm4, %v1270_v44, %v1315_v37  ;;  %v806_v39 = vmul.f32 %v6915_v24, %v605_v22  ;;  %v813_v9 = vmul.f32 %v6909_v35, %v647_v45  ;;  %v8470_v56 = vld [vmem:[#allocation8_spill] sm:$0xff] }
 0x10f   :  { %v688_v17 = vrot.slane %v687_v30, 1  ;;  %v792_v31 = vmul.f32 %v6906_v62, %v8463_v42  ;;  %v1317_v48 = vsel %vm1300_vm5, %v1276_v38, %v1316_v63  ;;  %v833_v27 = vpack.c.bf16 %v778_v55, %v778_v55  ;;  %2843 = vmatpush1.bf16.msra.mxu0 %v5547_v18  ;;  %2966 = vmatpush1.bf16.msra.mxu1 %v5550_v11  ;;  %v8468_v42 = vld [vmem:[#allocation2_spill] sm:$0xff] }
 0x110   :  { %v728_v32 = vrot.slane %v727_v41, 2  ;;  %v1318_v2 = vsel %vm1302_vm6, %v1282_v15, %v1317_v48  ;;  %v839_v40 = vpack.c.bf16 %v785_v51, %v785_v51  ;;  %v681_v23 = vrot.slane %v6861_v28, 1  ;;  %2844 = vmatprep.subr.bf16.mxu0 %v5555_v8  ;;  %2967 = vmatprep.subr.bf16.mxu1 %v5558_v33  ;;  %v8469_v63 = vld [vmem:[#allocation6_spill] sm:$0xff] }
 0x111   :  { %v689_v52 = vadd.f32 %v688_v17, %v687_v30  ;;  %v7112_v25 = vsel %vm1304_vm7, %v1288_v34, %v1318_v2  ;;  %v845_v20 = vpack.c.bf16 %v792_v31, %v792_v31  ;;  %v1249_v13 = vunpack.c.l.b16 %v833_v27  ;;  %v8465_v30 = vld [vmem:[#allocation11_spill] sm:$0xff]  ;;  %v8467_v17 = vld [vmem:[#allocation4_spill] sm:$0xff]  ;;  %v8471_v48 = vld [vmem:[#allocation10_spill] sm:$0xff] }
 0x112   :  { %v729_v47 = vadd.f32 %v728_v32, %v727_v41  ;;  %v721_v57 = vrot.slane %v7056_v5, 2  ;;  %v851_v61 = vpack.c.bf16 %v799_v49, %v799_v49  ;;  %v857_v16 = vpack.c.bf16 %v806_v39, %v806_v39  ;;  %v5567_v34 = vld [vmem:[%s8432_s2 + $0x454] ss:$24 sps:$4 sm:$0xff]  }
 0x113   :  { %v820_v36 = vmul.f32 %v6923_v7, %v689_v52  ;;  %v863_v50 = vpack.c.bf16 %v813_v9, %v813_v9  ;;  %v1255_v38 = vunpack.c.l.b16 %v839_v40  ;;  %v1261_v15 = vunpack.c.l.b16 %v845_v20  ;;  %2845 = vmatpush1.bf16.msra.mxu0 %v5553_v59  ;;  %2968 = vmatpush1.bf16.msra.mxu1 %v5556_v0  ;;  %v5576_v52 = vld [vmem:[%s8432_s2 + $0x48c] ss:$24 sps:$4 sm:$0xff]  }
 0x114   :  { %v730_v4 = vrot.slane %v729_v47, 1  ;;  %v1267_v45 = vunpack.c.l.b16 %v851_v61  ;;  %v1273_v60 = vunpack.c.l.b16 %v857_v16  ;;  %v8466_v18 = vrot.slane %v8465_v30, 1  ;;  %2846 = vmatprep.subr.bf16.mxu0 %v5561_v1  ;;  %2969 = vmatprep.subr.bf16.mxu1 %v5564_v12  ;;  %v5582_v61 = vld [vmem:[%s8432_s2 + $0x4bc] ss:$24 sps:$4 sm:$0xff]  }
 0x115   :  { %v869_v44 = vpack.c.bf16 %v820_v36, %v820_v36  ;;  %v1279_v58 = vunpack.c.l.b16 %v863_v50  ;;  %v1334_v21 = vsel %vm1292_vm1, %v1255_v38, %v1249_v13  ;;  %v682_v55 = vadd.f32 %v681_v23, %v6861_v28  ;;  %v5571_v36 = vld [vmem:[%s8432_s2 + $0x480] ss:$24 sps:$4 sm:$0xff]  }
 0x116   :  { %v731_v22 = vadd.f32 %v730_v4, %v729_v47  ;;  %v640_v11 = vadd.f32 %v8466_v18, %v8465_v30  ;;  %v1335_v33 = vsel %vm1294_vm2, %v1261_v15, %v1334_v21  ;;  %v722_v37 = vadd.f32 %v721_v57, %v7056_v5  ;;  %v5565_v5 = vld [vmem:[%s8432_s2 + $0x450] ss:$24 sps:$4 sm:$0xff]   ;;  %v5579_v4 = vld [vmem:[%s8432_s2 + $0x4b4] ss:$24 sps:$4 sm:$0xff]   ;;  %v5585_v18 = vld [vmem:[%s8432_s2 + $0x4e4] ss:$24 sps:$4 sm:$0xff]  }
 0x117   :  { %v1285_v41 = vunpack.c.l.b16 %v869_v44  ;;  %v777_v10 = vmul.f32 %v6867_v53, %v8467_v17  ;;  %v1336_v51 = vsel %vm1296_vm3, %v1267_v45, %v1335_v33  ;;  %v784_v31 = vmul.f32 %v6875_v26, %v8468_v42  ;;  %2847 = vmatpush1.bf16.msra.mxu0 %v5559_v19  ;;  %2970 = vmatpush1.bf16.msra.mxu1 %v5562_v43  ;;  %v5568_v53 = vld [vmem:[%s8432_s2 + $0x458] ss:$24 sps:$4 sm:$0xff]   ;;  %v5591_v33 = vld [vmem:[%s8432_s2 + $0x514] ss:$24 sps:$4 sm:$0xff]   ;;  %v5597_v42 = vld [vmem:[%s8432_s2 + $0x544] ss:$24 sps:$4 sm:$0xff]  }
 0x118   :  { %v827_v8 = vmul.f32 %v6919_v14, %v731_v22  ;;  %v791_v32 = vmul.f32 %v6906_v62, %v8469_v63  ;;  %v798_v28 = vmul.f32 %v6899_v54, %v8470_v56  ;;  %v1337_v39 = vsel %vm1298_vm4, %v1273_v60, %v1336_v51  ;;  %2848 = vmatprep.subr.bf16.mxu0 %v5567_v34  ;;  %v5573_v54 = vld [vmem:[%s8432_s2 + $0x484] ss:$24 sps:$4 sm:$0xff]   ;;  %v5577_v22 = vld [vmem:[%s8432_s2 + $0x4b0] ss:$24 sps:$4 sm:$0xff]   ;;  %v5583_v21 = vld [vmem:[%s8432_s2 + $0x4e0] ss:$24 sps:$4 sm:$0xff]  }
 0x119   :  { %v723_v26 = vrot.slane %v722_v37, 1  ;;  %v805_v62 = vmul.f32 %v6915_v24, %v8471_v48  ;;  %2971 = vmatprep.subr.bf16.mxu1 %v5570_v6  ;;  %v1338_v9 = vsel %vm1300_vm5, %v1279_v58, %v1337_v39  ;;  %v812_v27 = vmul.f32 %v6909_v35, %v640_v11  ;;  %v5574_v35 = vld [vmem:[%s8432_s2 + $0x488] ss:$24 sps:$4 sm:$0xff]   ;;  %v5580_v45 = vld [vmem:[%s8432_s2 + $0x4b8] ss:$24 sps:$4 sm:$0xff]  }
 0x11a   :  { %v875_v49 = vpack.c.bf16 %v827_v8, %v827_v8  ;;  %v819_v59 = vmul.f32 %v6923_v7, %v682_v55  ;;  %v1339_v2 = vsel %vm1302_vm6, %v1285_v41, %v1338_v9  ;;  %v832_v47 = vpack.c.bf16 %v777_v10, %v777_v10  ;;  %v5588_v11 = vld [vmem:[%s8432_s2 + $0x4ec] ss:$24 sps:$4 sm:$0xff]   ;;  %v5586_v55 = vld [vmem:[%s8432_s2 + $0x4e8] ss:$24 sps:$4 sm:$0xff]   ;;  %v5592_v51 = vld [vmem:[%s8432_s2 + $0x518] ss:$24 sps:$4 sm:$0xff]  }
 0x11b   :  { %v724_v24 = vadd.f32 %v723_v26, %v722_v37  ;;  %v838_v40 = vpack.c.bf16 %v784_v31, %v784_v31  ;;  %v844_v23 = vpack.c.bf16 %v791_v32, %v791_v32  ;;  %v850_v1 = vpack.c.bf16 %v798_v28, %v798_v28  ;;  %2849 = vmatpush1.bf16.msra.mxu0 %v5565_v5  ;;  %v5594_v37 = vld [vmem:[%s8432_s2 + $0x51c] ss:$24 sps:$4 sm:$0xff]   ;;  %v5589_v10 = vld [vmem:[%s8432_s2 + $0x510] ss:$24 sps:$4 sm:$0xff]   ;;  %v5600_v31 = vld [vmem:[%s8432_s2 + $0x54c] ss:$24 sps:$4 sm:$0xff]  }
 0x11c   :  { %v1291_v0 = vunpack.c.l.b16 %v875_v49  ;;  %v856_v12 = vpack.c.bf16 %v805_v62, %v805_v62  ;;  %2972 = vmatpush1.bf16.msra.mxu1 %v5568_v53  ;;  %v862_v13 = vpack.c.bf16 %v812_v27, %v812_v27  ;;  %v1248_v57 = vunpack.c.l.b16 %v832_v47  ;;  %2850 = vmatprep.subr.bf16.mxu0 %v5573_v54  ;;  %v5595_v63 = vld [vmem:[%s8432_s2 + $0x540] ss:$24 sps:$4 sm:$0xff]   ;;  %v5603_v56 = vld [vmem:[%s8432_s2 + $0x574] ss:$24 sps:$4 sm:$0xff]   ;;  %v5601_v5 = vld [vmem:[%s8432_s2 + $0x570] ss:$24 sps:$4 sm:$0xff]  }
 0x11d   :  { %v826_v20 = vmul.f32 %v6919_v14, %v724_v24  ;;  %2973 = vmatprep.subr.bf16.mxu1 %v5576_v52  ;;  %v868_v16 = vpack.c.bf16 %v819_v59, %v819_v59  ;;  %v1254_v50 = vunpack.c.l.b16 %v838_v40  ;;  %v1260_v44 = vunpack.c.l.b16 %v844_v23  ;;  %v5598_v32 = vld [vmem:[%s8432_s2 + $0x548] ss:$24 sps:$4 sm:$0xff]   ;;  %v5606_v28 = vld [vmem:[%s8432_s2 + $0x57c] ss:$24 sps:$4 sm:$0xff]   ;;  %v5604_v53 = vld [vmem:[%s8432_s2 + $0x578] ss:$24 sps:$4 sm:$0xff]  }
 0x11e   :  { %v7171_v7 = vsel %vm1304_vm7, %v1291_v0, %v1339_v2  ;;  %v1266_v15 = vunpack.c.l.b16 %v850_v1  ;;  %v1272_v19 = vunpack.c.l.b16 %v856_v12  ;;  %v1278_v43 = vunpack.c.l.b16 %v862_v13  ;;  %v5609_v49 = vld [vmem:[%s8432_s2 + $0x5a4] ss:$24 sps:$4 sm:$0xff]   ;;  %v5607_v26 = vld [vmem:[%s8432_s2 + $0x5a0] ss:$24 sps:$4 sm:$0xff]   ;;  %v5615_v62 = vld [vmem:[%s8432_s2 + $0x5d4] ss:$24 sps:$4 sm:$0xff]  }
 0x11f   :  { %v874_v38 = vpack.c.bf16 %v826_v20, %v826_v20  ;;  %v1327_v14 = vsel %vm1292_vm1, %v1254_v50, %v1248_v57  ;;  %2851 = vmatpush1.bf16.msra.mxu0 %v5571_v36  ;;  %v1284_v60 = vunpack.c.l.b16 %v868_v16  ;;  %v5612_v39 = vld [vmem:[%s8432_s2 + $0x5ac] ss:$24 sps:$4 sm:$0xff]   ;;  %v5610_v48 = vld [vmem:[%s8432_s2 + $0x5a8] ss:$24 sps:$4 sm:$0xff]   ;;  %v5618_v54 = vld [vmem:[%s8432_s2 + $0x5dc] ss:$24 sps:$4 sm:$0xff]   ;;  %v7278_v2 = vpack.c.b16 %v7112_v25, %v7112_v25 }
 0x120   :  { %2974 = vmatpush1.bf16.msra.mxu1 %v5574_v35  ;;  %v1328_v30 = vsel %vm1294_vm2, %v1260_v44, %v1327_v14  ;;  %2852 = vmatprep.subr.bf16.mxu0 %v5579_v4  ;;  %v5613_v52 = vld [vmem:[%s8432_s2 + $0x5d0] ss:$24 sps:$4 sm:$0xff]   ;;  %v5621_v27 = vld [vmem:[%s8432_s2 + $0x604] ss:$24 sps:$4 sm:$0xff]   ;;  %v5619_v0 = vld [vmem:[%s8432_s2 + $0x600] ss:$24 sps:$4 sm:$0xff]   ;;  %v7285_v47 = vpack.c.b16 %v7171_v7, %v7171_v7 }
 0x121   :  { %2975 = vmatprep.subr.bf16.mxu1 %v5582_v61  ;;  %v1290_v34 = vunpack.c.l.b16 %v874_v38  ;;  %v1329_v6 = vsel %vm1296_vm3, %v1266_v15, %v1328_v30  ;;  %v5616_v9 = vld [vmem:[%s8432_s2 + $0x5d8] ss:$24 sps:$4 sm:$0xff]   ;;  %v5624_v59 = vld [vmem:[%s8432_s2 + $0x60c] ss:$24 sps:$4 sm:$0xff]   ;;  %v5622_v24 = vld [vmem:[%s8432_s2 + $0x608] ss:$24 sps:$4 sm:$0xff]  }
 0x122   :  { %v1330_v58 = vsel %vm1298_vm4, %v1272_v19, %v1329_v6  ;;  %v5627_v40 = vld [vmem:[%s8432_s2 + $0x634] ss:$24 sps:$4 sm:$0xff]   ;;  %v5625_v25 = vld [vmem:[%s8432_s2 + $0x630] ss:$24 sps:$4 sm:$0xff]   ;;  %v5633_v12 = vld [vmem:[%s8432_s2 + $0x664] ss:$24 sps:$4 sm:$0xff]  }
 0x123   :  { %v1331_v41 = vsel %vm1300_vm5, %v1278_v43, %v1330_v58  ;;  %2853 = vmatpush1.bf16.msra.mxu0 %v5577_v22  ;;  %v5630_v23 = vld [vmem:[%s8432_s2 + $0x63c] ss:$24 sps:$4 sm:$0xff]   ;;  %v5628_v1 = vld [vmem:[%s8432_s2 + $0x638] ss:$24 sps:$4 sm:$0xff]   ;;  %v5636_v36 = vld [vmem:[%s8432_s2 + $0x66c] ss:$24 sps:$4 sm:$0xff]  }
 0x124   :  { %2976 = vmatpush1.bf16.msra.mxu1 %v5580_v45  ;;  %v1332_v8 = vsel %vm1302_vm6, %v1284_v60, %v1331_v41  ;;  %2854 = vmatprep.subr.bf16.mxu0 %v5585_v18  ;;  %v5631_v35 = vld [vmem:[%s8432_s2 + $0x660] ss:$24 sps:$4 sm:$0xff]   ;;  %v5639_v20 = vld [vmem:[%s8432_s2 + $0x694] ss:$24 sps:$4 sm:$0xff]   ;;  %v5637_v57 = vld [vmem:[%s8432_s2 + $0x690] ss:$24 sps:$4 sm:$0xff]  }
 0x125   :  { %2977 = vmatprep.subr.bf16.mxu1 %v5588_v11  ;;  %v7211_v17 = vsel %vm1304_vm7, %v1290_v34, %v1332_v8  ;;  %v5634_v7 = vld [vmem:[%s8432_s2 + $0x668] ss:$24 sps:$4 sm:$0xff]   ;;  %v5642_v13 = vld [vmem:[%s8432_s2 + $0x69c] ss:$24 sps:$4 sm:$0xff]   ;;  %v5640_v4 = vld [vmem:[%s8432_s2 + $0x698] ss:$24 sps:$4 sm:$0xff]  }
 0x126   :  { %v5645_v61 = vld [vmem:[%s8432_s2 + $0x6c4] ss:$24 sps:$4 sm:$0xff]   ;;  %v5643_v50 = vld [vmem:[%s8432_s2 + $0x6c0] ss:$24 sps:$4 sm:$0xff]   ;;  %v5651_v38 = vld [vmem:[%s8432_s2 + $0x6f4] ss:$24 sps:$4 sm:$0xff]  }
 0x127   :  { %2855 = vmatpush1.bf16.msra.mxu0 %v5583_v21  ;;  %v5648_v16 = vld [vmem:[%s8432_s2 + $0x6cc] ss:$24 sps:$4 sm:$0xff]   ;;  %v5646_v44 = vld [vmem:[%s8432_s2 + $0x6c8] ss:$24 sps:$4 sm:$0xff]   ;;  %v5654_v15 = vld [vmem:[%s8432_s2 + $0x6fc] ss:$24 sps:$4 sm:$0xff]  }
 0x128   :  { %2978 = vmatpush1.bf16.msra.mxu1 %v5586_v55  ;;  %2856 = vmatprep.subr.bf16.mxu0 %v5591_v33  ;;  %v5649_v19 = vld [vmem:[%s8432_s2 + $0x6f0] ss:$24 sps:$4 sm:$0xff]   ;;  %v5657_v14 = vld [vmem:[%s8432_s2 + $0x724] ss:$24 sps:$4 sm:$0xff]   ;;  %v5655_v45 = vld [vmem:[%s8432_s2 + $0x720] ss:$24 sps:$4 sm:$0xff]  }
 0x129   :  { %2979 = vmatprep.subr.bf16.mxu1 %v5594_v37  ;;  %v5652_v43 = vld [vmem:[%s8432_s2 + $0x6f8] ss:$24 sps:$4 sm:$0xff]   ;;  %v5660_v22 = vld [vmem:[%s8432_s2 + $0x72c] ss:$24 sps:$4 sm:$0xff]   ;;  %v5658_v60 = vld [vmem:[%s8432_s2 + $0x728] ss:$24 sps:$4 sm:$0xff]  }
 0x12a   :  { %v5663_v30 = vld [vmem:[%s8432_s2 + $0x754] ss:$24 sps:$4 sm:$0xff]   ;;  %v5661_v11 = vld [vmem:[%s8432_s2 + $0x750] ss:$24 sps:$4 sm:$0xff]   ;;  %v5669_v6 = vld [vmem:[%s8432_s2 + $0x784] ss:$24 sps:$4 sm:$0xff]  }
 0x12b   :  { %2857 = vmatpush1.bf16.msra.mxu0 %v5589_v10  ;;  %v5666_v18 = vld [vmem:[%s8432_s2 + $0x75c] ss:$24 sps:$4 sm:$0xff]   ;;  %v5664_v34 = vld [vmem:[%s8432_s2 + $0x758] ss:$24 sps:$4 sm:$0xff]   ;;  %v5672_v58 = vld [vmem:[%s8432_s2 + $0x78c] ss:$24 sps:$4 sm:$0xff]  }
 0x12c   :  { %2980 = vmatpush1.bf16.msra.mxu1 %v5592_v51  ;;  %2858 = vmatprep.subr.bf16.mxu0 %v5597_v42  ;;  %v5667_v41 = vld [vmem:[%s8432_s2 + $0x780] ss:$24 sps:$4 sm:$0xff]   ;;  %v5675_v55 = vld [vmem:[%s8432_s2 + $0x7b4] ss:$24 sps:$4 sm:$0xff]   ;;  %v5673_v33 = vld [vmem:[%s8432_s2 + $0x7b0] ss:$24 sps:$4 sm:$0xff]  }
 0x12d   :  { %2981 = vmatprep.subr.bf16.mxu1 %v5600_v31  ;;  %v5670_v21 = vld [vmem:[%s8432_s2 + $0x788] ss:$24 sps:$4 sm:$0xff]   ;;  %v5678_v8 = vld [vmem:[%s8432_s2 + $0x7bc] ss:$24 sps:$4 sm:$0xff]   ;;  %v5676_v37 = vld [vmem:[%s8432_s2 + $0x7b8] ss:$24 sps:$4 sm:$0xff]  }
 0x12e   :  { %v5681_v10 = vld [vmem:[%s8432_s2 + $0x7e4] ss:$24 sps:$4 sm:$0xff]   ;;  %v5679_v42 = vld [vmem:[%s8432_s2 + $0x7e0] ss:$24 sps:$4 sm:$0xff]  }
 0x12f   :  { %2859 = vmatpush1.bf16.msra.mxu0 %v5595_v63  ;;  %v5684_v51 = vld [vmem:[%s8432_s2 + $0x7ec] ss:$24 sps:$4 sm:$0xff]   ;;  %v5682_v31 = vld [vmem:[%s8432_s2 + $0x7e8] ss:$24 sps:$4 sm:$0xff]  }
 0x130   :  { %2982 = vmatpush1.bf16.msra.mxu1 %v5598_v32  ;;  %2860 = vmatprep.subr.bf16.mxu0 %v5603_v56  ;;  %v5687_v63 = vld [vmem:[%s8432_s2 + $0x814] ss:$24 sps:$4 sm:$0xff]   ;;  %v5685_v56 = vld [vmem:[%s8432_s2 + $0x810] ss:$24 sps:$4 sm:$0xff]  }
 0x131   :  { %2983 = vmatprep.subr.bf16.mxu1 %v5606_v28  ;;  %v5690_v32 = vld [vmem:[%s8432_s2 + $0x81c] ss:$24 sps:$4 sm:$0xff]   ;;  %v5688_v28 = vld [vmem:[%s8432_s2 + $0x818] ss:$24 sps:$4 sm:$0xff]  }
 0x133   :  { %2861 = vmatpush1.bf16.msra.mxu0 %v5601_v5  ;;  %v5693_v5 = vld [vmem:[%s8432_s2 + $0x844] ss:$24 sps:$4 sm:$0xff]  }
 0x134   :  { %2984 = vmatpush1.bf16.msra.mxu1 %v5604_v53  ;;  %2862 = vmatprep.subr.bf16.mxu0 %v5609_v49  ;;  %v5696_v53 = vld [vmem:[%s8432_s2 + $0x84c] ss:$24 sps:$4 sm:$0xff]   ;;  %v5691_v49 = vld [vmem:[%s8432_s2 + $0x840] ss:$24 sps:$4 sm:$0xff]  }
 0x135   :  { %2985 = vmatprep.subr.bf16.mxu1 %v5612_v39  ;;  %v5694_v39 = vld [vmem:[%s8432_s2 + $0x848] ss:$24 sps:$4 sm:$0xff]  }
 0x137   :  { %2863 = vmatpush1.bf16.msra.mxu0 %v5607_v26  ;;  %v5699_v26 = vld [vmem:[%s8432_s2 + $0x874] ss:$24 sps:$4 sm:$0xff]  }
 0x138   :  { %2986 = vmatpush1.bf16.msra.mxu1 %v5610_v48  ;;  %2864 = vmatprep.subr.bf16.mxu0 %v5615_v62  ;;  %v5702_v48 = vld [vmem:[%s8432_s2 + $0x87c] ss:$24 sps:$4 sm:$0xff]   ;;  %v5697_v62 = vld [vmem:[%s8432_s2 + $0x870] ss:$24 sps:$4 sm:$0xff]  }
 0x139   :  { %2987 = vmatprep.subr.bf16.mxu1 %v5618_v54  ;;  %v5700_v54 = vld [vmem:[%s8432_s2 + $0x878] ss:$24 sps:$4 sm:$0xff]  }
 0x13b   :  { %2865 = vmatpush1.bf16.msra.mxu0 %v5613_v52  ;;  %v5705_v52 = vld [vmem:[%s8432_s2 + $0x8a4] ss:$24 sps:$4 sm:$0xff]  }
 0x13c   :  { %2988 = vmatpush1.bf16.msra.mxu1 %v5616_v9  ;;  %2875 = vmatprep.subr.bf16.mxu0 %v5621_v27  ;;  %v5708_v9 = vld [vmem:[%s8432_s2 + $0x8ac] ss:$24 sps:$4 sm:$0xff]   ;;  %v5703_v27 = vld [vmem:[%s8432_s2 + $0x8a0] ss:$24 sps:$4 sm:$0xff]  }
 0x13d   :  { %2998 = vmatprep.subr.bf16.mxu1 %v5624_v59  ;;  %v5706_v59 = vld [vmem:[%s8432_s2 + $0x8a8] ss:$24 sps:$4 sm:$0xff]  }
 0x13e   :  { %2867 = vmatmul.mubr.bf16.vlgmr.msra.gmra.mrb[0].mxu0 %v7278_v2 }
 0x13f   :  { %2990 = vmatmul.mubr.bf16.vlgmr.msra.gmra.mrb[0].mxu1 %v7278_v2  ;;  %2876 = vmatpush1.bf16.msra.mxu0 %v5619_v0  ;;  %v5711_v0 = vld [vmem:[%s8432_s2 + $0x8d4] ss:$24 sps:$4 sm:$0xff]  }
 0x140   :  { %2907 = vmatprep.mubr.bf16.mxu0 %v7285_v47  ;;  %2999 = vmatpush1.bf16.msra.mxu1 %v5622_v24  ;;  %v5714_v24 = vld [vmem:[%s8432_s2 + $0x8dc] ss:$24 sps:$4 sm:$0xff]  }
 0x141   :  { %3030 = vmatprep.mubr.bf16.mxu1 %v7285_v47  ;;  %2877 = vmatprep.subr.bf16.mxu0 %v5627_v40  ;;  %v5709_v40 = vld [vmem:[%s8432_s2 + $0x8d0] ss:$24 sps:$4 sm:$0xff]  }
 0x142   :  { %3000 = vmatprep.subr.bf16.mxu1 %v5630_v23  ;;  %v5712_v23 = vld [vmem:[%s8432_s2 + $0x8d8] ss:$24 sps:$4 sm:$0xff]  }
 0x143   :  { %2878 = vmatpush1.bf16.msra.mxu0 %v5625_v25  ;;  %v5717_v25 = vld [vmem:[%s8432_s2 + $0x14] ss:$24 sps:$4 sm:$0xff]  }
 0x144   :  { %3001 = vmatpush1.bf16.msra.mxu1 %v5628_v1  ;;  %2879 = vmatprep.subr.bf16.mxu0 %v5633_v12  ;;  %v5715_v1 = vld [vmem:[%s8432_s2 + $0x10] ss:$24 sps:$4 sm:$0xff]   ;;  %v7479_v12 = vpack.c.b16 %v7211_v17, %v7211_v17  ;;  %v5723_v17 = vld [vmem:[%s8432_s2 + $0x74] ss:$24 sps:$4 sm:$0xff]  }
 0x145   :  { %3002 = vmatprep.subr.bf16.mxu1 %v5636_v36  ;;  %v5720_v36 = vld [vmem:[%s8432_s2 + $0x44] ss:$24 sps:$4 sm:$0xff]  }
 0x147   :  { %2880 = vmatpush1.bf16.msra.mxu0 %v5631_v35  ;;  %v5718_v35 = vld [vmem:[%s8432_s2 + $0x40] ss:$24 sps:$4 sm:$0xff]  }
 0x148   :  { %3003 = vmatpush1.bf16.msra.mxu1 %v5634_v7  ;;  %2881 = vmatprep.subr.bf16.mxu0 %v5639_v20  ;;  %v5721_v7 = vld [vmem:[%s8432_s2 + $0x70] ss:$24 sps:$4 sm:$0xff]   ;;  %v5726_v20 = vld [vmem:[%s8432_s2 + $0xa4] ss:$24 sps:$4 sm:$0xff]  }
 0x149   :  { %3004 = vmatprep.subr.bf16.mxu1 %v5642_v13  ;;  %v5729_v13 = vld [vmem:[%s8432_s2 + $0xd4] ss:$24 sps:$4 sm:$0xff]  }
 0x14b   :  { %2882 = vmatpush1.bf16.msra.mxu0 %v5637_v57  ;;  %v5727_v57 = vld [vmem:[%s8432_s2 + $0xd0] ss:$24 sps:$4 sm:$0xff]  }
 0x14c   :  { %3005 = vmatpush1.bf16.msra.mxu1 %v5640_v4  ;;  %2883 = vmatprep.subr.bf16.mxu0 %v5645_v61  ;;  %v5732_v4 = vld [vmem:[%s8432_s2 + $0x104] ss:$24 sps:$4 sm:$0xff]   ;;  %v5730_v61 = vld [vmem:[%s8432_s2 + $0x100] ss:$24 sps:$4 sm:$0xff]  }
 0x14d   :  { %3006 = vmatprep.subr.bf16.mxu1 %v5648_v16  ;;  %v5735_v16 = vld [vmem:[%s8432_s2 + $0x134] ss:$24 sps:$4 sm:$0xff]  }
 0x14f   :  { %2884 = vmatpush1.bf16.msra.mxu0 %v5643_v50  ;;  %v5733_v50 = vld [vmem:[%s8432_s2 + $0x130] ss:$24 sps:$4 sm:$0xff]  }
 0x150   :  { %3007 = vmatpush1.bf16.msra.mxu1 %v5646_v44  ;;  %2885 = vmatprep.subr.bf16.mxu0 %v5651_v38  ;;  %v5738_v44 = vld [vmem:[%s8432_s2 + $0x164] ss:$24 sps:$4 sm:$0xff]   ;;  %v5736_v38 = vld [vmem:[%s8432_s2 + $0x160] ss:$24 sps:$4 sm:$0xff]  }
 0x151   :  { %3008 = vmatprep.subr.bf16.mxu1 %v5654_v15  ;;  %v5741_v15 = vld [vmem:[%s8432_s2 + $0x194] ss:$24 sps:$4 sm:$0xff]  }
 0x153   :  { %2886 = vmatpush1.bf16.msra.mxu0 %v5649_v19  ;;  %v5739_v19 = vld [vmem:[%s8432_s2 + $0x190] ss:$24 sps:$4 sm:$0xff]  }
 0x154   :  { %3009 = vmatpush1.bf16.msra.mxu1 %v5652_v43  ;;  %2887 = vmatprep.subr.bf16.mxu0 %v5657_v14  ;;  %v5744_v43 = vld [vmem:[%s8432_s2 + $0x1c4] ss:$24 sps:$4 sm:$0xff]   ;;  %v5742_v14 = vld [vmem:[%s8432_s2 + $0x1c0] ss:$24 sps:$4 sm:$0xff]  }
 0x155   :  { %3010 = vmatprep.subr.bf16.mxu1 %v5660_v22  ;;  %v5747_v22 = vld [vmem:[%s8432_s2 + $0x1f4] ss:$24 sps:$4 sm:$0xff]  }
 0x157   :  { %2888 = vmatpush1.bf16.msra.mxu0 %v5655_v45  ;;  %v5745_v45 = vld [vmem:[%s8432_s2 + $0x1f0] ss:$24 sps:$4 sm:$0xff]  }
 0x158   :  { %3011 = vmatpush1.bf16.msra.mxu1 %v5658_v60  ;;  %2889 = vmatprep.subr.bf16.mxu0 %v5663_v30  ;;  %v5750_v60 = vld [vmem:[%s8432_s2 + $0x224] ss:$24 sps:$4 sm:$0xff]   ;;  %v5748_v30 = vld [vmem:[%s8432_s2 + $0x220] ss:$24 sps:$4 sm:$0xff]  }
 0x159   :  { %3012 = vmatprep.subr.bf16.mxu1 %v5666_v18  ;;  %v5753_v18 = vld [vmem:[%s8432_s2 + $0x254] ss:$24 sps:$4 sm:$0xff]  }
 0x15b   :  { %2890 = vmatpush1.bf16.msra.mxu0 %v5661_v11  ;;  %v5751_v11 = vld [vmem:[%s8432_s2 + $0x250] ss:$24 sps:$4 sm:$0xff]  }
 0x15c   :  { %3013 = vmatpush1.bf16.msra.mxu1 %v5664_v34  ;;  %2891 = vmatprep.subr.bf16.mxu0 %v5669_v6  ;;  %v5756_v34 = vld [vmem:[%s8432_s2 + $0x284] ss:$24 sps:$4 sm:$0xff]   ;;  %v5754_v6 = vld [vmem:[%s8432_s2 + $0x280] ss:$24 sps:$4 sm:$0xff]  }
 0x15d   :  { %3014 = vmatprep.subr.bf16.mxu1 %v5672_v58  ;;  %v5759_v58 = vld [vmem:[%s8432_s2 + $0x2b4] ss:$24 sps:$4 sm:$0xff]  }
 0x15f   :  { %2892 = vmatpush1.bf16.msra.mxu0 %v5667_v41  ;;  %v5757_v41 = vld [vmem:[%s8432_s2 + $0x2b0] ss:$24 sps:$4 sm:$0xff]  }
 0x160   :  { %3015 = vmatpush1.bf16.msra.mxu1 %v5670_v21  ;;  %2893 = vmatprep.subr.bf16.mxu0 %v5675_v55  ;;  %v5762_v21 = vld [vmem:[%s8432_s2 + $0x2e4] ss:$24 sps:$4 sm:$0xff]   ;;  %v5760_v55 = vld [vmem:[%s8432_s2 + $0x2e0] ss:$24 sps:$4 sm:$0xff]  }
 0x161   :  { %3016 = vmatprep.subr.bf16.mxu1 %v5678_v8  ;;  %v5765_v8 = vld [vmem:[%s8432_s2 + $0x314] ss:$24 sps:$4 sm:$0xff]  }
 0x163   :  { %2894 = vmatpush1.bf16.msra.mxu0 %v5673_v33  ;;  %v5763_v33 = vld [vmem:[%s8432_s2 + $0x310] ss:$24 sps:$4 sm:$0xff]  }
 0x164   :  { %3017 = vmatpush1.bf16.msra.mxu1 %v5676_v37  ;;  %2895 = vmatprep.subr.bf16.mxu0 %v5681_v10  ;;  %v5768_v37 = vld [vmem:[%s8432_s2 + $0x344] ss:$24 sps:$4 sm:$0xff]   ;;  %v5766_v10 = vld [vmem:[%s8432_s2 + $0x340] ss:$24 sps:$4 sm:$0xff]  }
 0x165   :  { %3018 = vmatprep.subr.bf16.mxu1 %v5684_v51  ;;  %v5771_v51 = vld [vmem:[%s8432_s2 + $0x374] ss:$24 sps:$4 sm:$0xff]  }
 0x167   :  { %2896 = vmatpush1.bf16.msra.mxu0 %v5679_v42  ;;  %v5769_v42 = vld [vmem:[%s8432_s2 + $0x370] ss:$24 sps:$4 sm:$0xff]  }
 0x168   :  { %3019 = vmatpush1.bf16.msra.mxu1 %v5682_v31  ;;  %2897 = vmatprep.subr.bf16.mxu0 %v5687_v63  ;;  %v5777_v31 = vld [vmem:[%s8432_s2 + $0x3d4] ss:$24 sps:$4 sm:$0xff]   ;;  %v5775_v63 = vld [vmem:[%s8432_s2 + $0x3d0] ss:$24 sps:$4 sm:$0xff]  }
 0x169   :  { %3020 = vmatprep.subr.bf16.mxu1 %v5690_v32  ;;  %v5780_v32 = vld [vmem:[%s8432_s2 + $0x404] ss:$24 sps:$4 sm:$0xff]  }
 0x16b   :  { %2898 = vmatpush1.bf16.msra.mxu0 %v5685_v56  ;;  %v5778_v56 = vld [vmem:[%s8432_s2 + $0x400] ss:$24 sps:$4 sm:$0xff]  }
 0x16c   :  { %3021 = vmatpush1.bf16.msra.mxu1 %v5688_v28  ;;  %2899 = vmatprep.subr.bf16.mxu0 %v5693_v5  ;;  %v5783_v28 = vld [vmem:[%s8432_s2 + $0x434] ss:$24 sps:$4 sm:$0xff]   ;;  %v5781_v5 = vld [vmem:[%s8432_s2 + $0x430] ss:$24 sps:$4 sm:$0xff]  }
 0x16d   :  { %3022 = vmatprep.subr.bf16.mxu1 %v5696_v53  ;;  %v5786_v53 = vld [vmem:[%s8432_s2 + $0x464] ss:$24 sps:$4 sm:$0xff]  }
 0x16f   :  { %2900 = vmatpush1.bf16.msra.mxu0 %v5691_v49  ;;  %v5784_v49 = vld [vmem:[%s8432_s2 + $0x460] ss:$24 sps:$4 sm:$0xff]  }
 0x170   :  { %3023 = vmatpush1.bf16.msra.mxu1 %v5694_v39  ;;  %2901 = vmatprep.subr.bf16.mxu0 %v5699_v26  ;;  %v5789_v39 = vld [vmem:[%s8432_s2 + $0x494] ss:$24 sps:$4 sm:$0xff]   ;;  %v5787_v26 = vld [vmem:[%s8432_s2 + $0x490] ss:$24 sps:$4 sm:$0xff]  }
 0x171   :  { %3024 = vmatprep.subr.bf16.mxu1 %v5702_v48  ;;  %v5792_v48 = vld [vmem:[%s8432_s2 + $0x4c4] ss:$24 sps:$4 sm:$0xff]  }
 0x173   :  { %2902 = vmatpush1.bf16.msra.mxu0 %v5697_v62  ;;  %v5790_v62 = vld [vmem:[%s8432_s2 + $0x4c0] ss:$24 sps:$4 sm:$0xff]  }
 0x174   :  { %3025 = vmatpush1.bf16.msra.mxu1 %v5700_v54  ;;  %2903 = vmatprep.subr.bf16.mxu0 %v5705_v52  ;;  %v5795_v54 = vld [vmem:[%s8432_s2 + $0x4f4] ss:$24 sps:$4 sm:$0xff]   ;;  %v5793_v52 = vld [vmem:[%s8432_s2 + $0x4f0] ss:$24 sps:$4 sm:$0xff]  }
 0x175   :  { %3026 = vmatprep.subr.bf16.mxu1 %v5708_v9  ;;  %v5798_v9 = vld [vmem:[%s8432_s2 + $0x524] ss:$24 sps:$4 sm:$0xff]  }
 0x177   :  { %2904 = vmatpush1.bf16.msra.mxu0 %v5703_v27  ;;  %v5796_v27 = vld [vmem:[%s8432_s2 + $0x520] ss:$24 sps:$4 sm:$0xff]  }
 0x178   :  { %3027 = vmatpush1.bf16.msra.mxu1 %v5706_v59  ;;  %2905 = vmatprep.subr.bf16.mxu0 %v5711_v0  ;;  %v5801_v59 = vld [vmem:[%s8432_s2 + $0x554] ss:$24 sps:$4 sm:$0xff]   ;;  %v5799_v0 = vld [vmem:[%s8432_s2 + $0x550] ss:$24 sps:$4 sm:$0xff]  }
 0x179   :  { %3028 = vmatprep.subr.bf16.mxu1 %v5714_v24  ;;  %v5804_v24 = vld [vmem:[%s8432_s2 + $0x584] ss:$24 sps:$4 sm:$0xff]  }
 0x17b   :  { %2906 = vmatpush1.bf16.msra.mxu0 %v5709_v40  ;;  %v5802_v40 = vld [vmem:[%s8432_s2 + $0x580] ss:$24 sps:$4 sm:$0xff]  }
 0x17c   :  { %3029 = vmatpush1.bf16.msra.mxu1 %v5712_v23  ;;  %3039 = vmatprep.subr.bf16.mxu0 %v5717_v25  ;;  %v5807_v23 = vld [vmem:[%s8432_s2 + $0x5b4] ss:$24 sps:$4 sm:$0xff]   ;;  %v5805_v25 = vld [vmem:[%s8432_s2 + $0x5b0] ss:$24 sps:$4 sm:$0xff]  }
 0x17e   :  { %2908 = vmatmul.mubr.bf16.vlgmr.msra.gmra.mrb[0].mxu0 %v7479_v12 }
 0x17f   :  { %3031 = vmatmul.mubr.bf16.vlgmr.msra.gmra.mrb[0].mxu1 %v7479_v12  ;;  %3040 = vmatpush1.bf16.msra.mxu0 %v5715_v1  ;;  %v5810_v1 = vld [vmem:[%s8432_s2 + $0x5e4] ss:$24 sps:$4 sm:$0xff]  }
 0x180   :  { %3071 = vmatprep.mubr.bf16.mxu0 %v6941_v29  ;;  %3041 = vmatprep.subr.bf16.mxu0 %v5720_v36  ;;  %v5724_v29 = vld [vmem:[%s8432_s2 + $0xa0] ss:$24 sps:$4 sm:$0xff]  }
 0x181   :  { %v5808_v36 = vld [vmem:[%s8432_s2 + $0x5e0] ss:$24 sps:$4 sm:$0xff]  }
 0x183   :  { %3042 = vmatpush1.bf16.msra.mxu0 %v5718_v35  ;;  %v5813_v35 = vld [vmem:[%s8432_s2 + $0x614] ss:$24 sps:$4 sm:$0xff]  }
 0x184   :  { %3043 = vmatprep.subr.bf16.mxu0 %v5723_v17  ;;  %v5811_v17 = vld [vmem:[%s8432_s2 + $0x610] ss:$24 sps:$4 sm:$0xff]  }
 0x187   :  { %3044 = vmatpush1.bf16.msra.mxu0 %v5721_v7  ;;  %v5816_v7 = vld [vmem:[%s8432_s2 + $0x644] ss:$24 sps:$4 sm:$0xff]  }
 0x188   :  { %3045 = vmatprep.subr.bf16.mxu0 %v5726_v20  ;;  %v5814_v20 = vld [vmem:[%s8432_s2 + $0x640] ss:$24 sps:$4 sm:$0xff]  }
 0x18b   :  { %3046 = vmatpush1.bf16.msra.mxu0 %v5724_v29  ;;  %v5819_v29 = vld [vmem:[%s8432_s2 + $0x674] ss:$24 sps:$4 sm:$0xff]  }
 0x18c   :  { %3047 = vmatprep.subr.bf16.mxu0 %v5729_v13  ;;  %v5817_v13 = vld [vmem:[%s8432_s2 + $0x670] ss:$24 sps:$4 sm:$0xff]  }
 0x18f   :  { %3048 = vmatpush1.bf16.msra.mxu0 %v5727_v57  ;;  %v5825_v57 = vld [vmem:[%s8432_s2 + $0x6d4] ss:$24 sps:$4 sm:$0xff]  }
 0x190   :  { %3049 = vmatprep.subr.bf16.mxu0 %v5732_v4  ;;  %v5823_v4 = vld [vmem:[%s8432_s2 + $0x6d0] ss:$24 sps:$4 sm:$0xff]  }
 0x193   :  { %3050 = vmatpush1.bf16.msra.mxu0 %v5730_v61  ;;  %v5828_v61 = vld [vmem:[%s8432_s2 + $0x704] ss:$24 sps:$4 sm:$0xff]  }
 0x194   :  { %3051 = vmatprep.subr.bf16.mxu0 %v5735_v16  ;;  %v5826_v16 = vld [vmem:[%s8432_s2 + $0x700] ss:$24 sps:$4 sm:$0xff]  }
 0x197   :  { %3052 = vmatpush1.bf16.msra.mxu0 %v5733_v50  ;;  %v5831_v50 = vld [vmem:[%s8432_s2 + $0x734] ss:$24 sps:$4 sm:$0xff]  }
 0x198   :  { %3053 = vmatprep.subr.bf16.mxu0 %v5738_v44  ;;  %v5829_v44 = vld [vmem:[%s8432_s2 + $0x730] ss:$24 sps:$4 sm:$0xff]  }
 0x19b   :  { %3054 = vmatpush1.bf16.msra.mxu0 %v5736_v38  ;;  %v5834_v38 = vld [vmem:[%s8432_s2 + $0x764] ss:$24 sps:$4 sm:$0xff]  }
 0x19c   :  { %3055 = vmatprep.subr.bf16.mxu0 %v5741_v15  ;;  %v5832_v15 = vld [vmem:[%s8432_s2 + $0x760] ss:$24 sps:$4 sm:$0xff]  }
 0x19f   :  { %3056 = vmatpush1.bf16.msra.mxu0 %v5739_v19  ;;  %v5837_v19 = vld [vmem:[%s8432_s2 + $0x794] ss:$24 sps:$4 sm:$0xff]  }
 0x1a0   :  { %3057 = vmatprep.subr.bf16.mxu0 %v5744_v43  ;;  %v5835_v43 = vld [vmem:[%s8432_s2 + $0x790] ss:$24 sps:$4 sm:$0xff]  }
 0x1a3   :  { %3058 = vmatpush1.bf16.msra.mxu0 %v5742_v14  ;;  %v5840_v14 = vld [vmem:[%s8432_s2 + $0x7c4] ss:$24 sps:$4 sm:$0xff]  }
 0x1a4   :  { %3059 = vmatprep.subr.bf16.mxu0 %v5747_v22  ;;  %v5838_v22 = vld [vmem:[%s8432_s2 + $0x7c0] ss:$24 sps:$4 sm:$0xff]  }
 0x1a7   :  { %3060 = vmatpush1.bf16.msra.mxu0 %v5745_v45  ;;  %v5843_v45 = vld [vmem:[%s8432_s2 + $0x7f4] ss:$24 sps:$4 sm:$0xff]  }
 0x1a8   :  { %3061 = vmatprep.subr.bf16.mxu0 %v5750_v60  ;;  %v5841_v60 = vld [vmem:[%s8432_s2 + $0x7f0] ss:$24 sps:$4 sm:$0xff]  }
 0x1ab   :  { %3062 = vmatpush1.bf16.msra.mxu0 %v5748_v30  ;;  %v5846_v30 = vld [vmem:[%s8432_s2 + $0x824] ss:$24 sps:$4 sm:$0xff]  }
 0x1ac   :  { %3063 = vmatprep.subr.bf16.mxu0 %v5753_v18  ;;  %v5844_v18 = vld [vmem:[%s8432_s2 + $0x820] ss:$24 sps:$4 sm:$0xff]  }
 0x1af   :  { %3064 = vmatpush1.bf16.msra.mxu0 %v5751_v11  ;;  %v5849_v11 = vld [vmem:[%s8432_s2 + $0x854] ss:$24 sps:$4 sm:$0xff]  }
 0x1b0   :  { %3065 = vmatprep.subr.bf16.mxu0 %v5756_v34  ;;  %v5847_v34 = vld [vmem:[%s8432_s2 + $0x850] ss:$24 sps:$4 sm:$0xff]  }
 0x1b3   :  { %3066 = vmatpush1.bf16.msra.mxu0 %v5754_v6  ;;  %v5852_v6 = vld [vmem:[%s8432_s2 + $0x884] ss:$24 sps:$4 sm:$0xff]  }
 0x1b4   :  { %3067 = vmatprep.subr.bf16.mxu0 %v5759_v58  ;;  %v5850_v58 = vld [vmem:[%s8432_s2 + $0x880] ss:$24 sps:$4 sm:$0xff]  }
 0x1b7   :  { %3068 = vmatpush1.bf16.msra.mxu0 %v5757_v41  ;;  %v5855_v41 = vld [vmem:[%s8432_s2 + $0x8b4] ss:$24 sps:$4 sm:$0xff]  }
 0x1b8   :  { %3069 = vmatprep.subr.bf16.mxu0 %v5762_v21  ;;  %v5853_v21 = vld [vmem:[%s8432_s2 + $0x8b0] ss:$24 sps:$4 sm:$0xff]  }
 0x1bb   :  { %3070 = vmatpush1.bf16.msra.mxu0 %v5760_v55  ;;  %v5858_v55 = vld [vmem:[%s8432_s2 + $0x8e4] ss:$24 sps:$4 sm:$0xff]  }
 0x1bc   :  { %3080 = vmatprep.subr.bf16.mxu0 %v5765_v8  ;;  %v5856_v8 = vld [vmem:[%s8432_s2 + $0x8e0] ss:$24 sps:$4 sm:$0xff]  }
 0x1be   :  { %3072 = vmatmul.mubr.bf16.vlgmr.msra.gmra.mrb[4].mxu0 %v6974_v3  ;;  %v5774_v3 = vld [vmem:[%s8432_s2 + $0x3a4] ss:$24 sps:$4 sm:$0xff]  }
 0x1bf   :  { %3081 = vmatpush1.bf16.msra.mxu0 %v5763_v33  ;;  %3112 = vmatprep.mubr.bf16.mxu0 %v7039_v46  ;;  %v5772_v46 = vld [vmem:[%s8432_s2 + $0x3a0] ss:$24 sps:$4 sm:$0xff]  }
 0x1c0   :  { %3082 = vmatprep.subr.bf16.mxu0 %v5768_v37 }
 0x1c3   :  { %3083 = vmatpush1.bf16.msra.mxu0 %v5766_v10 }
 0x1c4   :  { %3084 = vmatprep.subr.bf16.mxu0 %v5771_v51 }
 0x1c7   :  { %3085 = vmatpush1.bf16.msra.mxu0 %v5769_v42 }
 0x1c8   :  { %3086 = vmatprep.subr.bf16.mxu0 %v5774_v3 }
 0x1cb   :  { %3087 = vmatpush1.bf16.msra.mxu0 %v5772_v46 }
 0x1cc   :  { %3088 = vmatprep.subr.bf16.mxu0 %v5777_v31 }
 0x1cf   :  { %3089 = vmatpush1.bf16.msra.mxu0 %v5775_v63  ;;  %v1166_v63 = vlaneseq }
 0x1d0   :  { %3090 = vmatprep.subr.bf16.mxu0 %v5780_v32 }
 0x1d1   :  { %v1167_v32 = vshrl.u32 %v1166_v63, 7 }
 0x1d3   :  { %3091 = vmatpush1.bf16.msra.mxu0 %v5778_v56  ;;  %v7772_v56 = vsub.s32 0, %v1167_v32 }
 0x1d4   :  { %3092 = vmatprep.subr.bf16.mxu0 %v5783_v28  ;;  %v1164_v28 = vld [vmem:[%s8434_s3] ss:$4 sm:$0x3f] }
 0x1d7   :  { %3093 = vmatpush1.bf16.msra.mxu0 %v5781_v5  ;;  %v7777_v5 = vsub.s32 1, %v1167_v32 }
 0x1d8   :  { %3094 = vmatprep.subr.bf16.mxu0 %v5786_v53 }
 0x1d9   :  { %v1173_v53 = vrot.slane %v1164_v28, %v7777_v5 }
 0x1db   :  { %3095 = vmatpush1.bf16.msra.mxu0 %v5784_v49  ;;  %v7781_v49 = vsub.s32 2, %v1167_v32 }
 0x1dc   :  { %3096 = vmatprep.subr.bf16.mxu0 %v5789_v39 }
 0x1df   :  { %3097 = vmatpush1.bf16.msra.mxu0 %v5787_v26 }
 0x1e0   :  { %3098 = vmatprep.subr.bf16.mxu0 %v5792_v48  ;;  %v1177_v48 = vrot.slane %v1164_v28, %v7781_v49 }
 0x1e3   :  { %3099 = vmatpush1.bf16.msra.mxu0 %v5790_v62  ;;  %v7784_v62 = vsub.s32 3, %v1167_v32 }
 0x1e4   :  { %3100 = vmatprep.subr.bf16.mxu0 %v5795_v54 }
 0x1e7   :  { %3101 = vmatpush1.bf16.msra.mxu0 %v5793_v52  ;;  %v1181_v52 = vrot.slane %v1164_v28, %v7784_v62 }
 0x1e8   :  { %3102 = vmatprep.subr.bf16.mxu0 %v5798_v9  ;;  %v7787_v9 = vsub.s32 4, %v1167_v32 }
 0x1eb   :  { %3103 = vmatpush1.bf16.msra.mxu0 %v5796_v27  ;;  %v7789_v27 = vsub.s32 5, %v1167_v32 }
 0x1ec   :  { %3104 = vmatprep.subr.bf16.mxu0 %v5801_v59 }
 0x1ef   :  { %3105 = vmatpush1.bf16.msra.mxu0 %v5799_v0  ;;  %v1185_v0 = vrot.slane %v1164_v28, %v7787_v9 }
 0x1f0   :  { %3106 = vmatprep.subr.bf16.mxu0 %v5804_v24  ;;  %v1189_v24 = vrot.slane %v1164_v28, %v7789_v27 }
 0x1f3   :  { %3107 = vmatpush1.bf16.msra.mxu0 %v5802_v40 }
 0x1f4   :  { %3108 = vmatprep.subr.bf16.mxu0 %v5807_v23 }
 0x1f7   :  { %3109 = vmatpush1.bf16.msra.mxu0 %v5805_v25 }
 0x1f8   :  { %3110 = vmatprep.subr.bf16.mxu0 %v5810_v1 }
 0x1fb   :  { %3111 = vmatpush1.bf16.msra.mxu0 %v5808_v36 }
 0x1fc   :  { %3121 = vmatprep.subr.bf16.mxu0 %v5813_v35 }
 0x1fe   :  { %3113 = vmatmul.mubr.bf16.vlgmr.msra.gmra.mrb[4].mxu0 %v7278_v2  ;;  %v5822_v2 = vld [vmem:[%s8432_s2 + $0x6a4] ss:$24 sps:$4 sm:$0xff]  }
 0x1ff   :  { %3122 = vmatpush1.bf16.msra.mxu0 %v5811_v17  ;;  %3153 = vmatprep.mubr.bf16.mxu0 %v7285_v47  ;;  %v5820_v47 = vld [vmem:[%s8432_s2 + $0x6a0] ss:$24 sps:$4 sm:$0xff]  }
 0x200   :  { %3123 = vmatprep.subr.bf16.mxu0 %v5816_v7 }
 0x203   :  { %3124 = vmatpush1.bf16.msra.mxu0 %v5814_v20 }
 0x204   :  { %3125 = vmatprep.subr.bf16.mxu0 %v5819_v29 }
 0x207   :  { %3126 = vmatpush1.bf16.msra.mxu0 %v5817_v13 }
 0x208   :  { %3127 = vmatprep.subr.bf16.mxu0 %v5822_v2 }
 0x20b   :  { %3128 = vmatpush1.bf16.msra.mxu0 %v5820_v47 }
 0x20c   :  { %3129 = vmatprep.subr.bf16.mxu0 %v5825_v57 }
 0x20f   :  { %3130 = vmatpush1.bf16.msra.mxu0 %v5823_v4 }
 0x210   :  { %3131 = vmatprep.subr.bf16.mxu0 %v5828_v61 }
 0x213   :  { %3132 = vmatpush1.bf16.msra.mxu0 %v5826_v16 }
 0x214   :  { %3133 = vmatprep.subr.bf16.mxu0 %v5831_v50  ;;  %v5859_v50 = vld [vmem:[%s8435_s4] ss:$12 sps:$4 sm:$0xff]  }
 0x217   :  { %3134 = vmatpush1.bf16.msra.mxu0 %v5829_v44  ;;  %v5861_v44 = vld [vmem:[%s8435_s4 + $0x4] ss:$12 sps:$4 sm:$0xff]  }
 0x218   :  { %3135 = vmatprep.subr.bf16.mxu0 %v5834_v38  ;;  %v5864_v38 = vld [vmem:[%s8435_s4 + $0x1c] ss:$12 sps:$4 sm:$0xff]   ;;  %4266 = vmatprep.subr.bf16.mxu1 %v5861_v44  ;;  %v5915_v44 = vld [vmem:[%s8435_s4 + $0x154] ss:$12 sps:$4 sm:$0xff]  }
 0x219   :  { %4267 = vmatpush1.bf16.msra.mxu1 %v5859_v50  ;;  %v5911_v50 = vld [vmem:[%s8435_s4 + $0x140] ss:$12 sps:$4 sm:$0xff]  }
 0x21a   :  { %4268 = vmatprep.subr.bf16.mxu1 %v5864_v38  ;;  %v5912_v38 = vld [vmem:[%s8435_s4 + $0x80] ss:$12 sps:$4 sm:$0xff]  }
 0x21b   :  { %3136 = vmatpush1.bf16.msra.mxu0 %v5832_v15  ;;  %v5862_v15 = vld [vmem:[%s8435_s4 + $0x18] ss:$12 sps:$4 sm:$0xff]  }
 0x21c   :  { %3137 = vmatprep.subr.bf16.mxu0 %v5837_v19  ;;  %v5867_v19 = vld [vmem:[%s8435_s4 + $0x34] ss:$12 sps:$4 sm:$0xff]  }
 0x21d   :  { %4269 = vmatpush1.bf16.msra.mxu1 %v5862_v15  ;;  %v5913_v15 = vld [vmem:[%s8435_s4 + $0x150] ss:$12 sps:$4 sm:$0xff]  }
 0x21e   :  { %4270 = vmatprep.subr.bf16.mxu1 %v5867_v19  ;;  %v5916_v19 = vld [vmem:[%s8435_s4 + $0x158] ss:$12 sps:$4 sm:$0xff]  }
 0x21f   :  { %3138 = vmatpush1.bf16.msra.mxu0 %v5835_v43  ;;  %v5865_v43 = vld [vmem:[%s8435_s4 + $0x30] ss:$12 sps:$4 sm:$0xff]  }
 0x220   :  { %3139 = vmatprep.subr.bf16.mxu0 %v5840_v14  ;;  %v5870_v14 = vld [vmem:[%s8435_s4 + $0x4c] ss:$12 sps:$4 sm:$0xff]  }
 0x221   :  { %4271 = vmatpush1.bf16.msra.mxu1 %v5865_v43  ;;  %v5920_v43 = vld [vmem:[%s8435_s4 + $0x16c] ss:$12 sps:$4 sm:$0xff]  }
 0x222   :  { %4272 = vmatprep.subr.bf16.mxu1 %v5870_v14  ;;  %v5917_v14 = vld [vmem:[%s8435_s4 + $0x98] ss:$12 sps:$4 sm:$0xff]  }
 0x223   :  { %3140 = vmatpush1.bf16.msra.mxu0 %v5838_v22  ;;  %v5868_v22 = vld [vmem:[%s8435_s4 + $0x48] ss:$12 sps:$4 sm:$0xff]  }
 0x224   :  { %3141 = vmatprep.subr.bf16.mxu0 %v5843_v45  ;;  %v5873_v45 = vld [vmem:[%s8435_s4 + $0x64] ss:$12 sps:$4 sm:$0xff]  }
 0x225   :  { %4273 = vmatpush1.bf16.msra.mxu1 %v5868_v22  ;;  %v5918_v22 = vld [vmem:[%s8435_s4 + $0x168] ss:$12 sps:$4 sm:$0xff]  }
 0x226   :  { %4274 = vmatprep.subr.bf16.mxu1 %v5873_v45  ;;  %v5921_v45 = vld [vmem:[%s8435_s4 + $0x170] ss:$12 sps:$4 sm:$0xff]  }
 0x227   :  { %3142 = vmatpush1.bf16.msra.mxu0 %v5841_v60  ;;  %v5886_v60 = vld [vmem:[%s8435_s4 + $0xc8] ss:$12 sps:$4 sm:$0xff]  }
 0x228   :  { %3143 = vmatprep.subr.bf16.mxu0 %v5846_v30  ;;  %v5887_v30 = vld [vmem:[%s8435_s4 + $0x8] ss:$12 sps:$4 sm:$0xff]  }
 0x22b   :  { %3144 = vmatpush1.bf16.msra.mxu0 %v5844_v18  ;;  %v5871_v18 = vld [vmem:[%s8435_s4 + $0x60] ss:$12 sps:$4 sm:$0xff]  }
 0x22c   :  { %3145 = vmatprep.subr.bf16.mxu0 %v5849_v11  ;;  %v5876_v11 = vld [vmem:[%s8435_s4 + $0x7c] ss:$12 sps:$4 sm:$0xff]   ;;  %4275 = vmatpush1.bf16.msra.mxu1 %v5871_v18 }
 0x22d   :  { %4276 = vmatprep.subr.bf16.mxu1 %v5876_v11  ;;  %v5926_v18 = vld [vmem:[%s8435_s4 + $0x3c8] ss:$12 sps:$4 sm:$0xff]  }
 0x22f   :  { %3146 = vmatpush1.bf16.msra.mxu0 %v5847_v34  ;;  %v5891_v34 = vld [vmem:[%s8435_s4 + $0xe0] ss:$12 sps:$4 sm:$0xff]  }
 0x230   :  { %3147 = vmatprep.subr.bf16.mxu0 %v5852_v6  ;;  %v5892_v6 = vld [vmem:[%s8435_s4 + $0x20] ss:$12 sps:$4 sm:$0xff]  }
 0x233   :  { %3148 = vmatpush1.bf16.msra.mxu0 %v5850_v58  ;;  %v5874_v58 = vld [vmem:[%s8435_s4 + $0x78] ss:$12 sps:$4 sm:$0xff]  }
 0x234   :  { %3149 = vmatprep.subr.bf16.mxu0 %v5855_v41  ;;  %v5879_v41 = vld [vmem:[%s8435_s4 + $0x94] ss:$12 sps:$4 sm:$0xff]   ;;  %4277 = vmatpush1.bf16.msra.mxu1 %v5874_v58 }
 0x235   :  { %4278 = vmatprep.subr.bf16.mxu1 %v5879_v41  ;;  %v7994_v58 = vld [vmem:[%s8434_s3 + $0x1] ss:$4 sm:$0x3f]  ;;  %v7999_v41 = vld [vmem:[%s8434_s3 + $0x2] ss:$4 sm:$0x3f] }
 0x237   :  { %3150 = vmatpush1.bf16.msra.mxu0 %v5853_v21  ;;  %v5896_v21 = vld [vmem:[%s8435_s4 + $0xf8] ss:$12 sps:$4 sm:$0xff]  }
 0x238   :  { %3151 = vmatprep.subr.bf16.mxu0 %v5858_v55  ;;  %v5877_v55 = vld [vmem:[%s8435_s4 + $0x90] ss:$12 sps:$4 sm:$0xff]  }
 0x239   :  { %4279 = vmatpush1.bf16.msra.mxu1 %v5877_v55  ;;  %v3211_v55 = vrot.slane %v7994_v58, %v7772_v56 }
 0x23b   :  { %3152 = vmatpush1.bf16.msra.mxu0 %v5856_v8  ;;  %v5882_v8 = vld [vmem:[%s8435_s4 + $0xac] ss:$12 sps:$4 sm:$0xff]  }
 0x23c   :  { %5265 = vmatprep.subr.bf16.mxu0 %v5886_v60  ;;  %4280 = vmatprep.subr.bf16.mxu1 %v5882_v8  ;;  %v5922_v60 = vld [vmem:[%s8435_s4 + $0xb0] ss:$12 sps:$4 sm:$0xff]   ;;  %v3223_v8 = vrot.slane %v7994_v58, %v7784_v62 }
 0x23e   :  { %3154 = vmatmul.mubr.bf16.vlgmr.msra.gmra.mrb[4].mxu0 %v7479_v12  ;;  %v1169_v12 = vrot.slane %v1164_v28, %v7772_v56 }
 0x23f   :  { %5266 = vmatpush3.bf16.msra.mxu0 %v5887_v30  ;;  %v5925_v30 = vld [vmem:[%s8435_s4 + $0x184] ss:$12 sps:$4 sm:$0xff]  }
 0x240   :  { %5267 = vmatprep.subr.bf16.mxu0 %v5891_v34 }
 0x243   :  { %5268 = vmatpush3.bf16.msra.mxu0 %v5892_v6 }
 0x244   :  { %5269 = vmatprep.subr.bf16.mxu0 %v5896_v21  ;;  %v3215_v21 = vrot.slane %v7994_v58, %v7777_v5 }
 0x251   :  { %v2909_v33 = vpop.f32.mrb[0].mxu0 }
 0x252   :  { %v3032_v37 = vpop.f32.mrb[0].mxu1  ;;  %v2911_v10 = vpop.f32.mrb[1].mxu0  ;;  %v5382_v39 = vadd.f32 %v2909_v33, %v1169_v12  ;;  %v5880_v33 = vld [vmem:[%s8435_s4 + $0xa8] ss:$12 sps:$4 sm:$0xff]  }
 0x253   :  { %v3034_v51 = vpop.f32.mrb[1].mxu1  ;;  %v2913_v42 = vpop.f32.mrb[2].mxu0  ;;  %v5383_v26 = vadd.f32 %v2911_v10, %v1173_v53  ;;  %v5384_v54 = vadd.f32 %v3032_v37, %v1177_v48  ;;  %v5885_v37 = vld [vmem:[%s8435_s4 + $0xc4] ss:$12 sps:$4 sm:$0xff]   ;;  %v5883_v10 = vld [vmem:[%s8435_s4 + $0xc0] ss:$12 sps:$4 sm:$0xff]   ;;  %4281 = vmatpush1.bf16.msra.mxu1 %v5880_v33  ;;  %v3231_v33 = vrot.slane %v7994_v58, %v7789_v27 }
 0x254   :  { %v3036_v3 = vpop.f32.mrb[2].mxu1  ;;  %v2914_v46 = vpop.f32.mrb[3].mxu0  ;;  %6091 = vtanh.f32 %v5382_v39  ;;  %v5385_v59 = vadd.f32 %v3034_v51, %v1181_v52  ;;  %v5890_v51 = vld [vmem:[%s8435_s4 + $0xdc] ss:$12 sps:$4 sm:$0xff]   ;;  %4282 = vmatprep.subr.bf16.mxu1 %v5885_v37  ;;  %v5888_v42 = vld [vmem:[%s8435_s4 + $0xd8] ss:$12 sps:$4 sm:$0xff]  }
 0x255   :  { %v3037_v31 = vpop.f32.mrb[3].mxu1  ;;  %6093 = vtanh.f32 %v5383_v26  ;;  %v5895_v3 = vld [vmem:[%s8435_s4 + $0xf4] ss:$12 sps:$4 sm:$0xff]   ;;  %v5893_v46 = vld [vmem:[%s8435_s4 + $0xf0] ss:$12 sps:$4 sm:$0xff]  }
 0x256   :  { %6095 = vtanh.f32 %v5384_v54 }
 0x257   :  { %6097 = vtanh.f32 %v5385_v59  ;;  %4283 = vmatpush1.bf16.msra.mxu1 %v5883_v10  ;;  %v3254_v10 = vrot.slane %v7999_v41, %v7777_v5 }
 0x258   :  { %4284 = vmatprep.subr.bf16.mxu1 %v5890_v51  ;;  %v3250_v51 = vrot.slane %v7999_v41, %v7772_v56 }
 0x25b   :  { %4285 = vmatpush1.bf16.msra.mxu1 %v5888_v42  ;;  %v3219_v42 = vrot.slane %v7994_v58, %v7781_v49 }
 0x25c   :  { %4286 = vmatprep.subr.bf16.mxu1 %v5895_v3 }
 0x25e   :  { %v7793_v40 = vpop.eup %6091 }
 0x25f   :  { %v7795_v25 = vpop.eup %6093  ;;  %4287 = vmatpush1.bf16.msra.mxu1 %v5893_v46 }
 0x260   :  { %v3168_v20 = vadd.f32 %v7795_v25, %v7793_v40  ;;  %v7799_v29 = vpop.eup %6095 }
 0x261   :  { %v7802_v2 = vpop.eup %6097 }
 0x262   :  { %v3169_v13 = vadd.f32 %v7799_v29, %v3168_v20  ;;  %v5900_v20 = vld [vmem:[%s8435_s4 + $0x10c] ss:$12 sps:$4 sm:$0xff]  }
 0x263   :  { %4288 = vmatprep.subr.bf16.mxu1 %v5900_v20 }
 0x264   :  { %v3170_v47 = vadd.f32 %v7802_v2, %v3169_v13  ;;  %v5902_v13 = vld [vmem:[%s8435_s4 + $0x50] ss:$12 sps:$4 sm:$0xff]  }
 0x311   :  { %v3155_v23 = vpop.f32.mrb[4].mxu0 }
 0x312   :  { %v5386_v1 = vadd.f32 %v3155_v23, %v1185_v0  ;;  %v3157_v36 = vpop.f32.mrb[5].mxu0 }
 0x313   :  { %v5387_v35 = vadd.f32 %v3157_v36, %v1189_v24  ;;  %v3159_v17 = vpop.f32.mrb[6].mxu0 }
 0x314   :  { %6099 = vtanh.f32 %v5386_v1  ;;  %v3160_v7 = vpop.f32.mrb[7].mxu0  ;;  %v5897_v17 = vld [vmem:[%s8435_s4 + $0x38] ss:$12 sps:$4 sm:$0xff]  }
 0x315   :  { %6101 = vtanh.f32 %v5387_v35  ;;  %v5898_v7 = vld [vmem:[%s8435_s4 + $0x108] ss:$12 sps:$4 sm:$0xff]   ;;  %5270 = vmatpush3.bf16.msra.mxu0 %v5897_v17 }
 0x316   :  { %4289 = vmatpush1.bf16.msra.mxu1 %v5898_v7  ;;  %v5930_v17 = vld [vmem:[%s8435_s4 + $0x19c] ss:$12 sps:$4 sm:$0xff]   ;;  %v5931_v7 = vld [vmem:[%s8435_s4 + $0x3e0] ss:$12 sps:$4 sm:$0xff]  }
 0x31e   :  { %v7805_v57 = vpop.eup %6099 }
 0x31f   :  { %v7807_v4 = vpop.eup %6101  ;;  %v3171_v61 = vadd.f32 %v7805_v57, %v3170_v47  ;;  %v5903_v47 = vld [vmem:[%s8435_s4 + $0x120] ss:$12 sps:$4 sm:$0xff]  }
 0x321   :  { %v3172_v16 = vadd.f32 %v7807_v4, %v3171_v61  ;;  %v5907_v61 = vld [vmem:[%s8435_s4 + $0x68] ss:$12 sps:$4 sm:$0xff]  }
 0x323   :  { %3173 = vadd.xlane.f32.xlu0 %v3172_v16  ;;  %v5908_v16 = vld [vmem:[%s8435_s4 + $0x138] ss:$12 sps:$4 sm:$0xff]  }
 0x3b0   :  { %v3174_v31 = vpop.xlane.xlu0 %3173 }
 0x3b1   :  { %v3176_v32 = vmul.f32 0.0013020834, %v3174_v31 }
 0x3b3   :  { %v7893_v28 = vsub.f32 %v7793_v40, %v3176_v32  ;;  %v7896_v12 = vsub.f32 %v7795_v25, %v3176_v32  ;;  %v7899_v53 = vsub.f32 %v7799_v29, %v3176_v32  ;;  %v7902_v39 = vsub.f32 %v7802_v2, %v3176_v32  ;;  %v5901_v29 = vld [vmem:[%s8435_s4 + $0x110] ss:$12 sps:$4 sm:$0xff]  }
 0x3b4   :  { %v7909_v54 = vsub.f32 %v7805_v57, %v3176_v32  ;;  %v7914_v0 = vsub.f32 %v7807_v4, %v3176_v32  ;;  %v5905_v2 = vld [vmem:[%s8435_s4 + $0x124] ss:$12 sps:$4 sm:$0xff]   ;;  %5271 = vmatprep.subr.bf16.mxu0 %v5901_v29  ;;  %v5906_v57 = vld [vmem:[%s8435_s4 + $0x128] ss:$12 sps:$4 sm:$0xff]  }
 0x3b5   :  { %v3183_v26 = vmul.f32 %v7893_v28, %v7893_v28  ;;  %v3184_v48 = vmul.f32 %v7896_v12, %v7896_v12  ;;  %v3185_v52 = vmul.f32 %v7899_v53, %v7899_v53  ;;  %v3186_v24 = vmul.f32 %v7902_v39, %v7902_v39  ;;  %4290 = vmatprep.subr.bf16.mxu1 %v5905_v2  ;;  %v5910_v4 = vld [vmem:[%s8435_s4 + $0x13c] ss:$12 sps:$4 sm:$0xff]   ;;  %v5932_v2 = vld [vmem:[%s8435_s4 + $0x320] ss:$12 sps:$4 sm:$0xff]  }
 0x3b6   :  { %v3187_v23 = vmul.f32 %v7909_v54, %v7909_v54  ;;  %v3188_v1 = vmul.f32 %v7914_v0, %v7914_v0  ;;  %5272 = vmatpush3.bf16.msra.mxu0 %v5902_v13  ;;  %4291 = vmatpush1.bf16.msra.mxu1 %v5903_v47  ;;  %v5928_v13 = vld [vmem:[%s8435_s4 + $0x198] ss:$12 sps:$4 sm:$0xff]   ;;  %v5935_v47 = vld [vmem:[%s8435_s4 + $0x1b4] ss:$12 sps:$4 sm:$0xff]  }
 0x3b7   :  { %v3189_v59 = vadd.f32 %v3184_v48, %v3183_v26  ;;  %5273 = vmatprep.subr.bf16.mxu0 %v5906_v57  ;;  %4292 = vmatprep.subr.bf16.mxu1 %v5910_v4  ;;  %v3262_v26 = vrot.slane %v7999_v41, %v7784_v62  ;;  %v3270_v48 = vrot.slane %v7999_v41, %v7789_v27  ;;  %v5923_v27 = vld [vmem:[%s8435_s4 + $0x180] ss:$12 sps:$4 sm:$0xff]   ;;  %v5936_v57 = vld [vmem:[%s8435_s4 + $0x3f8] ss:$12 sps:$4 sm:$0xff]   ;;  %v5933_v4 = vld [vmem:[%s8435_s4 + $0x1b0] ss:$12 sps:$4 sm:$0xff]  }
 0x3b9   :  { %v3190_v40 = vadd.f32 %v3189_v59, %v3185_v52 }
 0x3ba   :  { %5274 = vmatpush3.bf16.msra.mxu0 %v5907_v61  ;;  %4293 = vmatpush1.bf16.msra.mxu1 %v5908_v16  ;;  %v5937_v61 = vld [vmem:[%s8435_s4 + $0x338] ss:$12 sps:$4 sm:$0xff]  }
 0x3bb   :  { %v3191_v25 = vadd.f32 %v3190_v40, %v3186_v24  ;;  %5275 = vmatprep.subr.bf16.mxu0 %v5911_v50  ;;  %4294 = vmatprep.subr.bf16.mxu1 %v5915_v44  ;;  %v5940_v16 = vld [vmem:[%s8435_s4 + $0x1cc] ss:$12 sps:$4 sm:$0xff]   ;;  %v5941_v50 = vld [vmem:[%s8435_s4 + $0x410] ss:$12 sps:$4 sm:$0xff]   ;;  %v5938_v44 = vld [vmem:[%s8435_s4 + $0x1c8] ss:$12 sps:$4 sm:$0xff]  }
 0x3bd   :  { %v3192_v36 = vadd.f32 %v3191_v25, %v3187_v23 }
 0x3be   :  { %5276 = vmatpush3.bf16.msra.mxu0 %v5912_v38  ;;  %4295 = vmatpush1.bf16.msra.mxu1 %v5913_v15  ;;  %v5942_v38 = vld [vmem:[%s8435_s4 + $0x350] ss:$12 sps:$4 sm:$0xff]  }
 0x3bf   :  { %v3193_v35 = vadd.f32 %v3192_v36, %v3188_v1  ;;  %5277 = vmatprep.subr.bf16.mxu0 %v5916_v19  ;;  %4296 = vmatprep.subr.bf16.mxu1 %v5920_v43  ;;  %v5945_v15 = vld [vmem:[%s8435_s4 + $0x1e4] ss:$12 sps:$4 sm:$0xff]   ;;  %v5946_v19 = vld [vmem:[%s8435_s4 + $0x428] ss:$12 sps:$4 sm:$0xff]   ;;  %v5943_v43 = vld [vmem:[%s8435_s4 + $0x1e0] ss:$12 sps:$4 sm:$0xff]  }
 0x3c1   :  { %3194 = vadd.xlane.f32.xlu1 %v3193_v35  ;;  %v5927_v35 = vld [vmem:[%s8435_s4 + $0x308] ss:$12 sps:$4 sm:$0xff]  }
 0x3c2   :  { %5278 = vmatpush3.bf16.msra.mxu0 %v5917_v14  ;;  %4297 = vmatpush1.bf16.msra.mxu1 %v5918_v22  ;;  %v5947_v14 = vld [vmem:[%s8435_s4 + $0x368] ss:$12 sps:$4 sm:$0xff]  }
 0x3c3   :  { %5279 = vmatprep.subr.bf16.mxu0 %v5921_v45  ;;  %4307 = vmatprep.subr.bf16.mxu1 %v5925_v30  ;;  %v5950_v22 = vld [vmem:[%s8435_s4 + $0x1fc] ss:$12 sps:$4 sm:$0xff]   ;;  %v5951_v45 = vld [vmem:[%s8435_s4 + $0x440] ss:$12 sps:$4 sm:$0xff]  }
 0x3c4   :  { %v5952_v30 = vld [vmem:[%s8435_s4 + $0x380] ss:$12 sps:$4 sm:$0xff]  }
 0x3c6   :  { %5280 = vmatpush3.bf16.msra.mxu0 %v5922_v60  ;;  %v5948_v60 = vld [vmem:[%s8435_s4 + $0x1f8] ss:$12 sps:$4 sm:$0xff]  }
 0x3c7   :  { %5309 = vmatprep.subr.bf16.mxu0 %v5926_v18  ;;  %v3227_v18 = vrot.slane %v7994_v58, %v7787_v9  ;;  %v5957_v58 = vld [vmem:[%s8435_s4 + $0x398] ss:$12 sps:$4 sm:$0xff]  }
 0x44e   :  { %v3195_v11 = vpop.xlane.xlu1 %3194 }
 0x44f   :  { %v3196_v34 = vmul.f32 0.0013020834, %v3195_v11  ;;  %v5955_v11 = vld [vmem:[%s8435_s4 + $0x214] ss:$12 sps:$4 sm:$0xff]  }
 0x451   :  { %v3197_v6 = vadd.f32 1e-05, %v3196_v34  ;;  %v5956_v34 = vld [vmem:[%s8435_s4 + $0x458] ss:$12 sps:$4 sm:$0xff]  }
 0x453   :  { %6103 = vrsqrt.f32 %v3197_v6 }
 0x45d   :  { %v8009_v37 = vpop.eup %6103 }
 0x45e   :  { %v3200_v3 = vmul.f32 %v8009_v37, %v7896_v12  ;;  %v3199_v46 = vmul.f32 %v8009_v37, %v7893_v28  ;;  %v3202_v31 = vmul.f32 %v8009_v37, %v7902_v39  ;;  %v3204_v32 = vmul.f32 %v8009_v37, %v7914_v0 }
 0x45f   :  { %v3201_v52 = vmul.f32 %v8009_v37, %v7899_v53  ;;  %v3258_v12 = vrot.slane %v7999_v41, %v7781_v49  ;;  %v3203_v6 = vmul.f32 %v8009_v37, %v7909_v54  ;;  %v5961_v54 = vld [vmem:[%s8435_s4 + $0x470] ss:$12 sps:$4 sm:$0xff]   ;;  %v5958_v37 = vld [vmem:[%s8435_s4 + $0x228] ss:$12 sps:$4 sm:$0xff]  }
 0x460   :  { %v3239_v59 = vmul.f32 %v3215_v21, %v3200_v3  ;;  %v3238_v28 = vmul.f32 %v3211_v55, %v3199_v46  ;;  %v3241_v24 = vmul.f32 %v3223_v8, %v3202_v31  ;;  %v3243_v40 = vmul.f32 %v3231_v33, %v3204_v32  ;;  %v5953_v21 = vld [vmem:[%s8435_s4 + $0x210] ss:$12 sps:$4 sm:$0xff]   ;;  %v5960_v55 = vld [vmem:[%s8435_s4 + $0x22c] ss:$12 sps:$4 sm:$0xff]   ;;  %v5971_v31 = vld [vmem:[%s8435_s4 + $0x274] ss:$12 sps:$4 sm:$0xff]  }
 0x461   :  { %v3240_v39 = vmul.f32 %v3219_v42, %v3201_v52  ;;  %v3242_v8 = vmul.f32 %v3227_v18, %v3203_v6  ;;  %v3266_v33 = vrot.slane %v7999_v41, %v7787_v9  ;;  %v5963_v9 = vld [vmem:[%s8435_s4 + $0x240] ss:$12 sps:$4 sm:$0xff]   ;;  %v5968_v3 = vld [vmem:[%s8435_s4 + $0x25c] ss:$12 sps:$4 sm:$0xff]   ;;  %v5966_v46 = vld [vmem:[%s8435_s4 + $0x258] ss:$12 sps:$4 sm:$0xff]  }
 0x462   :  { %v3278_v23 = vadd.f32 %v3254_v10, %v3239_v59  ;;  %v8033_v25 = vadd.f32 %v3250_v51, %v3238_v28  ;;  %v3280_v0 = vadd.f32 %v3262_v26, %v3241_v24  ;;  %v3282_v1 = vadd.f32 %v3270_v48, %v3243_v40  ;;  %v5962_v10 = vld [vmem:[%s8435_s4 + $0x3b0] ss:$12 sps:$4 sm:$0xff]   ;;  %v5974_v26 = vld [vmem:[%s8435_s4 + $0x28c] ss:$12 sps:$4 sm:$0xff]   ;;  %v5972_v48 = vld [vmem:[%s8435_s4 + $0x288] ss:$12 sps:$4 sm:$0xff]  }
 0x463   :  { %v8035_v62 = vadd.f32 %v3258_v12, %v3240_v39  ;;  %v5965_v51 = vld [vmem:[%s8435_s4 + $0x244] ss:$12 sps:$4 sm:$0xff]   ;;  %v3281_v42 = vadd.f32 %v3266_v33, %v3242_v8  ;;  %v5975_v12 = vld [vmem:[%s8435_s4 + $0x2a0] ss:$12 sps:$4 sm:$0xff]   ;;  %v5980_v59 = vld [vmem:[%s8435_s4 + $0x2bc] ss:$12 sps:$4 sm:$0xff]  }
 0x464   :  { %v3284_v36 = vpack.c.bf16 %v3278_v23, %v3278_v23  ;;  %v3283_v53 = vpack.c.bf16 %v8033_v25, %v8033_v25  ;;  %v8051_v20 = vpack.c.bf16 %v3280_v0, %v3280_v0  ;;  %v8053_v29 = vpack.c.bf16 %v3282_v1, %v3282_v1  ;;  %v5969_v32 = vld [vmem:[%s8435_s4 + $0x270] ss:$12 sps:$4 sm:$0xff]   ;;  %v5978_v28 = vld [vmem:[%s8435_s4 + $0x2b8] ss:$12 sps:$4 sm:$0xff]   ;;  %v5983_v24 = vld [vmem:[%s8435_s4 + $0x2d4] ss:$12 sps:$4 sm:$0xff]  }
 0x465   :  { %v8147_v41 = vpack.c.bf16 %v3281_v42, %v3281_v42  ;;  %v5977_v52 = vld [vmem:[%s8435_s4 + $0x2a4] ss:$12 sps:$4 sm:$0xff]   ;;  %v5986_v39 = vld [vmem:[%s8435_s4 + $0x2ec] ss:$12 sps:$4 sm:$0xff]   ;;  %v5984_v23 = vld [vmem:[%s8435_s4 + $0x2e8] ss:$12 sps:$4 sm:$0xff]  }
 0x466   :  { %4298 = vmatprep.mubr.bf16.mxu1 %v3284_v36  ;;  %4421 = vmatprep.mubr.bf16.mxu0 %v3284_v36  ;;  %v5981_v40 = vld [vmem:[%s8435_s4 + $0x2d0] ss:$12 sps:$4 sm:$0xff]   ;;  %v5987_v1 = vld [vmem:[%s8435_s4 + $0x300] ss:$12 sps:$4 sm:$0xff]   ;;  %v8200_v36 = vpack.c.bf16 %v8035_v62, %v8035_v62  ;;  %v6026_v18 = vld [vmem:[%s8435_s4 + $0x438] ss:$12 sps:$4 sm:$0xff]  }
 0x467   :  { %4299 = vmatmul.mubr.bf16.vlgmr.msra.gmra.mrb[4].mxu1 %v3283_v53  ;;  %4422 = vmatmul.mubr.bf16.vlgmr.msra.gmra.mrb[8].mxu0 %v3283_v53  ;;  %v5989_v0 = vld [vmem:[%s8435_s4 + $0x304] ss:$12 sps:$4 sm:$0xff]   ;;  %v5995_v62 = vld [vmem:[%s8435_s4 + $0x334] ss:$12 sps:$4 sm:$0xff]   ;;  %v6034_v6 = vld [vmem:[%s8435_s4 + $0x46c] ss:$12 sps:$4 sm:$0xff]  }
 0x468   :  { %4308 = vmatpush1.bf16.msra.mxu1 %v5923_v27  ;;  %5310 = vmatpush3.bf16.msra.mxu0 %v5927_v35  ;;  %v5992_v27 = vld [vmem:[%s8435_s4 + $0x31c] ss:$12 sps:$4 sm:$0xff]   ;;  %v5990_v53 = vld [vmem:[%s8435_s4 + $0x318] ss:$12 sps:$4 sm:$0xff]   ;;  %v6038_v8 = vld [vmem:[%s8435_s4 + $0x1a0] ss:$12 sps:$4 sm:$0xff]  }
 0x469   :  { %4339 = vmatprep.mubr.bf16.mxu1 %v8051_v20  ;;  %4501 = vmatprep.mubr.bf16.mxu0 %v8053_v29  ;;  %v5993_v35 = vld [vmem:[%s8435_s4 + $0x330] ss:$12 sps:$4 sm:$0xff]   ;;  %v6039_v33 = vld [vmem:[%s8435_s4 + $0x278] ss:$12 sps:$4 sm:$0xff]   ;;  %v6044_v42 = vld [vmem:[%s8435_s4 + $0x1e8] ss:$12 sps:$4 sm:$0xff]  }
 0x46a   :  { %4309 = vmatprep.subr.bf16.mxu1 %v5930_v17  ;;  %5311 = vmatprep.subr.bf16.mxu0 %v5931_v7  ;;  %v5998_v17 = vld [vmem:[%s8435_s4 + $0x34c] ss:$12 sps:$4 sm:$0xff]   ;;  %v5996_v7 = vld [vmem:[%s8435_s4 + $0x348] ss:$12 sps:$4 sm:$0xff]  }
 0x46c   :  { %4310 = vmatpush1.bf16.msra.mxu1 %v5928_v13  ;;  %5312 = vmatpush3.bf16.msra.mxu0 %v5932_v2  ;;  %v5999_v13 = vld [vmem:[%s8435_s4 + $0x360] ss:$12 sps:$4 sm:$0xff]   ;;  %v6004_v2 = vld [vmem:[%s8435_s4 + $0x37c] ss:$12 sps:$4 sm:$0xff]  }
 0x46d   :  { %4311 = vmatprep.subr.bf16.mxu1 %v5935_v47  ;;  %5313 = vmatprep.subr.bf16.mxu0 %v5936_v57  ;;  %v6002_v47 = vld [vmem:[%s8435_s4 + $0x378] ss:$12 sps:$4 sm:$0xff]   ;;  %v6007_v57 = vld [vmem:[%s8435_s4 + $0x394] ss:$12 sps:$4 sm:$0xff]  }
 0x470   :  { %4312 = vmatpush1.bf16.msra.mxu1 %v5933_v4  ;;  %5314 = vmatpush3.bf16.msra.mxu0 %v5937_v61  ;;  %v6005_v4 = vld [vmem:[%s8435_s4 + $0x390] ss:$12 sps:$4 sm:$0xff]   ;;  %v6010_v61 = vld [vmem:[%s8435_s4 + $0x3ac] ss:$12 sps:$4 sm:$0xff]  }
 0x471   :  { %4313 = vmatprep.subr.bf16.mxu1 %v5940_v16  ;;  %5315 = vmatprep.subr.bf16.mxu0 %v5941_v50  ;;  %v6008_v16 = vld [vmem:[%s8435_s4 + $0x3a8] ss:$12 sps:$4 sm:$0xff]   ;;  %v6013_v50 = vld [vmem:[%s8435_s4 + $0x3c4] ss:$12 sps:$4 sm:$0xff]  }
 0x474   :  { %4314 = vmatpush1.bf16.msra.mxu1 %v5938_v44  ;;  %5316 = vmatpush3.bf16.msra.mxu0 %v5942_v38  ;;  %v6011_v44 = vld [vmem:[%s8435_s4 + $0x3c0] ss:$12 sps:$4 sm:$0xff]   ;;  %v6016_v38 = vld [vmem:[%s8435_s4 + $0x3dc] ss:$12 sps:$4 sm:$0xff]  }
 0x475   :  { %4315 = vmatprep.subr.bf16.mxu1 %v5945_v15  ;;  %5317 = vmatprep.subr.bf16.mxu0 %v5946_v19  ;;  %v6014_v15 = vld [vmem:[%s8435_s4 + $0x3d8] ss:$12 sps:$4 sm:$0xff]   ;;  %v6019_v19 = vld [vmem:[%s8435_s4 + $0x3f4] ss:$12 sps:$4 sm:$0xff]  }
 0x478   :  { %4316 = vmatpush1.bf16.msra.mxu1 %v5943_v43  ;;  %5318 = vmatpush3.bf16.msra.mxu0 %v5947_v14  ;;  %v6017_v43 = vld [vmem:[%s8435_s4 + $0x3f0] ss:$12 sps:$4 sm:$0xff]   ;;  %v6022_v14 = vld [vmem:[%s8435_s4 + $0x40c] ss:$12 sps:$4 sm:$0xff]  }
 0x479   :  { %4317 = vmatprep.subr.bf16.mxu1 %v5950_v22  ;;  %5319 = vmatprep.subr.bf16.mxu0 %v5951_v45  ;;  %v6020_v22 = vld [vmem:[%s8435_s4 + $0x408] ss:$12 sps:$4 sm:$0xff]   ;;  %v6025_v45 = vld [vmem:[%s8435_s4 + $0x424] ss:$12 sps:$4 sm:$0xff]  }
 0x47c   :  { %4318 = vmatpush1.bf16.msra.mxu1 %v5948_v60  ;;  %5320 = vmatpush3.bf16.msra.mxu0 %v5952_v30  ;;  %v6023_v60 = vld [vmem:[%s8435_s4 + $0x420] ss:$12 sps:$4 sm:$0xff]   ;;  %v6028_v30 = vld [vmem:[%s8435_s4 + $0x43c] ss:$12 sps:$4 sm:$0xff]  }
 0x47d   :  { %4319 = vmatprep.subr.bf16.mxu1 %v5955_v11  ;;  %5321 = vmatprep.subr.bf16.mxu0 %v5956_v34  ;;  %v6031_v11 = vld [vmem:[%s8435_s4 + $0x454] ss:$12 sps:$4 sm:$0xff]   ;;  %v6029_v34 = vld [vmem:[%s8435_s4 + $0x450] ss:$12 sps:$4 sm:$0xff]  }
 0x480   :  { %4320 = vmatpush1.bf16.msra.mxu1 %v5953_v21  ;;  %5322 = vmatpush3.bf16.msra.mxu0 %v5957_v58  ;;  %v6032_v21 = vld [vmem:[%s8435_s4 + $0x468] ss:$12 sps:$4 sm:$0xff]  }
 0x481   :  { %4321 = vmatprep.subr.bf16.mxu1 %v5960_v55  ;;  %5323 = vmatprep.subr.bf16.mxu0 %v5961_v54  ;;  %v6035_v58 = vld [vmem:[%s8435_s4 + $0x248] ss:$12 sps:$4 sm:$0xff]   ;;  %v6037_v54 = vld [vmem:[%s8435_s4 + $0x260] ss:$12 sps:$4 sm:$0xff]  }
 0x482   :  { %v6036_v55 = vld [vmem:[%s8435_s4 + $0x188] ss:$12 sps:$4 sm:$0xff]  }
 0x484   :  { %4322 = vmatpush1.bf16.msra.mxu1 %v5958_v37  ;;  %5324 = vmatpush3.bf16.msra.mxu0 %v5962_v10  ;;  %v6040_v37 = vld [vmem:[%s8435_s4 + $0x1b8] ss:$12 sps:$4 sm:$0xff]   ;;  %v6041_v10 = vld [vmem:[%s8435_s4 + $0x290] ss:$12 sps:$4 sm:$0xff]  }
 0x485   :  { %4323 = vmatprep.subr.bf16.mxu1 %v5965_v51  ;;  %v6043_v51 = vld [vmem:[%s8435_s4 + $0x2a8] ss:$12 sps:$4 sm:$0xff]  }
 0x487   :  { %4502 = vmatmul.mubr.bf16.vlgmr.msra.gmra.mrb[12].mxu0 %v8147_v41 }
 0x488   :  { %4324 = vmatpush1.bf16.msra.mxu1 %v5963_v9  ;;  %v6045_v9 = vld [vmem:[%s8435_s4 + $0x2c0] ss:$12 sps:$4 sm:$0xff]  }
 0x489   :  { %4325 = vmatprep.subr.bf16.mxu1 %v5968_v3  ;;  %v6047_v3 = vld [vmem:[%s8435_s4 + $0x2d8] ss:$12 sps:$4 sm:$0xff]  }
 0x48c   :  { %4326 = vmatpush1.bf16.msra.mxu1 %v5966_v46  ;;  %v6048_v46 = vld [vmem:[%s8435_s4 + $0x218] ss:$12 sps:$4 sm:$0xff]  }
 0x48d   :  { %4327 = vmatprep.subr.bf16.mxu1 %v5971_v31  ;;  %v6049_v31 = vld [vmem:[%s8435_s4 + $0x2f0] ss:$12 sps:$4 sm:$0xff]  }
 0x490   :  { %4328 = vmatpush1.bf16.msra.mxu1 %v5969_v32  ;;  %v6050_v32 = vld [vmem:[%s8435_s4 + $0x230] ss:$12 sps:$4 sm:$0xff]  }
 0x491   :  { %4329 = vmatprep.subr.bf16.mxu1 %v5974_v26  ;;  %v6051_v26 = vld [vmem:[%s8436_s5 + $0x40] sm:$0xff]  }
 0x494   :  { %4330 = vmatpush1.bf16.msra.mxu1 %v5972_v48  ;;  %v6052_v48 = vld [vmem:[%s8436_s5] sm:$0xff]  }
 0x495   :  { %4331 = vmatprep.subr.bf16.mxu1 %v5977_v52  ;;  %v6053_v52 = vld [vmem:[%s8436_s5 + $0x48] sm:$0xff]  }
 0x498   :  { %4332 = vmatpush1.bf16.msra.mxu1 %v5975_v12  ;;  %v6054_v12 = vld [vmem:[%s8436_s5 + $0x8] sm:$0xff]  }
 0x499   :  { %4333 = vmatprep.subr.bf16.mxu1 %v5980_v59  ;;  %v6055_v59 = vld [vmem:[%s8436_s5 + $0x50] sm:$0xff]  }
 0x49c   :  { %4334 = vmatpush1.bf16.msra.mxu1 %v5978_v28  ;;  %v6056_v28 = vld [vmem:[%s8436_s5 + $0x10] sm:$0xff]  }
 0x49d   :  { %4335 = vmatprep.subr.bf16.mxu1 %v5983_v24  ;;  %v6057_v24 = vld [vmem:[%s8436_s5 + $0x58] sm:$0xff]  }
 0x4a0   :  { %4336 = vmatpush1.bf16.msra.mxu1 %v5981_v40  ;;  %v6058_v40 = vld [vmem:[%s8436_s5 + $0x18] sm:$0xff]  }
 0x4a1   :  { %4337 = vmatprep.subr.bf16.mxu1 %v5986_v39  ;;  %v6059_v39 = vld [vmem:[%s8436_s5 + $0x60] sm:$0xff]  }
 0x4a4   :  { %4338 = vmatpush1.bf16.msra.mxu1 %v5984_v23  ;;  %v6060_v23 = vld [vmem:[%s8436_s5 + $0x20] sm:$0xff]  }
 0x4a5   :  { %4348 = vmatprep.subr.bf16.mxu1 %v5989_v0  ;;  %v6061_v0 = vld [vmem:[%s8436_s5 + $0x68] sm:$0xff]  }
 0x4a7   :  { %4340 = vmatmul.mubr.bf16.vlgmr.msra.gmra.mrb[4].mxu1 %v8200_v36 }
 0x4a8   :  { %4349 = vmatpush1.bf16.msra.mxu1 %v5987_v1  ;;  %4380 = vmatprep.mubr.bf16.mxu1 %v8053_v29  ;;  %v6001_v29 = vld [vmem:[%s8435_s4 + $0x364] ss:$12 sps:$4 sm:$0xff]   ;;  %v6062_v1 = vld [vmem:[%s8436_s5 + $0x28] sm:$0xff]  }
 0x4a9   :  { %4350 = vmatprep.subr.bf16.mxu1 %v5992_v27 }
 0x4ac   :  { %4351 = vmatpush1.bf16.msra.mxu1 %v5990_v53 }
 0x4ad   :  { %4352 = vmatprep.subr.bf16.mxu1 %v5995_v62 }
 0x4b0   :  { %4353 = vmatpush1.bf16.msra.mxu1 %v5993_v35 }
 0x4b1   :  { %4354 = vmatprep.subr.bf16.mxu1 %v5998_v17  ;;  %v6063_v17 = vld [vmem:[%s8436_s5 + $0x70] sm:$0xff]  }
 0x4b4   :  { %4355 = vmatpush1.bf16.msra.mxu1 %v5996_v7  ;;  %v6064_v7 = vld [vmem:[%s8436_s5 + $0x30] sm:$0xff]  }
 0x4b5   :  { %4356 = vmatprep.subr.bf16.mxu1 %v6001_v29  ;;  %v6065_v29 = vld [vmem:[%s8436_s5 + $0x78] sm:$0xff]  }
 0x4b8   :  { %4357 = vmatpush1.bf16.msra.mxu1 %v5999_v13  ;;  %v6066_v13 = vld [vmem:[%s8436_s5 + $0x38] sm:$0xff]  }
 0x4b9   :  { %4358 = vmatprep.subr.bf16.mxu1 %v6004_v2  ;;  %v6067_v2 = vld [vmem:[%s8436_s5 + $0x80] sm:$0xff]  }
 0x4bc   :  { %4359 = vmatpush1.bf16.msra.mxu1 %v6002_v47  ;;  %v6106_v47 = vmov 0.0  }
 0x4bd   :  { %4360 = vmatprep.subr.bf16.mxu1 %v6007_v57  ;;  %5362 = vmatprep.subr.bf16.mxu0 %v6106_v47  ;;  %v6068_v57 = vld [vmem:[%s8436_s5 + $0x88] sm:$0xff]  }
 0x4be   :  { %5363 = vmatpush3.bf16.msra.mxu0 %v6067_v2  ;;  %5378 = vmatprep.mubr.msk.bf16.mxu0 %vm6107_vm8, %v6106_v47 }
 0x4bf   :  { %5364 = vmatprep.subr.bf16.mxu0 %v6106_v47 }
 0x4c0   :  { %4361 = vmatpush1.bf16.msra.mxu1 %v6005_v4  ;;  %v6069_v4 = vld [vmem:[%s8436_s5 + $0x90] sm:$0xff]  }
 0x4c1   :  { %4362 = vmatprep.subr.bf16.mxu1 %v6010_v61  ;;  %v6070_v61 = vld [vmem:[%s8436_s5 + $0x98] sm:$0xff]  }
 0x4c2   :  { %5365 = vmatpush3.bf16.msra.mxu0 %v6068_v57 }
 0x4c3   :  { %5366 = vmatprep.subr.bf16.mxu0 %v6106_v47 }
 0x4c4   :  { %4363 = vmatpush1.bf16.msra.mxu1 %v6008_v16  ;;  %v6071_v16 = vld [vmem:[%s8436_s5 + $0xa0] sm:$0xff]  }
 0x4c5   :  { %4364 = vmatprep.subr.bf16.mxu1 %v6013_v50 }
 0x4c6   :  { %5367 = vmatpush3.bf16.msra.mxu0 %v6069_v4 }
 0x4c7   :  { %5368 = vmatprep.subr.bf16.mxu0 %v6106_v47 }
 0x4c8   :  { %4365 = vmatpush1.bf16.msra.mxu1 %v6011_v44 }
 0x4c9   :  { %4366 = vmatprep.subr.bf16.mxu1 %v6016_v38 }
 0x4ca   :  { %5369 = vmatpush3.bf16.msra.mxu0 %v6070_v61 }
 0x4cb   :  { %5370 = vmatprep.subr.bf16.mxu0 %v6106_v47 }
 0x4cc   :  { %4367 = vmatpush1.bf16.msra.mxu1 %v6014_v15 }
 0x4cd   :  { %4368 = vmatprep.subr.bf16.mxu1 %v6019_v19 }
 0x4ce   :  { %5371 = vmatpush3.bf16.msra.mxu0 %v6071_v16 }
 0x4cf   :  { %5372 = vmatprep.subr.bf16.mxu0 %v6106_v47 }
 0x4d0   :  { %4369 = vmatpush1.bf16.msra.mxu1 %v6017_v43  ;;  %v6072_v43 = vld [vmem:[%s8436_s5 + $0xa8] sm:$0xff]  }
 0x4d1   :  { %4370 = vmatprep.subr.bf16.mxu1 %v6022_v14  ;;  %v6073_v14 = vld [vmem:[%s8436_s5 + $0xb0] sm:$0xff]  }
 0x4d2   :  { %5373 = vmatpush3.bf16.msra.mxu0 %v6072_v43 }
 0x4d3   :  { %5374 = vmatprep.subr.bf16.mxu0 %v6106_v47 }
 0x4d4   :  { %4371 = vmatpush1.bf16.msra.mxu1 %v6020_v22  ;;  %v6074_v22 = vld [vmem:[%s8436_s5 + $0xb8] sm:$0xff]  }
 0x4d5   :  { %4372 = vmatprep.subr.bf16.mxu1 %v6025_v45  ;;  %v3481_v45 = vld [vmem:[%s8437_s6] sm:$0x7] }
 0x4d6   :  { %5375 = vmatpush3.bf16.msra.mxu0 %v6073_v14 }
 0x4d7   :  { %5376 = vmatprep.subr.bf16.mxu0 %v6106_v47 }
 0x4d8   :  { %4373 = vmatpush1.bf16.msra.mxu1 %v6023_v60  ;;  %v3486_v60 = vrot.slane %v3481_v45, %v7772_v56 }
 0x4d9   :  { %4374 = vmatprep.subr.bf16.mxu1 %v6028_v30  ;;  %v3490_v30 = vrot.slane %v3481_v45, %v7777_v5 }
 0x4da   :  { %5377 = vmatpush3.bf16.msra.mxu0 %v6074_v22 }
 0x4dc   :  { %4375 = vmatpush1.bf16.msra.mxu1 %v6026_v18 }
 0x4dd   :  { %4376 = vmatprep.subr.bf16.mxu1 %v6031_v11 }
 0x4e0   :  { %4377 = vmatpush1.bf16.msra.mxu1 %v6029_v34 }
 0x4e1   :  { %4378 = vmatprep.subr.bf16.mxu1 %v6034_v6 }
 0x4e4   :  { %4379 = vmatpush1.bf16.msra.mxu1 %v6032_v21 }
 0x4e5   :  { %5287 = vmatprep.subr.bf16.mxu1 %v6035_v58 }
 0x4e7   :  { %4381 = vmatmul.mubr.bf16.vlgmr.msra.gmra.mrb[4].mxu1 %v8147_v41  ;;  %v6046_v41 = vld [vmem:[%s8435_s4 + $0x200] ss:$12 sps:$4 sm:$0xff]  }
 0x4e8   :  { %5288 = vmatpush3.bf16.msra.mxu1 %v6036_v55  ;;  %4461 = vmatprep.mubr.bf16.mxu1 %v8051_v20  ;;  %v6042_v20 = vld [vmem:[%s8435_s4 + $0x1d0] ss:$12 sps:$4 sm:$0xff]  }
 0x4e9   :  { %5289 = vmatprep.subr.bf16.mxu1 %v6037_v54 }
 0x4ec   :  { %5290 = vmatpush3.bf16.msra.mxu1 %v6038_v8 }
 0x4ed   :  { %5291 = vmatprep.subr.bf16.mxu1 %v6039_v33 }
 0x4f0   :  { %5292 = vmatpush3.bf16.msra.mxu1 %v6040_v37  ;;  %v3494_v37 = vrot.slane %v3481_v45, %v7781_v49  ;;  %v5240_v49 = vld [vmem:[%s8437_s6 + $0x3] ss:$0 sm:$0xff] }
 0x4f1   :  { %5293 = vmatprep.subr.bf16.mxu1 %v6041_v10 }
 0x4f4   :  { %5294 = vmatpush3.bf16.msra.mxu1 %v6042_v20 }
 0x4f5   :  { %5295 = vmatprep.subr.bf16.mxu1 %v6043_v51 }
 0x4f8   :  { %5296 = vmatpush3.bf16.msra.mxu1 %v6044_v42 }
 0x4f9   :  { %5297 = vmatprep.subr.bf16.mxu1 %v6045_v9 }
 0x4fc   :  { %5298 = vmatpush3.bf16.msra.mxu1 %v6046_v41 }
 0x4fd   :  { %5299 = vmatprep.subr.bf16.mxu1 %v6047_v3 }
 0x500   :  { %5300 = vmatpush3.bf16.msra.mxu1 %v6048_v46 }
 0x501   :  { %5301 = vmatprep.subr.bf16.mxu1 %v6049_v31 }
 0x504   :  { %5302 = vmatpush3.bf16.msra.mxu1 %v6050_v32 }
 0x505   :  { %5331 = vmatprep.subr.bf16.mxu1 %v6051_v26 }
 0x507   :  { %4462 = vmatmul.mubr.bf16.vlgmr.msra.gmra.mrb[8].mxu1 %v8200_v36 }
 0x508   :  { %5332 = vmatpush3.bf16.msra.mxu1 %v6052_v48 }
 0x509   :  { %5333 = vmatprep.subr.bf16.mxu1 %v6053_v52 }
 0x50c   :  { %5334 = vmatpush3.bf16.msra.mxu1 %v6054_v12  ;;  %v4795_v12 = vand.u32 127, %v1166_v63 }
 0x50d   :  { %5335 = vmatprep.subr.bf16.mxu1 %v6055_v59 }
 0x50e   :  { %vm4796_vm9 = vcmp.lt.s32.totalorder %v4795_v12, 2 }
 0x510   :  { %5336 = vmatpush3.bf16.msra.mxu1 %v6056_v28 }
 0x511   :  { %5337 = vmatprep.subr.bf16.mxu1 %v6057_v24 }
 0x514   :  { %5338 = vmatpush3.bf16.msra.mxu1 %v6058_v40 }
 0x515   :  { %5339 = vmatprep.subr.bf16.mxu1 %v6059_v39  ;;  %v4799_v39 = vsel %vm4796_vm9, %v8033_v25, 0.0 }
 0x518   :  { %5340 = vmatpush3.bf16.msra.mxu1 %v6060_v23 }
 0x519   :  { %5341 = vmatprep.subr.bf16.mxu1 %v6061_v0 }
 0x51c   :  { %5342 = vmatpush3.bf16.msra.mxu1 %v6062_v1 }
 0x51d   :  { %5343 = vmatprep.subr.bf16.mxu1 %v6063_v17 }
 0x520   :  { %5344 = vmatpush3.bf16.msra.mxu1 %v6064_v7 }
 0x521   :  { %5345 = vmatprep.subr.bf16.mxu1 %v6065_v29 }
 0x524   :  { %5346 = vmatpush3.bf16.msra.mxu1 %v6066_v13 }
 0x53a   :  { %v5281_v36 = vpop.f32.mrb[8].mxu0 }
 0x53b   :  { %v5282_v27 = vpop.f32.mrb[9].mxu0 }
 0x53c   :  { %v5283_v53 = vadd.f32 %v5282_v27, %v5281_v36  ;;  %v5284_v62 = vpop.f32.mrb[10].mxu0 }
 0x53d   :  { %v5285_v35 = vpop.f32.mrb[11].mxu0 }
 0x53e   :  { %v4424_v51 = vadd.f32 %v5283_v53, %v3494_v37 }
 0x55a   :  { %v5325_v50 = vpop.f32.mrb[12].mxu0 }
 0x55b   :  { %v5326_v44 = vpop.f32.mrb[13].mxu0 }
 0x55c   :  { %v5327_v38 = vadd.f32 %v5326_v44, %v5325_v50  ;;  %v5328_v15 = vpop.f32.mrb[14].mxu0 }
 0x55d   :  { %v5329_v19 = vpop.f32.mrb[15].mxu0 }
 0x5ba   :  { %v4382_v18 = vpop.f32.mrb[4].mxu1 }
 0x5bb   :  { %v5388_v11 = vadd.f32 %v4382_v18, %v3486_v60  ;;  %v4384_v34 = vpop.f32.mrb[5].mxu1 }
 0x5bc   :  { %v5389_v6 = vadd.f32 %v4384_v34, %v3490_v30  ;;  %v4386_v21 = vpop.f32.mrb[6].mxu1 }
 0x5bd   :  { %v4509_v58 = vmax.f32 %v5388_v11, 0.0  ;;  %v4387_v55 = vpop.f32.mrb[7].mxu1 }
 0x5be   :  { %v4510_v54 = vmax.f32 %v5389_v6, 0.0 }
 0x5bf   :  { %v4512_v33 = vpack.c.bf16 %v4509_v58, %v4509_v58 }
 0x5c0   :  { %v4513_v8 = vpack.c.bf16 %v4510_v54, %v4510_v54 }
 0x5c2   :  { %4746 = vmatprep.mubr.bf16.mxu1 %v4513_v8 }
 0x5c3   :  { %4747 = vmatmul.mubr.bf16.vlgmr.msra.gmra.mrb[12].mxu1 %v4512_v33 }
 0x5da   :  { %v5303_v10 = vpop.f32.mrb[8].mxu1 }
 0x5db   :  { %v5304_v20 = vpop.f32.mrb[9].mxu1 }
 0x5dc   :  { %v5305_v56 = vadd.f32 %v5304_v20, %v5303_v10  ;;  %v5306_v42 = vpop.f32.mrb[10].mxu1 }
 0x5dd   :  { %v5307_v5 = vpop.f32.mrb[11].mxu1 }
 0x5de   :  { %v4464_v9 = vadd.f32 %v5305_v56, %v4424_v51 }
 0x5e0   :  { %v4504_v41 = vadd.f32 %v5327_v38, %v4464_v9 }
 0x5e2   :  { %v4511_v3 = vmax.f32 %v4504_v41, 0.0 }
 0x5e4   :  { %v4514_v46 = vpack.c.bf16 %v4511_v3, %v4511_v3 }
 0x5e6   :  { %5379 = vmatmul.mubr.bf16.vlgmr.msra.gmra.mrb[16].mxu0 %v4514_v46 }
 0x696   :  { %v5347_v31 = vpop.f32.mrb[12].mxu1 }
 0x697   :  { %v5348_v32 = vpop.f32.mrb[13].mxu1 }
 0x698   :  { %v5349_v26 = vadd.f32 %v5348_v32, %v5347_v31  ;;  %v5350_v48 = vpop.f32.mrb[14].mxu1 }
 0x699   :  { %v5351_v52 = vpop.f32.mrb[15].mxu1 }
 0x69a   :  { %v4749_v59 = vadd.f32 %v5349_v26, %v5240_v49 }
 0x6b9   :  { %v4788_v28 = vpop.f32.mrb[16].mxu0 }
 0x6ba   :  { %v4789_v24 = vadd.f32 %v4788_v28, %v4749_v59  ;;  %v5380_v40 = vpop.f32.mrb[17].mxu0 }
 0x6bb   :  { %v4791_v23 = vpop.f32.mrb[18].mxu0 }
 0x6bc   :  { %v4800_v0 = vadd.f32 %v4799_v39, %v4789_v24  ;;  %v5381_v1 = vpop.f32.mrb[19].mxu0 }
 0x6be   :  { %4801 = vst [vmem:[%s8438_s7] sm:$0xff] %v4800_v0 }

</bundles_post_ra>
